<compile_context>
chip_gen: v5e
topology: v5e:2x2
jax: 0.10.0
libtpu: 0.0.40
codegen_flags: <defaults>
</compile_context>

<pallas_src>
import functools

import jax
import jax.numpy as jnp
from jax.experimental import pallas as pl
from jax.experimental.pallas import tpu as pltpu


def _lstm_decoder_fused_kernel(xs_ref, h0_ref, c0_ref,
                               wx_ref, wh_ref, bg_ref,
                               wd_ref, bd_ref,
                               ys_ref, h_out_ref, c_out_ref,
                               gx_scr, hseq_scr):
    """Whole sequence in one program: batched input projection, unrolled
    recurrence (h @ Wh only on the serial path), batched decoder."""
    T = xs_ref.shape[0]
    H = h0_ref.shape[-1]

    # ---- Phase 0: hoisted, time-parallel input projection for all T steps ----
    # (T, D_in) x (D_in, 4H) -> (T, 4H), accumulated in f32, + fused gate bias.
    gx_scr[...] = (jnp.dot(xs_ref[...], wx_ref[...],
                           preferred_element_type=jnp.float32)
                   + bg_ref[...])

    # ---- Phase 1: serial recurrence (statically unrolled, T is small) --------
    # All state / elementwise math kept in f32 (v5e has no bf16 VPU/EUP path).
    h = h0_ref[...]
    c = c0_ref[...]
    for t in range(T):
        gates = gx_scr[pl.ds(t, 1), :] + jnp.dot(
            h.astype(jnp.bfloat16), wh_ref[...],
            preferred_element_type=jnp.float32)

        # Gate order [f, i, o, s]: one sigmoid over the contiguous 3H slab.
        fio = jax.nn.sigmoid(gates[:, 0:3 * H])
        f = fio[:, 0 * H:1 * H]
        i = fio[:, 1 * H:2 * H]
        o = fio[:, 2 * H:3 * H]
        s = jnp.tanh(gates[:, 3 * H:4 * H])

        c = f * c + i * s
        h = jnp.tanh(c) * o
        hseq_scr[pl.ds(t, 1), :] = h

    # ---- Phase 2: hoisted decoder over the whole hidden sequence -------------
    # TODO(synk): nn.Dropout is identity in eval mode; training-mode masking not modeled.
    ys_ref[...] = (jnp.dot(hseq_scr[...].astype(jnp.bfloat16), wd_ref[...],
                           preferred_element_type=jnp.float32)
                   + bd_ref[...])

    # Final states written once.
    h_out_ref[...] = h
    c_out_ref[...] = c


def model_forward_sequence(xs, h0, c0, params, *, nbatches, size):
    """Runs T consecutive Model.forward steps (LSTM cell -> dropout(identity)
    -> decoder Linear) in a single pallas_call.

    Returns (logits (T, nbatches, size), final_hidden, final_context)."""
    wx, wh, bg, wd, bd = params
    T, D_in = xs.shape
    H = h0.shape[-1]
    D_out = wd.shape[-1]

    # Pre-cast once in the wrapper: bf16 MXU operand, half the xs DMA bytes.
    xs_bf = xs.astype(jnp.bfloat16)

    flops = (2 * T * D_in * 4 * H      # batched x @ Wx
             + 2 * T * H * 4 * H       # per-step h @ Wh
             + 2 * T * H * D_out       # batched decoder
             + 10 * T * H)             # gate elementwise
    bytes_accessed = (xs_bf.size * 2
                      + (wx.size + wh.size + wd.size) * 2   # bf16 weights
                      + (bg.size + bd.size) * 4             # f32 biases
                      + T * D_out * 4 + 4 * H * 4)          # outputs + states
    cost = pl.CostEstimate(flops=flops, transcendentals=T * 5 * H,
                           bytes_accessed=bytes_accessed)

    grid_spec = pltpu.PrefetchScalarGridSpec(
        num_scalar_prefetch=0,
        grid=(1,),
        in_specs=[
            pl.BlockSpec((T, D_in), lambda i: (0, 0)),       # xs (bf16), resident
            pl.BlockSpec((1, H), lambda i: (0, 0)),          # h0
            pl.BlockSpec((1, H), lambda i: (0, 0)),          # c0
            pl.BlockSpec((D_in, 4 * H), lambda i: (0, 0)),   # wx
            pl.BlockSpec((H, 4 * H), lambda i: (0, 0)),      # wh
            pl.BlockSpec((1, 4 * H), lambda i: (0, 0)),      # bg
            pl.BlockSpec((H, D_out), lambda i: (0, 0)),      # wd
            pl.BlockSpec((1, D_out), lambda i: (0, 0)),      # bd
        ],
        out_specs=(
            pl.BlockSpec((T, D_out), lambda i: (0, 0)),      # ys, full sequence
            pl.BlockSpec((1, H), lambda i: (0, 0)),          # final hidden
            pl.BlockSpec((1, H), lambda i: (0, 0)),          # final context
        ),
        scratch_shapes=[pltpu.VMEM((T, 4 * H), jnp.float32),  # hoisted gates_x
                        pltpu.VMEM((T, H), jnp.float32)],     # hidden sequence
    )

    ys, h_new, c_new = pl.pallas_call(
        _lstm_decoder_fused_kernel,
        out_shape=(
            jax.ShapeDtypeStruct((T, D_out), jnp.float32),
            jax.ShapeDtypeStruct((1, H), jnp.float32),
            jax.ShapeDtypeStruct((1, H), jnp.float32),
        ),
        grid_spec=grid_spec,
        compiler_params=pltpu.CompilerParams(
            dimension_semantics=("arbitrary",)),
        cost_estimate=cost,
    )(xs_bf, h0, c0, wx, wh, bg, wd, bd)

    return ys.reshape(T, nbatches, size), h_new, c_new


def init_params(key, size, prev, batch, hidden):
    """Deterministic parameter init mirroring the PyTorch module's shapes.
    Gate / decoder weights stored in bf16 (MXU-native); biases in f32.
    Gate concat order is [f, i, o, s]."""
    D_in = size * prev * batch      # input to every *_input Linear
    H = hidden * batch              # hidden_size
    D_out = size * batch            # output_decoder out_features

    keys = jax.random.split(key, 6)
    bound_in = 1.0 / jnp.sqrt(D_in)
    bound_h = 1.0 / jnp.sqrt(H)

    wx = jax.random.uniform(keys[0], (D_in, 4 * H), jnp.float32,
                            -bound_in, bound_in).astype(jnp.bfloat16)
    wh = jax.random.uniform(keys[1], (H, 4 * H), jnp.float32,
                            -bound_h, bound_h).astype(jnp.bfloat16)
    b_in = jax.random.uniform(keys[2], (1, 4 * H), jnp.float32,
                              -bound_in, bound_in)
    b_hid = jax.random.uniform(keys[3], (1, 4 * H), jnp.float32,
                               -bound_h, bound_h)
    bg = b_in + b_hid

    # output_decoder: weight.uniform_(-1, 1), bias.fill_(0)
    wd = jax.random.uniform(keys[4], (H, D_out), jnp.float32,
                            -1.0, 1.0).astype(jnp.bfloat16)
    bd = jnp.zeros((1, D_out), jnp.float32)
    return wx, wh, bg, wd, bd


def reference_forward_sequence(xs, h0, c0, params, *, nbatches, size):
    """Pure-JAX reference of the same math (same bf16 matmul operands, f32 acc,
    same [f, i, o, s] gate order)."""
    wx, wh, bg, wd, bd = params
    H = h0.shape[-1]

    def step(carry, x):
        h, c = carry
        g = (jnp.dot(x.reshape(1, -1).astype(jnp.bfloat16), wx,
                     preferred_element_type=jnp.float32)
             + jnp.dot(h.astype(jnp.bfloat16), wh,
                       preferred_element_type=jnp.float32)
             + bg)
        f = jax.nn.sigmoid(g[:, 0 * H:1 * H])
        i = jax.nn.sigmoid(g[:, 1 * H:2 * H])
        o = jax.nn.sigmoid(g[:, 2 * H:3 * H])
        s = jnp.tanh(g[:, 3 * H:4 * H])
        c_new = f * c + i * s
        h_new = jnp.tanh(c_new) * o
        y = jnp.dot(h_new.astype(jnp.bfloat16), wd,
                    preferred_element_type=jnp.float32) + bd
        return (h_new, c_new), y[0]

    (h_f, c_f), ys = jax.lax.scan(step, (h0, c0), xs)
    return ys.reshape(xs.shape[0], nbatches, size), h_f, c_f


if __name__ == "__main__":
    # Small, lane-aligned shapes consistent with Model(size, prev, batch, dropout, rate, hidden):
    #   H = hidden*batch = 128, D_in = size*prev*batch = 256, D_out = size*batch = 128.
    size, prev, batch, hidden = 64, 2, 2, 64
    nbatches = batch
    T = 8                                  # number of consecutive forward() steps
    D_in = size * prev * batch             # 256
    H = hidden * batch                     # 128

    key = jax.random.PRNGKey(0)
    k_param, k_x = jax.random.split(key)
    params = init_params(k_param, size, prev, batch, hidden)

    # T example inputs, each the flattened (batch, prev, size) one-hot-ish vector.
    xs = jax.random.normal(k_x, (T, D_in), jnp.float32)

    hidden_state = jnp.zeros((1, H), jnp.float32)   # self.hidden
    context = jnp.zeros((1, H), jnp.float32)        # self.context (after reset())

    fwd = jax.jit(functools.partial(model_forward_sequence,
                                    nbatches=nbatches, size=size))
    ys, h_new, c_new = fwd(xs, hidden_state, context, params)
    jax.block_until_ready((ys, h_new, c_new))

    ys_ref, h_ref, c_ref = reference_forward_sequence(
        xs, hidden_state, context, params, nbatches=nbatches, size=size)

    assert ys.shape == (T, nbatches, size)
    assert jnp.allclose(ys, ys_ref, atol=2e-3, rtol=2e-3)
    assert jnp.allclose(h_new, h_ref, atol=2e-3, rtol=2e-3)
    assert jnp.allclose(c_new, c_ref, atol=2e-3, rtol=2e-3)

    print("KERNEL_OK")
</pallas_src>

<mosaic_0001>
module attributes {stable_mosaic.version = 11 : i64} {
  func.func @_lstm_decoder_fused_kernel(%arg0: i32, %arg1: memref<8x256xbf16, #tpu.memory_space<vmem>>, %arg2: memref<1x128xf32, #tpu.memory_space<vmem>>, %arg3: memref<1x128xf32, #tpu.memory_space<vmem>>, %arg4: memref<256x512xbf16, #tpu.memory_space<vmem>>, %arg5: memref<128x512xbf16, #tpu.memory_space<vmem>>, %arg6: memref<1x512xf32, #tpu.memory_space<vmem>>, %arg7: memref<128x128xbf16, #tpu.memory_space<vmem>>, %arg8: memref<1x128xf32, #tpu.memory_space<vmem>>, %arg9: memref<8x128xf32, #tpu.memory_space<vmem>>, %arg10: memref<1x128xf32, #tpu.memory_space<vmem>>, %arg11: memref<1x128xf32, #tpu.memory_space<vmem>>, %arg12: memref<8x512xf32, #tpu.memory_space<vmem>>, %arg13: memref<8x128xf32, #tpu.memory_space<vmem>>) attributes {dimension_semantics = [#tpu.dimension_semantics<arbitrary>], iteration_bounds = array<i64: 1>, scalar_prefetch = 0 : i64, scratch_operands = 2 : i64, tpu.core_type = #tpu.core_type<tc>, window_params = [{pipeline_mode = #tpu.pipeline_mode<synchronous>, transform_indices = @transform_0, window_bounds = array<i64: 8, 256>}, {pipeline_mode = #tpu.pipeline_mode<synchronous>, transform_indices = @transform_1, window_bounds = array<i64: 1, 128>}, {pipeline_mode = #tpu.pipeline_mode<synchronous>, transform_indices = @transform_2, window_bounds = array<i64: 1, 128>}, {pipeline_mode = #tpu.pipeline_mode<synchronous>, transform_indices = @transform_3, window_bounds = array<i64: 256, 512>}, {pipeline_mode = #tpu.pipeline_mode<synchronous>, transform_indices = @transform_4, window_bounds = array<i64: 128, 512>}, {pipeline_mode = #tpu.pipeline_mode<synchronous>, transform_indices = @transform_5, window_bounds = array<i64: 1, 512>}, {pipeline_mode = #tpu.pipeline_mode<synchronous>, transform_indices = @transform_6, window_bounds = array<i64: 128, 128>}, {pipeline_mode = #tpu.pipeline_mode<synchronous>, transform_indices = @transform_7, window_bounds = array<i64: 1, 128>}, {pipeline_mode = #tpu.pipeline_mode<synchronous>, transform_indices = @transform_8, window_bounds = array<i64: 8, 128>}, {pipeline_mode = #tpu.pipeline_mode<synchronous>, transform_indices = @transform_9, window_bounds = array<i64: 1, 128>}, {pipeline_mode = #tpu.pipeline_mode<synchronous>, transform_indices = @transform_10, window_bounds = array<i64: 1, 128>}]} {
    %c0 = arith.constant 0 : index
    %c0_0 = arith.constant 0 : index
    %0 = vector.load %arg1[%c0, %c0_0] : memref<8x256xbf16, #tpu.memory_space<vmem>>, vector<8x256xbf16>
    %c0_1 = arith.constant 0 : index
    %c0_2 = arith.constant 0 : index
    %1 = vector.load %arg4[%c0_1, %c0_2] : memref<256x512xbf16, #tpu.memory_space<vmem>>, vector<256x512xbf16>
    %cst = arith.constant dense<0.000000e+00> : vector<8x512xf32>
    %2 = tpu.matmul %0, %1, %cst {dimension_numbers = #tpu.dot_dimension_numbers<[1], [0], [0], [1], [0, 0, 1, 1], [], []>} : vector<8x256xbf16>, vector<256x512xbf16>, vector<8x512xf32> -> vector<8x512xf32>
    %c0_3 = arith.constant 0 : index
    %c0_4 = arith.constant 0 : index
    %3 = vector.load %arg6[%c0_3, %c0_4] : memref<1x512xf32, #tpu.memory_space<vmem>>, vector<1x512xf32>
    %4 = vector.broadcast %3 : vector<1x512xf32> to vector<8x512xf32>
    %5 = arith.addf %2, %4 : vector<8x512xf32>
    %c0_5 = arith.constant 0 : index
    %c0_6 = arith.constant 0 : index
    %6 = vector.load %arg12[%c0_5, %c0_6] : memref<8x512xf32, #tpu.memory_space<vmem>>, vector<8x512xf32>
    tpu.vector_store %arg12[%c0_5, %c0_6], %5 {strides = array<i32>} : memref<8x512xf32, #tpu.memory_space<vmem>>, vector<8x512xf32>,
    %c0_7 = arith.constant 0 : index
    %c0_8 = arith.constant 0 : index
    %7 = vector.load %arg2[%c0_7, %c0_8] : memref<1x128xf32, #tpu.memory_space<vmem>>, vector<1x128xf32>
    %c0_9 = arith.constant 0 : index
    %c0_10 = arith.constant 0 : index
    %8 = vector.load %arg3[%c0_9, %c0_10] : memref<1x128xf32, #tpu.memory_space<vmem>>, vector<1x128xf32>
    %c0_11 = arith.constant 0 : index
    %c0_12 = arith.constant 0 : index
    %9 = vector.load %arg12[%c0_11, %c0_12] : memref<8x512xf32, #tpu.memory_space<vmem>>, vector<1x512xf32>
    %10 = arith.truncf %7 : vector<1x128xf32> to vector<1x128xbf16>
    %c0_13 = arith.constant 0 : index
    %c0_14 = arith.constant 0 : index
    %11 = vector.load %arg5[%c0_13, %c0_14] : memref<128x512xbf16, #tpu.memory_space<vmem>>, vector<128x512xbf16>
    %cst_15 = arith.constant dense<0.000000e+00> : vector<1x512xf32>
    %12 = tpu.matmul %10, %11, %cst_15 {dimension_numbers = #tpu.dot_dimension_numbers<[1], [0], [0], [1], [0, 0, 1, 1], [], []>} : vector<1x128xbf16>, vector<128x512xbf16>, vector<1x512xf32> -> vector<1x512xf32>
    %13 = arith.addf %9, %12 : vector<1x512xf32>
    %14 = vector.extract_strided_slice %13 {offsets = [0, 0], sizes = [1, 384], strides = [1, 1]} : vector<1x512xf32> to vector<1x384xf32>
    %15 = arith.negf %14 : vector<1x384xf32>
    %16 = math.exp %15 : vector<1x384xf32>
    %cst_16 = arith.constant 1.000000e+00 : f32
    %17 = vector.broadcast %cst_16 : f32 to vector<1x384xf32>
    %18 = arith.addf %17, %16 : vector<1x384xf32>
    %19 = arith.divf %17, %18 : vector<1x384xf32>
    %20 = vector.extract_strided_slice %19 {offsets = [0, 0], sizes = [1, 128], strides = [1, 1]} : vector<1x384xf32> to vector<1x128xf32>
    %21 = vector.extract_strided_slice %19 {offsets = [0, 128], sizes = [1, 128], strides = [1, 1]} : vector<1x384xf32> to vector<1x128xf32>
    %22 = vector.extract_strided_slice %19 {offsets = [0, 256], sizes = [1, 128], strides = [1, 1]} : vector<1x384xf32> to vector<1x128xf32>
    %23 = vector.extract_strided_slice %13 {offsets = [0, 384], sizes = [1, 128], strides = [1, 1]} : vector<1x512xf32> to vector<1x128xf32>
    %24 = math.tanh %23 : vector<1x128xf32>
    %25 = arith.mulf %20, %8 : vector<1x128xf32>
    %26 = arith.mulf %21, %24 : vector<1x128xf32>
    %27 = arith.addf %25, %26 : vector<1x128xf32>
    %28 = math.tanh %27 : vector<1x128xf32>
    %29 = arith.mulf %28, %22 : vector<1x128xf32>
    %c0_17 = arith.constant 0 : index
    %c0_18 = arith.constant 0 : index
    %30 = vector.load %arg13[%c0_17, %c0_18] : memref<8x128xf32, #tpu.memory_space<vmem>>, vector<1x128xf32>
    tpu.vector_store %arg13[%c0_17, %c0_18], %29 {strides = array<i32>} : memref<8x128xf32, #tpu.memory_space<vmem>>, vector<1x128xf32>,
    %c1 = arith.constant 1 : index
    %c0_19 = arith.constant 0 : index
    %31 = vector.load %arg12[%c1, %c0_19] : memref<8x512xf32, #tpu.memory_space<vmem>>, vector<1x512xf32>
    %32 = arith.truncf %29 : vector<1x128xf32> to vector<1x128xbf16>
    %c0_20 = arith.constant 0 : index
    %c0_21 = arith.constant 0 : index
    %33 = vector.load %arg5[%c0_20, %c0_21] : memref<128x512xbf16, #tpu.memory_space<vmem>>, vector<128x512xbf16>
    %cst_22 = arith.constant dense<0.000000e+00> : vector<1x512xf32>
    %34 = tpu.matmul %32, %33, %cst_22 {dimension_numbers = #tpu.dot_dimension_numbers<[1], [0], [0], [1], [0, 0, 1, 1], [], []>} : vector<1x128xbf16>, vector<128x512xbf16>, vector<1x512xf32> -> vector<1x512xf32>
    %35 = arith.addf %31, %34 : vector<1x512xf32>
    %36 = vector.extract_strided_slice %35 {offsets = [0, 0], sizes = [1, 384], strides = [1, 1]} : vector<1x512xf32> to vector<1x384xf32>
    %37 = arith.negf %36 : vector<1x384xf32>
    %38 = math.exp %37 : vector<1x384xf32>
    %cst_23 = arith.constant 1.000000e+00 : f32
    %39 = vector.broadcast %cst_23 : f32 to vector<1x384xf32>
    %40 = arith.addf %39, %38 : vector<1x384xf32>
    %41 = arith.divf %39, %40 : vector<1x384xf32>
    %42 = vector.extract_strided_slice %41 {offsets = [0, 0], sizes = [1, 128], strides = [1, 1]} : vector<1x384xf32> to vector<1x128xf32>
    %43 = vector.extract_strided_slice %41 {offsets = [0, 128], sizes = [1, 128], strides = [1, 1]} : vector<1x384xf32> to vector<1x128xf32>
    %44 = vector.extract_strided_slice %41 {offsets = [0, 256], sizes = [1, 128], strides = [1, 1]} : vector<1x384xf32> to vector<1x128xf32>
    %45 = vector.extract_strided_slice %35 {offsets = [0, 384], sizes = [1, 128], strides = [1, 1]} : vector<1x512xf32> to vector<1x128xf32>
    %46 = math.tanh %45 : vector<1x128xf32>
    %47 = arith.mulf %42, %27 : vector<1x128xf32>
    %48 = arith.mulf %43, %46 : vector<1x128xf32>
    %49 = arith.addf %47, %48 : vector<1x128xf32>
    %50 = math.tanh %49 : vector<1x128xf32>
    %51 = arith.mulf %50, %44 : vector<1x128xf32>
    %c1_24 = arith.constant 1 : index
    %c0_25 = arith.constant 0 : index
    %52 = vector.load %arg13[%c1_24, %c0_25] : memref<8x128xf32, #tpu.memory_space<vmem>>, vector<1x128xf32>
    tpu.vector_store %arg13[%c1_24, %c0_25], %51 {strides = array<i32>} : memref<8x128xf32, #tpu.memory_space<vmem>>, vector<1x128xf32>,
    %c2 = arith.constant 2 : index
    %c0_26 = arith.constant 0 : index
    %53 = vector.load %arg12[%c2, %c0_26] : memref<8x512xf32, #tpu.memory_space<vmem>>, vector<1x512xf32>
    %54 = arith.truncf %51 : vector<1x128xf32> to vector<1x128xbf16>
    %c0_27 = arith.constant 0 : index
    %c0_28 = arith.constant 0 : index
    %55 = vector.load %arg5[%c0_27, %c0_28] : memref<128x512xbf16, #tpu.memory_space<vmem>>, vector<128x512xbf16>
    %cst_29 = arith.constant dense<0.000000e+00> : vector<1x512xf32>
    %56 = tpu.matmul %54, %55, %cst_29 {dimension_numbers = #tpu.dot_dimension_numbers<[1], [0], [0], [1], [0, 0, 1, 1], [], []>} : vector<1x128xbf16>, vector<128x512xbf16>, vector<1x512xf32> -> vector<1x512xf32>
    %57 = arith.addf %53, %56 : vector<1x512xf32>
    %58 = vector.extract_strided_slice %57 {offsets = [0, 0], sizes = [1, 384], strides = [1, 1]} : vector<1x512xf32> to vector<1x384xf32>
    %59 = arith.negf %58 : vector<1x384xf32>
    %60 = math.exp %59 : vector<1x384xf32>
    %cst_30 = arith.constant 1.000000e+00 : f32
    %61 = vector.broadcast %cst_30 : f32 to vector<1x384xf32>
    %62 = arith.addf %61, %60 : vector<1x384xf32>
    %63 = arith.divf %61, %62 : vector<1x384xf32>
    %64 = vector.extract_strided_slice %63 {offsets = [0, 0], sizes = [1, 128], strides = [1, 1]} : vector<1x384xf32> to vector<1x128xf32>
    %65 = vector.extract_strided_slice %63 {offsets = [0, 128], sizes = [1, 128], strides = [1, 1]} : vector<1x384xf32> to vector<1x128xf32>
    %66 = vector.extract_strided_slice %63 {offsets = [0, 256], sizes = [1, 128], strides = [1, 1]} : vector<1x384xf32> to vector<1x128xf32>
    %67 = vector.extract_strided_slice %57 {offsets = [0, 384], sizes = [1, 128], strides = [1, 1]} : vector<1x512xf32> to vector<1x128xf32>
    %68 = math.tanh %67 : vector<1x128xf32>
    %69 = arith.mulf %64, %49 : vector<1x128xf32>
    %70 = arith.mulf %65, %68 : vector<1x128xf32>
    %71 = arith.addf %69, %70 : vector<1x128xf32>
    %72 = math.tanh %71 : vector<1x128xf32>
    %73 = arith.mulf %72, %66 : vector<1x128xf32>
    %c2_31 = arith.constant 2 : index
    %c0_32 = arith.constant 0 : index
    %74 = vector.load %arg13[%c2_31, %c0_32] : memref<8x128xf32, #tpu.memory_space<vmem>>, vector<1x128xf32>
    tpu.vector_store %arg13[%c2_31, %c0_32], %73 {strides = array<i32>} : memref<8x128xf32, #tpu.memory_space<vmem>>, vector<1x128xf32>,
    %c3 = arith.constant 3 : index
    %c0_33 = arith.constant 0 : index
    %75 = vector.load %arg12[%c3, %c0_33] : memref<8x512xf32, #tpu.memory_space<vmem>>, vector<1x512xf32>
    %76 = arith.truncf %73 : vector<1x128xf32> to vector<1x128xbf16>
    %c0_34 = arith.constant 0 : index
    %c0_35 = arith.constant 0 : index
    %77 = vector.load %arg5[%c0_34, %c0_35] : memref<128x512xbf16, #tpu.memory_space<vmem>>, vector<128x512xbf16>
    %cst_36 = arith.constant dense<0.000000e+00> : vector<1x512xf32>
    %78 = tpu.matmul %76, %77, %cst_36 {dimension_numbers = #tpu.dot_dimension_numbers<[1], [0], [0], [1], [0, 0, 1, 1], [], []>} : vector<1x128xbf16>, vector<128x512xbf16>, vector<1x512xf32> -> vector<1x512xf32>
    %79 = arith.addf %75, %78 : vector<1x512xf32>
    %80 = vector.extract_strided_slice %79 {offsets = [0, 0], sizes = [1, 384], strides = [1, 1]} : vector<1x512xf32> to vector<1x384xf32>
    %81 = arith.negf %80 : vector<1x384xf32>
    %82 = math.exp %81 : vector<1x384xf32>
    %cst_37 = arith.constant 1.000000e+00 : f32
    %83 = vector.broadcast %cst_37 : f32 to vector<1x384xf32>
    %84 = arith.addf %83, %82 : vector<1x384xf32>
    %85 = arith.divf %83, %84 : vector<1x384xf32>
    %86 = vector.extract_strided_slice %85 {offsets = [0, 0], sizes = [1, 128], strides = [1, 1]} : vector<1x384xf32> to vector<1x128xf32>
    %87 = vector.extract_strided_slice %85 {offsets = [0, 128], sizes = [1, 128], strides = [1, 1]} : vector<1x384xf32> to vector<1x128xf32>
    %88 = vector.extract_strided_slice %85 {offsets = [0, 256], sizes = [1, 128], strides = [1, 1]} : vector<1x384xf32> to vector<1x128xf32>
    %89 = vector.extract_strided_slice %79 {offsets = [0, 384], sizes = [1, 128], strides = [1, 1]} : vector<1x512xf32> to vector<1x128xf32>
    %90 = math.tanh %89 : vector<1x128xf32>
    %91 = arith.mulf %86, %71 : vector<1x128xf32>
    %92 = arith.mulf %87, %90 : vector<1x128xf32>
    %93 = arith.addf %91, %92 : vector<1x128xf32>
    %94 = math.tanh %93 : vector<1x128xf32>
    %95 = arith.mulf %94, %88 : vector<1x128xf32>
    %c3_38 = arith.constant 3 : index
    %c0_39 = arith.constant 0 : index
    %96 = vector.load %arg13[%c3_38, %c0_39] : memref<8x128xf32, #tpu.memory_space<vmem>>, vector<1x128xf32>
    tpu.vector_store %arg13[%c3_38, %c0_39], %95 {strides = array<i32>} : memref<8x128xf32, #tpu.memory_space<vmem>>, vector<1x128xf32>,
    %c4 = arith.constant 4 : index
    %c0_40 = arith.constant 0 : index
    %97 = vector.load %arg12[%c4, %c0_40] : memref<8x512xf32, #tpu.memory_space<vmem>>, vector<1x512xf32>
    %98 = arith.truncf %95 : vector<1x128xf32> to vector<1x128xbf16>
    %c0_41 = arith.constant 0 : index
    %c0_42 = arith.constant 0 : index
    %99 = vector.load %arg5[%c0_41, %c0_42] : memref<128x512xbf16, #tpu.memory_space<vmem>>, vector<128x512xbf16>
    %cst_43 = arith.constant dense<0.000000e+00> : vector<1x512xf32>
    %100 = tpu.matmul %98, %99, %cst_43 {dimension_numbers = #tpu.dot_dimension_numbers<[1], [0], [0], [1], [0, 0, 1, 1], [], []>} : vector<1x128xbf16>, vector<128x512xbf16>, vector<1x512xf32> -> vector<1x512xf32>
    %101 = arith.addf %97, %100 : vector<1x512xf32>
    %102 = vector.extract_strided_slice %101 {offsets = [0, 0], sizes = [1, 384], strides = [1, 1]} : vector<1x512xf32> to vector<1x384xf32>
    %103 = arith.negf %102 : vector<1x384xf32>
    %104 = math.exp %103 : vector<1x384xf32>
    %cst_44 = arith.constant 1.000000e+00 : f32
    %105 = vector.broadcast %cst_44 : f32 to vector<1x384xf32>
    %106 = arith.addf %105, %104 : vector<1x384xf32>
    %107 = arith.divf %105, %106 : vector<1x384xf32>
    %108 = vector.extract_strided_slice %107 {offsets = [0, 0], sizes = [1, 128], strides = [1, 1]} : vector<1x384xf32> to vector<1x128xf32>
    %109 = vector.extract_strided_slice %107 {offsets = [0, 128], sizes = [1, 128], strides = [1, 1]} : vector<1x384xf32> to vector<1x128xf32>
    %110 = vector.extract_strided_slice %107 {offsets = [0, 256], sizes = [1, 128], strides = [1, 1]} : vector<1x384xf32> to vector<1x128xf32>
    %111 = vector.extract_strided_slice %101 {offsets = [0, 384], sizes = [1, 128], strides = [1, 1]} : vector<1x512xf32> to vector<1x128xf32>
    %112 = math.tanh %111 : vector<1x128xf32>
    %113 = arith.mulf %108, %93 : vector<1x128xf32>
    %114 = arith.mulf %109, %112 : vector<1x128xf32>
    %115 = arith.addf %113, %114 : vector<1x128xf32>
    %116 = math.tanh %115 : vector<1x128xf32>
    %117 = arith.mulf %116, %110 : vector<1x128xf32>
    %c4_45 = arith.constant 4 : index
    %c0_46 = arith.constant 0 : index
    %118 = vector.load %arg13[%c4_45, %c0_46] : memref<8x128xf32, #tpu.memory_space<vmem>>, vector<1x128xf32>
    tpu.vector_store %arg13[%c4_45, %c0_46], %117 {strides = array<i32>} : memref<8x128xf32, #tpu.memory_space<vmem>>, vector<1x128xf32>,
    %c5 = arith.constant 5 : index
    %c0_47 = arith.constant 0 : index
    %119 = vector.load %arg12[%c5, %c0_47] : memref<8x512xf32, #tpu.memory_space<vmem>>, vector<1x512xf32>
    %120 = arith.truncf %117 : vector<1x128xf32> to vector<1x128xbf16>
    %c0_48 = arith.constant 0 : index
    %c0_49 = arith.constant 0 : index
    %121 = vector.load %arg5[%c0_48, %c0_49] : memref<128x512xbf16, #tpu.memory_space<vmem>>, vector<128x512xbf16>
    %cst_50 = arith.constant dense<0.000000e+00> : vector<1x512xf32>
    %122 = tpu.matmul %120, %121, %cst_50 {dimension_numbers = #tpu.dot_dimension_numbers<[1], [0], [0], [1], [0, 0, 1, 1], [], []>} : vector<1x128xbf16>, vector<128x512xbf16>, vector<1x512xf32> -> vector<1x512xf32>
    %123 = arith.addf %119, %122 : vector<1x512xf32>
    %124 = vector.extract_strided_slice %123 {offsets = [0, 0], sizes = [1, 384], strides = [1, 1]} : vector<1x512xf32> to vector<1x384xf32>
    %125 = arith.negf %124 : vector<1x384xf32>
    %126 = math.exp %125 : vector<1x384xf32>
    %cst_51 = arith.constant 1.000000e+00 : f32
    %127 = vector.broadcast %cst_51 : f32 to vector<1x384xf32>
    %128 = arith.addf %127, %126 : vector<1x384xf32>
    %129 = arith.divf %127, %128 : vector<1x384xf32>
    %130 = vector.extract_strided_slice %129 {offsets = [0, 0], sizes = [1, 128], strides = [1, 1]} : vector<1x384xf32> to vector<1x128xf32>
    %131 = vector.extract_strided_slice %129 {offsets = [0, 128], sizes = [1, 128], strides = [1, 1]} : vector<1x384xf32> to vector<1x128xf32>
    %132 = vector.extract_strided_slice %129 {offsets = [0, 256], sizes = [1, 128], strides = [1, 1]} : vector<1x384xf32> to vector<1x128xf32>
    %133 = vector.extract_strided_slice %123 {offsets = [0, 384], sizes = [1, 128], strides = [1, 1]} : vector<1x512xf32> to vector<1x128xf32>
    %134 = math.tanh %133 : vector<1x128xf32>
    %135 = arith.mulf %130, %115 : vector<1x128xf32>
    %136 = arith.mulf %131, %134 : vector<1x128xf32>
    %137 = arith.addf %135, %136 : vector<1x128xf32>
    %138 = math.tanh %137 : vector<1x128xf32>
    %139 = arith.mulf %138, %132 : vector<1x128xf32>
    %c5_52 = arith.constant 5 : index
    %c0_53 = arith.constant 0 : index
    %140 = vector.load %arg13[%c5_52, %c0_53] : memref<8x128xf32, #tpu.memory_space<vmem>>, vector<1x128xf32>
    tpu.vector_store %arg13[%c5_52, %c0_53], %139 {strides = array<i32>} : memref<8x128xf32, #tpu.memory_space<vmem>>, vector<1x128xf32>,
    %c6 = arith.constant 6 : index
    %c0_54 = arith.constant 0 : index
    %141 = vector.load %arg12[%c6, %c0_54] : memref<8x512xf32, #tpu.memory_space<vmem>>, vector<1x512xf32>
    %142 = arith.truncf %139 : vector<1x128xf32> to vector<1x128xbf16>
    %c0_55 = arith.constant 0 : index
    %c0_56 = arith.constant 0 : index
    %143 = vector.load %arg5[%c0_55, %c0_56] : memref<128x512xbf16, #tpu.memory_space<vmem>>, vector<128x512xbf16>
    %cst_57 = arith.constant dense<0.000000e+00> : vector<1x512xf32>
    %144 = tpu.matmul %142, %143, %cst_57 {dimension_numbers = #tpu.dot_dimension_numbers<[1], [0], [0], [1], [0, 0, 1, 1], [], []>} : vector<1x128xbf16>, vector<128x512xbf16>, vector<1x512xf32> -> vector<1x512xf32>
    %145 = arith.addf %141, %144 : vector<1x512xf32>
    %146 = vector.extract_strided_slice %145 {offsets = [0, 0], sizes = [1, 384], strides = [1, 1]} : vector<1x512xf32> to vector<1x384xf32>
    %147 = arith.negf %146 : vector<1x384xf32>
    %148 = math.exp %147 : vector<1x384xf32>
    %cst_58 = arith.constant 1.000000e+00 : f32
    %149 = vector.broadcast %cst_58 : f32 to vector<1x384xf32>
    %150 = arith.addf %149, %148 : vector<1x384xf32>
    %151 = arith.divf %149, %150 : vector<1x384xf32>
    %152 = vector.extract_strided_slice %151 {offsets = [0, 0], sizes = [1, 128], strides = [1, 1]} : vector<1x384xf32> to vector<1x128xf32>
    %153 = vector.extract_strided_slice %151 {offsets = [0, 128], sizes = [1, 128], strides = [1, 1]} : vector<1x384xf32> to vector<1x128xf32>
    %154 = vector.extract_strided_slice %151 {offsets = [0, 256], sizes = [1, 128], strides = [1, 1]} : vector<1x384xf32> to vector<1x128xf32>
    %155 = vector.extract_strided_slice %145 {offsets = [0, 384], sizes = [1, 128], strides = [1, 1]} : vector<1x512xf32> to vector<1x128xf32>
    %156 = math.tanh %155 : vector<1x128xf32>
    %157 = arith.mulf %152, %137 : vector<1x128xf32>
    %158 = arith.mulf %153, %156 : vector<1x128xf32>
    %159 = arith.addf %157, %158 : vector<1x128xf32>
    %160 = math.tanh %159 : vector<1x128xf32>
    %161 = arith.mulf %160, %154 : vector<1x128xf32>
    %c6_59 = arith.constant 6 : index
    %c0_60 = arith.constant 0 : index
    %162 = vector.load %arg13[%c6_59, %c0_60] : memref<8x128xf32, #tpu.memory_space<vmem>>, vector<1x128xf32>
    tpu.vector_store %arg13[%c6_59, %c0_60], %161 {strides = array<i32>} : memref<8x128xf32, #tpu.memory_space<vmem>>, vector<1x128xf32>,
    %c7 = arith.constant 7 : index
    %c0_61 = arith.constant 0 : index
    %163 = vector.load %arg12[%c7, %c0_61] : memref<8x512xf32, #tpu.memory_space<vmem>>, vector<1x512xf32>
    %164 = arith.truncf %161 : vector<1x128xf32> to vector<1x128xbf16>
    %c0_62 = arith.constant 0 : index
    %c0_63 = arith.constant 0 : index
    %165 = vector.load %arg5[%c0_62, %c0_63] : memref<128x512xbf16, #tpu.memory_space<vmem>>, vector<128x512xbf16>
    %cst_64 = arith.constant dense<0.000000e+00> : vector<1x512xf32>
    %166 = tpu.matmul %164, %165, %cst_64 {dimension_numbers = #tpu.dot_dimension_numbers<[1], [0], [0], [1], [0, 0, 1, 1], [], []>} : vector<1x128xbf16>, vector<128x512xbf16>, vector<1x512xf32> -> vector<1x512xf32>
    %167 = arith.addf %163, %166 : vector<1x512xf32>
    %168 = vector.extract_strided_slice %167 {offsets = [0, 0], sizes = [1, 384], strides = [1, 1]} : vector<1x512xf32> to vector<1x384xf32>
    %169 = arith.negf %168 : vector<1x384xf32>
    %170 = math.exp %169 : vector<1x384xf32>
    %cst_65 = arith.constant 1.000000e+00 : f32
    %171 = vector.broadcast %cst_65 : f32 to vector<1x384xf32>
    %172 = arith.addf %171, %170 : vector<1x384xf32>
    %173 = arith.divf %171, %172 : vector<1x384xf32>
    %174 = vector.extract_strided_slice %173 {offsets = [0, 0], sizes = [1, 128], strides = [1, 1]} : vector<1x384xf32> to vector<1x128xf32>
    %175 = vector.extract_strided_slice %173 {offsets = [0, 128], sizes = [1, 128], strides = [1, 1]} : vector<1x384xf32> to vector<1x128xf32>
    %176 = vector.extract_strided_slice %173 {offsets = [0, 256], sizes = [1, 128], strides = [1, 1]} : vector<1x384xf32> to vector<1x128xf32>
    %177 = vector.extract_strided_slice %167 {offsets = [0, 384], sizes = [1, 128], strides = [1, 1]} : vector<1x512xf32> to vector<1x128xf32>
    %178 = math.tanh %177 : vector<1x128xf32>
    %179 = arith.mulf %174, %159 : vector<1x128xf32>
    %180 = arith.mulf %175, %178 : vector<1x128xf32>
    %181 = arith.addf %179, %180 : vector<1x128xf32>
    %182 = math.tanh %181 : vector<1x128xf32>
    %183 = arith.mulf %182, %176 : vector<1x128xf32>
    %c7_66 = arith.constant 7 : index
    %c0_67 = arith.constant 0 : index
    %184 = vector.load %arg13[%c7_66, %c0_67] : memref<8x128xf32, #tpu.memory_space<vmem>>, vector<1x128xf32>
    tpu.vector_store %arg13[%c7_66, %c0_67], %183 {strides = array<i32>} : memref<8x128xf32, #tpu.memory_space<vmem>>, vector<1x128xf32>,
    %c0_68 = arith.constant 0 : index
    %c0_69 = arith.constant 0 : index
    %185 = vector.load %arg13[%c0_68, %c0_69] : memref<8x128xf32, #tpu.memory_space<vmem>>, vector<8x128xf32>
    %186 = arith.truncf %185 : vector<8x128xf32> to vector<8x128xbf16>
    %c0_70 = arith.constant 0 : index
    %c0_71 = arith.constant 0 : index
    %187 = vector.load %arg7[%c0_70, %c0_71] : memref<128x128xbf16, #tpu.memory_space<vmem>>, vector<128x128xbf16>
    %cst_72 = arith.constant dense<0.000000e+00> : vector<8x128xf32>
    %188 = tpu.matmul %186, %187, %cst_72 {dimension_numbers = #tpu.dot_dimension_numbers<[1], [0], [0], [1], [0, 0, 1, 1], [], []>} : vector<8x128xbf16>, vector<128x128xbf16>, vector<8x128xf32> -> vector<8x128xf32>
    %c0_73 = arith.constant 0 : index
    %c0_74 = arith.constant 0 : index
    %189 = vector.load %arg8[%c0_73, %c0_74] : memref<1x128xf32, #tpu.memory_space<vmem>>, vector<1x128xf32>
    %190 = vector.broadcast %189 : vector<1x128xf32> to vector<8x128xf32>
    %191 = arith.addf %188, %190 : vector<8x128xf32>
    %c0_75 = arith.constant 0 : index
    %c0_76 = arith.constant 0 : index
    %192 = vector.load %arg9[%c0_75, %c0_76] : memref<8x128xf32, #tpu.memory_space<vmem>>, vector<8x128xf32>
    tpu.vector_store %arg9[%c0_75, %c0_76], %191 {strides = array<i32>} : memref<8x128xf32, #tpu.memory_space<vmem>>, vector<8x128xf32>,
    %c0_77 = arith.constant 0 : index
    %c0_78 = arith.constant 0 : index
    %193 = vector.load %arg10[%c0_77, %c0_78] : memref<1x128xf32, #tpu.memory_space<vmem>>, vector<1x128xf32>
    tpu.vector_store %arg10[%c0_77, %c0_78], %183 {strides = array<i32>} : memref<1x128xf32, #tpu.memory_space<vmem>>, vector<1x128xf32>,
    %c0_79 = arith.constant 0 : index
    %c0_80 = arith.constant 0 : index
    %194 = vector.load %arg11[%c0_79, %c0_80] : memref<1x128xf32, #tpu.memory_space<vmem>>, vector<1x128xf32>
    tpu.vector_store %arg11[%c0_79, %c0_80], %181 {strides = array<i32>} : memref<1x128xf32, #tpu.memory_space<vmem>>, vector<1x128xf32>,
    return
  }
  func.func @transform_0(%arg0: i32) -> (i32, i32) {
    %c0_i32 = arith.constant 0 : i32
    %c0_i32_0 = arith.constant 0 : i32
    %c0_i32_1 = arith.constant 0 : i32
    return %c0_i32, %c0_i32_0 : i32, i32
  }
  func.func @transform_1(%arg0: i32) -> (i32, i32) {
    %c0_i32 = arith.constant 0 : i32
    %c0_i32_0 = arith.constant 0 : i32
    %c0_i32_1 = arith.constant 0 : i32
    return %c0_i32, %c0_i32_0 : i32, i32
  }
  func.func @transform_2(%arg0: i32) -> (i32, i32) {
    %c0_i32 = arith.constant 0 : i32
    %c0_i32_0 = arith.constant 0 : i32
    %c0_i32_1 = arith.constant 0 : i32
    return %c0_i32, %c0_i32_0 : i32, i32
  }
  func.func @transform_3(%arg0: i32) -> (i32, i32) {
    %c0_i32 = arith.constant 0 : i32
    %c0_i32_0 = arith.constant 0 : i32
    %c0_i32_1 = arith.constant 0 : i32
    return %c0_i32, %c0_i32_0 : i32, i32
  }
  func.func @transform_4(%arg0: i32) -> (i32, i32) {
    %c0_i32 = arith.constant 0 : i32
    %c0_i32_0 = arith.constant 0 : i32
    %c0_i32_1 = arith.constant 0 : i32
    return %c0_i32, %c0_i32_0 : i32, i32
  }
  func.func @transform_5(%arg0: i32) -> (i32, i32) {
    %c0_i32 = arith.constant 0 : i32
    %c0_i32_0 = arith.constant 0 : i32
    %c0_i32_1 = arith.constant 0 : i32
    return %c0_i32, %c0_i32_0 : i32, i32
  }
  func.func @transform_6(%arg0: i32) -> (i32, i32) {
    %c0_i32 = arith.constant 0 : i32
    %c0_i32_0 = arith.constant 0 : i32
    %c0_i32_1 = arith.constant 0 : i32
    return %c0_i32, %c0_i32_0 : i32, i32
  }
  func.func @transform_7(%arg0: i32) -> (i32, i32) {
    %c0_i32 = arith.constant 0 : i32
    %c0_i32_0 = arith.constant 0 : i32
    %c0_i32_1 = arith.constant 0 : i32
    return %c0_i32, %c0_i32_0 : i32, i32
  }
  func.func @transform_8(%arg0: i32) -> (i32, i32) {
    %c0_i32 = arith.constant 0 : i32
    %c0_i32_0 = arith.constant 0 : i32
    %c0_i32_1 = arith.constant 0 : i32
    return %c0_i32, %c0_i32_0 : i32, i32
  }
  func.func @transform_9(%arg0: i32) -> (i32, i32) {
    %c0_i32 = arith.constant 0 : i32
    %c0_i32_0 = arith.constant 0 : i32
    %c0_i32_1 = arith.constant 0 : i32
    return %c0_i32, %c0_i32_0 : i32, i32
  }
  func.func @transform_10(%arg0: i32) -> (i32, i32) {
    %c0_i32 = arith.constant 0 : i32
    %c0_i32_0 = arith.constant 0 : i32
    %c0_i32_1 = arith.constant 0 : i32
    return %c0_i32, %c0_i32_0 : i32, i32
  }
}

</mosaic_0001>

<bundles_post_ra>
// kernel: model_forward_sequence.1
= control target key start
LH: loop header
LB: loop body
LE: loop exit
PB: predicated region body
PF: predicated region fallthrough
CT: control target
= control target key end

     0   :  { %16 = vsyncpa [#allocation5], 0  ;;  %s5074_s0 = inlined_call_operand.vmem [shape: bf16[8,256], index: 0, kind: input, shape index: {}]   ;;  %s5075_s1 = inlined_call_operand.vmem [shape: f32[1,128], index: 1, kind: input, shape index: {}]   ;;  %s5076_s2 = inlined_call_operand.vmem [shape: f32[1,128], index: 2, kind: input, shape index: {}]   ;;  %s5077_s3 = inlined_call_operand.hbm [shape: bf16[256,512], index: 3, kind: input, shape index: {}]   ;;  %s5078_s4 = inlined_call_operand.hbm [shape: bf16[128,512], index: 4, kind: input, shape index: {}]   ;;  %s5079_s5 = inlined_call_operand.vmem [shape: f32[1,512], index: 5, kind: input, shape index: {}]   ;;  %s5080_s6 = inlined_call_operand.hbm [shape: bf16[128,128], index: 6, kind: input, shape index: {}]   ;;  %s5081_s7 = inlined_call_operand.vmem [shape: f32[1,128], index: 7, kind: input, shape index: {}]   ;;  %s5082_s8 = inlined_call_operand.vmem [shape: f32[8,128], index: 8, kind: output, shape index: {0}]   ;;  %s5083_s9 = inlined_call_operand.hbm [shape: f32[1,128], index: 9, kind: output, shape index: {1}]   ;;  %s5084_s10 = inlined_call_operand.hbm [shape: f32[1,128], index: 10, kind: output, shape index: {2}]  }
   0x1   :  { %17 = vsyncpa [#allocation8], 0 }
   0x2   :  { %18 = vsyncpa [#allocation6], 0 }
   0x3   :  { %19 = vsyncpa [#allocation12], 0  ;;  %s43_s15 = sshll.u32 %s5078_s4, 4  ;;  %s4913_s16 = smov [#allocation7]   ;;  %s44_s15 = int_to_ptr.hbm [resolvable:$true] %s43_s15 }
   0x4   :  { %s45_s17 = sshll.u32 %s4913_s16, 4  ;;  %s30_s20 = sshll.u32 %s5077_s3, 4  ;;  %s46_s17 = int_to_ptr.vmem [resolvable:$true] %s45_s17  ;;  %s31_s20 = int_to_ptr.hbm [resolvable:$true] %s30_s20 }
   0x5   :  { %s4914_s21 = smov 256   ;;  %s4915_s22 = smov 16  }
   0x6   :  { %51 = dma.hbm_to_vmem [thread:$0]  %s44_s15, 4096, %s46_s17, [#allocation8], %s4914_s21, %s4914_s21, %s4915_s22  }
   0x7   :  { %s4916_s23 = smov [#allocation4]   ;;  %s58_s27 = sshll.u32 %s5080_s6, 4  ;;  %s59_s27 = int_to_ptr.hbm [resolvable:$true] %s58_s27 }
   0x8   :  { %s32_s24 = sshll.u32 %s4916_s23, 4  ;;  %s4917_s4 = smov [#allocation9]   ;;  %s33_s24 = int_to_ptr.vmem [resolvable:$true] %s32_s24 }
   0x9   :  { %38 = dma.hbm_to_vmem [thread:$0]  %s31_s20, 8192, %s33_s24, [#allocation5], %s4914_s21, %s4914_s21, %s4915_s22  }
   0xa   :  { %s60_s28 = sshll.u32 %s4917_s4, 4  ;;  %s4918_s29 = smov 64   ;;  %s61_s28 = int_to_ptr.vmem [resolvable:$true] %s60_s28 }
   0xb   :  { %s4919_s30 = smov 4  }
   0xc   :  { %66 = dma.hbm_to_vmem [thread:$0]  %s59_s27, 1024, %s61_s28, [#allocation8], %s4918_s29, %s4918_s29, %s4919_s30  }
   0xd   :  { %4905 = dma.done.wait [#allocation5], 8192  }
   0xe   :  { %4906 = vsyncadd [#allocation5], 4294959104 }
   0xf   :  { %4907 = dma.done.wait [#allocation8], 5120  }
  0x10   :  { %4908 = vsyncadd [#allocation8], 4294962176  ;;  %v3177_v0 = vld [vmem:[#allocation4 + $0xe0] sm:$0xf]  ;;  %v4413_v1 = vld [vmem:[#allocation4 + $0xec] sm:$0xf0] }
  0x11   :  { %v3305_v2 = vld [vmem:[#allocation4 + $0x1e0] sm:$0xf]  ;;  %v3178_v3 = vor.u32 %v4413_v1, %v3177_v0  ;;  %v4445_v4 = vld [vmem:[#allocation4 + $0x1ec] sm:$0xf0]  ;;  %v4411_v5 = vld [vmem:[#allocation4 + $0xe4] sm:$0xf] }
  0x12   :  { %v3179_v6 = vld [vmem:[#allocation4 + $0xf0] sm:$0xf0]  ;;  %v3306_v7 = vor.u32 %v4445_v4, %v3305_v2  ;;  %v4443_v9 = vld [vmem:[#allocation4 + $0x1e4] sm:$0xf]  ;;  %v3161_v11 = vld [vmem:[#allocation4 + $0xc0] sm:$0xf] }
  0x13   :  { %v3182_v8 = vor.u32 %v4411_v5, %v3179_v6  ;;  %v3307_v10 = vld [vmem:[#allocation4 + $0x1f0] sm:$0xf0]  ;;  %483 = vmatpush.bf16.msra.mxu0 %v3178_v3  ;;  %v4409_v13 = vld [vmem:[#allocation4 + $0xcc] sm:$0xf0]  ;;  %v3289_v14 = vld [vmem:[#allocation4 + $0x1c0] sm:$0xf] }
  0x14   :  { %v3310_v12 = vor.u32 %v4443_v9, %v3307_v10  ;;  %v4441_v15 = vld [vmem:[#allocation4 + $0x1cc] sm:$0xf0]  ;;  %496 = vmatpush.bf16.msra.mxu1 %v3306_v7  ;;  %v3162_v16 = vor.u32 %v4409_v13, %v3161_v11  ;;  %v4407_v18 = vld [vmem:[#allocation4 + $0xc4] sm:$0xf]  ;;  %v3163_v19 = vld [vmem:[#allocation4 + $0xd0] sm:$0xf0] }
  0x15   :  { %509 = vmatpush.bf16.msra.mxu2 %v3182_v8  ;;  %v3290_v17 = vor.u32 %v4441_v15, %v3289_v14  ;;  %v4439_v20 = vld [vmem:[#allocation4 + $0x1c4] sm:$0xf]  ;;  %v3166_v21 = vor.u32 %v4407_v18, %v3163_v19  ;;  %v3291_v22 = vld [vmem:[#allocation4 + $0x1d0] sm:$0xf0]  ;;  %v3145_v23 = vld [vmem:[#allocation4 + $0xa0] sm:$0xf] }
  0x16   :  { %522 = vmatpush.bf16.msra.mxu3 %v3310_v12  ;;  %v4405_v24 = vld [vmem:[#allocation4 + $0xac] sm:$0xf0]  ;;  %v3294_v25 = vor.u32 %v4439_v20, %v3291_v22  ;;  %v3273_v26 = vld [vmem:[#allocation4 + $0x1a0] sm:$0xf]  ;;  %v4403_v28 = vld [vmem:[#allocation4 + $0xa4] sm:$0xf] }
  0x17   :  { %v4437_v27 = vld [vmem:[#allocation4 + $0x1ac] sm:$0xf0]  ;;  %484 = vmatpush.bf16.msra.mxu0 %v3162_v16  ;;  %v3146_v29 = vor.u32 %v4405_v24, %v3145_v23  ;;  %v3147_v30 = vld [vmem:[#allocation4 + $0xb0] sm:$0xf0]  ;;  %v4435_v31 = vld [vmem:[#allocation4 + $0x1a4] sm:$0xf] }
  0x18   :  { %v3275_v32 = vld [vmem:[#allocation4 + $0x1b0] sm:$0xf0]  ;;  %497 = vmatpush.bf16.msra.mxu1 %v3290_v17  ;;  %v3274_v33 = vor.u32 %v4437_v27, %v3273_v26  ;;  %v3150_v34 = vor.u32 %v4403_v28, %v3147_v30  ;;  %v3129_v35 = vld [vmem:[#allocation4 + $0x80] sm:$0xf]  ;;  %v4401_v36 = vld [vmem:[#allocation4 + $0x8c] sm:$0xf0] }
  0x19   :  { %510 = vmatpush.bf16.msra.mxu2 %v3166_v21  ;;  %v3257_v37 = vld [vmem:[#allocation4 + $0x180] sm:$0xf]  ;;  %v3278_v38 = vor.u32 %v4435_v31, %v3275_v32  ;;  %v4433_v39 = vld [vmem:[#allocation4 + $0x18c] sm:$0xf0]  ;;  %v4399_v40 = vld [vmem:[#allocation4 + $0x84] sm:$0xf]  ;;  %v3130_v44 = vor.u32 %v4401_v36, %v3129_v35 }
  0x1a   :  { %523 = vmatpush.bf16.msra.mxu3 %v3294_v25  ;;  %v3131_v41 = vld [vmem:[#allocation4 + $0x90] sm:$0xf0]  ;;  %v4431_v42 = vld [vmem:[#allocation4 + $0x184] sm:$0xf]  ;;  %v3258_v45 = vor.u32 %v4433_v39, %v3257_v37  ;;  %v3113_v47 = vld [vmem:[#allocation4 + $0x60] sm:$0xf] }
  0x1b   :  { %v3259_v43 = vld [vmem:[#allocation4 + $0x190] sm:$0xf0]  ;;  %485 = vmatpush.bf16.msra.mxu0 %v3146_v29  ;;  %v3134_v46 = vor.u32 %v4399_v40, %v3131_v41  ;;  %v4397_v48 = vld [vmem:[#allocation4 + $0x6c] sm:$0xf0]  ;;  %v3241_v49 = vld [vmem:[#allocation4 + $0x160] sm:$0xf] }
  0x1c   :  { %498 = vmatpush.bf16.msra.mxu1 %v3274_v33  ;;  %v3262_v50 = vor.u32 %v4431_v42, %v3259_v43  ;;  %v4429_v51 = vld [vmem:[#allocation4 + $0x16c] sm:$0xf0]  ;;  %v4395_v52 = vld [vmem:[#allocation4 + $0x64] sm:$0xf]  ;;  %v3115_v53 = vld [vmem:[#allocation4 + $0x70] sm:$0xf0]  ;;  %v3114_v56 = vor.u32 %v4397_v48, %v3113_v47 }
  0x1d   :  { %511 = vmatpush.bf16.msra.mxu2 %v3150_v34  ;;  %v4427_v54 = vld [vmem:[#allocation4 + $0x164] sm:$0xf]  ;;  %v3243_v55 = vld [vmem:[#allocation4 + $0x170] sm:$0xf0]  ;;  %v3242_v57 = vor.u32 %v4429_v51, %v3241_v49  ;;  %v3118_v58 = vor.u32 %v4395_v52, %v3115_v53  ;;  %v3097_v59 = vld [vmem:[#allocation4 + $0x40] sm:$0xf] }
  0x1e   :  { %524 = vmatpush.bf16.msra.mxu3 %v3278_v38  ;;  %v4393_v60 = vld [vmem:[#allocation4 + $0x4c] sm:$0xf0]  ;;  %v3225_v61 = vld [vmem:[#allocation4 + $0x140] sm:$0xf]  ;;  %v3246_v62 = vor.u32 %v4427_v54, %v3243_v55  ;;  %v4391_v0 = vld [vmem:[#allocation4 + $0x44] sm:$0xf] }
  0x1f   :  { %486 = vmatpush.bf16.msra.mxu0 %v3130_v44  ;;  %v4425_v63 = vld [vmem:[#allocation4 + $0x14c] sm:$0xf0]  ;;  %v3099_v1 = vld [vmem:[#allocation4 + $0x50] sm:$0xf0]  ;;  %v4423_v2 = vld [vmem:[#allocation4 + $0x144] sm:$0xf]  ;;  %v3098_v4 = vor.u32 %v4393_v60, %v3097_v59 }
  0x20   :  { %499 = vmatpush.bf16.msra.mxu1 %v3258_v45  ;;  %v3227_v3 = vld [vmem:[#allocation4 + $0x150] sm:$0xf0]  ;;  %v3226_v5 = vor.u32 %v4425_v63, %v3225_v61  ;;  %v3102_v6 = vor.u32 %v4391_v0, %v3099_v1  ;;  %v3081_v7 = vld [vmem:[#allocation4 + $0x20] sm:$0xf]  ;;  %v4389_v8 = vld [vmem:[#allocation4 + $0x2c] sm:$0xf0] }
  0x21   :  { %512 = vmatpush.bf16.msra.mxu2 %v3134_v46  ;;  %v3209_v9 = vld [vmem:[#allocation4 + $0x120] sm:$0xf]  ;;  %v3230_v10 = vor.u32 %v4423_v2, %v3227_v3  ;;  %v4421_v11 = vld [vmem:[#allocation4 + $0x12c] sm:$0xf0]  ;;  %v4387_v12 = vld [vmem:[#allocation4 + $0x24] sm:$0xf]  ;;  %v3082_v16 = vor.u32 %v4389_v8, %v3081_v7 }
  0x22   :  { %525 = vmatpush.bf16.msra.mxu3 %v3262_v50  ;;  %v3083_v13 = vld [vmem:[#allocation4 + $0x30] sm:$0xf0]  ;;  %v4419_v14 = vld [vmem:[#allocation4 + $0x124] sm:$0xf]  ;;  %v3065_v17 = vld [vmem:[#allocation4] sm:$0xf]  ;;  %v3210_v19 = vor.u32 %v4421_v11, %v3209_v9 }
  0x23   :  { %487 = vmatpush.bf16.msra.mxu0 %v3114_v56  ;;  %v3211_v15 = vld [vmem:[#allocation4 + $0x130] sm:$0xf0]  ;;  %v4385_v18 = vld [vmem:[#allocation4 + $0xc] sm:$0xf0]  ;;  %v3086_v20 = vor.u32 %v4387_v12, %v3083_v13  ;;  %v3193_v21 = vld [vmem:[#allocation4 + $0x100] sm:$0xf] }
  0x24   :  { %500 = vmatpush.bf16.msra.mxu1 %v3242_v57  ;;  %v4417_v22 = vld [vmem:[#allocation4 + $0x10c] sm:$0xf0]  ;;  %v4383_v23 = vld [vmem:[#allocation4 + $0x4] sm:$0xf]  ;;  %v3214_v24 = vor.u32 %v4419_v14, %v3211_v15  ;;  %v3067_v25 = vld [vmem:[#allocation4 + $0x10] sm:$0xf0]  ;;  %v3066_v31 = vor.u32 %v4385_v18, %v3065_v17 }
  0x25   :  { %513 = vmatpush.bf16.msra.mxu2 %v3118_v58  ;;  %v4415_v26 = vld [vmem:[#allocation4 + $0x104] sm:$0xf]  ;;  %v3195_v27 = vld [vmem:[#allocation4 + $0x110] sm:$0xf0]  ;;  %v3185_v28 = vld [vmem:[#allocation4 + $0xe8] sm:$0xf]  ;;  %v3194_v35 = vor.u32 %v4417_v22, %v3193_v21  ;;  %v3070_v36 = vor.u32 %v4383_v23, %v3067_v25 }
  0x26   :  { %526 = vmatpush.bf16.msra.mxu3 %v3246_v62  ;;  %v4414_v29 = vld [vmem:[#allocation4 + $0xf4] sm:$0xf0]  ;;  %v3313_v30 = vld [vmem:[#allocation4 + $0x1e8] sm:$0xf]  ;;  %v4412_v33 = vld [vmem:[#allocation4 + $0xec] sm:$0xf]  ;;  %v3198_v39 = vor.u32 %v4415_v26, %v3195_v27 }
  0x27   :  { %488 = vmatpush.bf16.msra.mxu0 %v3098_v4  ;;  %v4446_v32 = vld [vmem:[#allocation4 + $0x1f4] sm:$0xf0]  ;;  %v3187_v34 = vld [vmem:[#allocation4 + $0xf8] sm:$0xf0]  ;;  %v4444_v37 = vld [vmem:[#allocation4 + $0x1ec] sm:$0xf]  ;;  %v3186_v40 = vor.u32 %v4414_v29, %v3185_v28 }
  0x28   :  { %501 = vmatpush.bf16.msra.mxu1 %v3226_v5  ;;  %v3315_v38 = vld [vmem:[#allocation4 + $0x1f8] sm:$0xf0]  ;;  %v3314_v41 = vor.u32 %v4446_v32, %v3313_v30  ;;  %v3190_v42 = vor.u32 %v4412_v33, %v3187_v34  ;;  %v3169_v43 = vld [vmem:[#allocation4 + $0xc8] sm:$0xf]  ;;  %v4410_v44 = vld [vmem:[#allocation4 + $0xd4] sm:$0xf0] }
  0x29   :  { %514 = vmatpush.bf16.msra.mxu2 %v3102_v6  ;;  %v3297_v45 = vld [vmem:[#allocation4 + $0x1c8] sm:$0xf]  ;;  %v3318_v46 = vor.u32 %v4444_v37, %v3315_v38  ;;  %v4442_v47 = vld [vmem:[#allocation4 + $0x1d4] sm:$0xf0]  ;;  %v4408_v48 = vld [vmem:[#allocation4 + $0xcc] sm:$0xf]  ;;  %v3170_v53 = vor.u32 %v4410_v44, %v3169_v43 }
  0x2a   :  { %527 = vmatpush.bf16.msra.mxu3 %v3230_v10  ;;  %v3171_v49 = vld [vmem:[#allocation4 + $0xd8] sm:$0xf0]  ;;  %v4440_v50 = vld [vmem:[#allocation4 + $0x1cc] sm:$0xf]  ;;  %v3298_v56 = vor.u32 %v4442_v47, %v3297_v45  ;;  %v3153_v58 = vld [vmem:[#allocation4 + $0xa8] sm:$0xf] }
  0x2b   :  { %489 = vmatpush.bf16.msra.mxu0 %v3082_v16  ;;  %v3299_v51 = vld [vmem:[#allocation4 + $0x1d8] sm:$0xf0]  ;;  %v3174_v57 = vor.u32 %v4408_v48, %v3171_v49  ;;  %v4406_v59 = vld [vmem:[#allocation4 + $0xb4] sm:$0xf0]  ;;  %v3281_v60 = vld [vmem:[#allocation4 + $0x1a8] sm:$0xf] }
  0x2c   :  { %502 = vmatpush.bf16.msra.mxu1 %v3210_v19  ;;  %v81_v52 = vld [vmem:[%s5074_s0] sm:$0xff]  ;;  %v3302_v61 = vor.u32 %v4440_v50, %v3299_v51  ;;  %v4404_v63 = vld [vmem:[#allocation4 + $0xac] sm:$0xf]  ;;  %v3154_v5 = vor.u32 %v4406_v59, %v3153_v58  ;;  %v3137_v8 = vld [vmem:[#allocation4 + $0x88] sm:$0xf]  ;;  %vm846_vm0 = vcmask 1040384  }
  0x2d   :  { %515 = vmatpush.bf16.msra.mxu2 %v3086_v20  ;;  %v157_v54 = vunpack.c.l.b16 %v81_v52  ;;  %v158_v55 = vunpack.c.h.b16 %v81_v52  ;;  %v4438_v62 = vld [vmem:[#allocation4 + $0x1b4] sm:$0xf0]  ;;  %v3155_v0 = vld [vmem:[#allocation4 + $0xb8] sm:$0xf0]  ;;  %v4436_v2 = vld [vmem:[#allocation4 + $0x1ac] sm:$0xf] }
  0x2e   :  { %528 = vmatpush.bf16.msra.mxu3 %v3214_v24  ;;  %v3283_v3 = vld [vmem:[#allocation4 + $0x1b8] sm:$0xf0]  ;;  %v3282_v6 = vor.u32 %v4438_v62, %v3281_v60  ;;  %v3158_v7 = vor.u32 %v4404_v63, %v3155_v0  ;;  %v4402_v9 = vld [vmem:[#allocation4 + $0x94] sm:$0xf0]  ;;  %v3265_v10 = vld [vmem:[#allocation4 + $0x188] sm:$0xf] }
  0x2f   :  { %490 = vmatpush.bf16.msra.mxu0 %v3066_v31  ;;  %v4989_v1 = vpack.c.b16 %v157_v54, %v157_v54  ;;  %v4991_v4 = vpack.c.b16 %v158_v55, %v158_v55  ;;  %v3286_v11 = vor.u32 %v4436_v2, %v3283_v3  ;;  %v4434_v12 = vld [vmem:[#allocation4 + $0x194] sm:$0xf0]  ;;  %v4400_v13 = vld [vmem:[#allocation4 + $0x8c] sm:$0xf]  ;;  %v3139_v14 = vld [vmem:[#allocation4 + $0x98] sm:$0xf0]  ;;  %v3138_v17 = vor.u32 %v4402_v9, %v3137_v8 }
  0x30   :  { %503 = vmatpush.bf16.msra.mxu1 %v3194_v35  ;;  %v4432_v15 = vld [vmem:[#allocation4 + $0x18c] sm:$0xf]  ;;  %v3267_v16 = vld [vmem:[#allocation4 + $0x198] sm:$0xf0]  ;;  %v3266_v18 = vor.u32 %v4434_v12, %v3265_v10  ;;  %v3142_v19 = vor.u32 %v4400_v13, %v3139_v14  ;;  %v3121_v20 = vld [vmem:[#allocation4 + $0x68] sm:$0xf] }
  0x31   :  { %516 = vmatpush.bf16.msra.mxu2 %v3070_v36  ;;  %v4398_v21 = vld [vmem:[#allocation4 + $0x74] sm:$0xf0]  ;;  %v3249_v22 = vld [vmem:[#allocation4 + $0x168] sm:$0xf]  ;;  %v3270_v23 = vor.u32 %v4432_v15, %v3267_v16  ;;  %v4396_v25 = vld [vmem:[#allocation4 + $0x6c] sm:$0xf] }
  0x32   :  { %529 = vmatpush.bf16.msra.mxu3 %v3198_v39  ;;  %491 = vmatmul.bf16.vlgmr.msra.gmra.mxu0 %v4989_v1  ;;  %v4430_v24 = vld [vmem:[#allocation4 + $0x174] sm:$0xf0]  ;;  %v3123_v26 = vld [vmem:[#allocation4 + $0x78] sm:$0xf0]  ;;  %v4428_v27 = vld [vmem:[#allocation4 + $0x16c] sm:$0xf]  ;;  %v3122_v29 = vor.u32 %v4398_v21, %v3121_v20 }
  0x33   :  { %535 = vmatpush.bf16.msrb.mxu0 %v3186_v40  ;;  %504 = vmatmul.bf16.vlgmr.msra.gmra.mxu1 %v4991_v4  ;;  %v3251_v28 = vld [vmem:[#allocation4 + $0x178] sm:$0xf0]  ;;  %v3250_v30 = vor.u32 %v4430_v24, %v3249_v22  ;;  %v3126_v31 = vor.u32 %v4396_v25, %v3123_v26  ;;  %v3105_v32 = vld [vmem:[#allocation4 + $0x48] sm:$0xf]  ;;  %v4394_v33 = vld [vmem:[#allocation4 + $0x54] sm:$0xf0] }
  0x34   :  { %548 = vmatpush.bf16.msrb.mxu1 %v3314_v41  ;;  %517 = vmatmul.bf16.vlgmr.msra.gmra.mxu2 %v4989_v1  ;;  %v3233_v34 = vld [vmem:[#allocation4 + $0x148] sm:$0xf]  ;;  %v3254_v35 = vor.u32 %v4428_v27, %v3251_v28  ;;  %v4426_v36 = vld [vmem:[#allocation4 + $0x154] sm:$0xf0]  ;;  %v4392_v37 = vld [vmem:[#allocation4 + $0x4c] sm:$0xf]  ;;  %v3106_v41 = vor.u32 %v4394_v33, %v3105_v32 }
  0x35   :  { %561 = vmatpush.bf16.msrb.mxu2 %v3190_v42  ;;  %530 = vmatmul.bf16.vlgmr.msra.gmra.mxu3 %v4991_v4  ;;  %v3107_v38 = vld [vmem:[#allocation4 + $0x58] sm:$0xf0]  ;;  %v4424_v39 = vld [vmem:[#allocation4 + $0x14c] sm:$0xf]  ;;  %v3234_v42 = vor.u32 %v4426_v36, %v3233_v34  ;;  %v3089_v44 = vld [vmem:[#allocation4 + $0x28] sm:$0xf] }
  0x36   :  { %574 = vmatpush.bf16.msrb.mxu3 %v3318_v46  ;;  %v3235_v40 = vld [vmem:[#allocation4 + $0x158] sm:$0xf0]  ;;  %v3110_v43 = vor.u32 %v4392_v37, %v3107_v38  ;;  %v4390_v45 = vld [vmem:[#allocation4 + $0x34] sm:$0xf0]  ;;  %v3217_v46 = vld [vmem:[#allocation4 + $0x128] sm:$0xf] }
  0x37   :  { %536 = vmatpush.bf16.msrb.mxu0 %v3170_v53  ;;  %v3238_v47 = vor.u32 %v4424_v39, %v3235_v40  ;;  %v4422_v48 = vld [vmem:[#allocation4 + $0x134] sm:$0xf0]  ;;  %v4388_v49 = vld [vmem:[#allocation4 + $0x2c] sm:$0xf]  ;;  %v3091_v50 = vld [vmem:[#allocation4 + $0x38] sm:$0xf0]  ;;  %v3090_v53 = vor.u32 %v4390_v45, %v3089_v44 }
  0x38   :  { %549 = vmatpush.bf16.msrb.mxu1 %v3298_v56  ;;  %v4420_v51 = vld [vmem:[#allocation4 + $0x12c] sm:$0xf]  ;;  %v3219_v52 = vld [vmem:[#allocation4 + $0x138] sm:$0xf0]  ;;  %v3073_v54 = vld [vmem:[#allocation4 + $0x8] sm:$0xf]  ;;  %v3218_v56 = vor.u32 %v4422_v48, %v3217_v46 }
  0x39   :  { %562 = vmatpush.bf16.msrb.mxu2 %v3174_v57  ;;  %v4386_v55 = vld [vmem:[#allocation4 + $0x14] sm:$0xf0]  ;;  %v3094_v57 = vor.u32 %v4388_v49, %v3091_v50  ;;  %v3201_v58 = vld [vmem:[#allocation4 + $0x108] sm:$0xf]  ;;  %v4384_v60 = vld [vmem:[#allocation4 + $0xc] sm:$0xf] }
  0x3a   :  { %575 = vmatpush.bf16.msrb.mxu3 %v3302_v61  ;;  %v4418_v59 = vld [vmem:[#allocation4 + $0x114] sm:$0xf0]  ;;  %v3222_v61 = vor.u32 %v4420_v51, %v3219_v52  ;;  %v3075_v62 = vld [vmem:[#allocation4 + $0x18] sm:$0xf0]  ;;  %v4416_v63 = vld [vmem:[#allocation4 + $0x10c] sm:$0xf] }
  0x3b   :  { %537 = vmatpush.bf16.msrb.mxu0 %v3154_v5  ;;  %v3203_v0 = vld [vmem:[#allocation4 + $0x118] sm:$0xf0]  ;;  %v3433_v2 = vld [vmem:[#allocation7 + $0xe0] sm:$0xf]  ;;  %v4477_v3 = vld [vmem:[#allocation7 + $0xec] sm:$0xf0]  ;;  %v3202_v10 = vor.u32 %v4418_v59, %v3201_v58 }
  0x3c   :  { %550 = vmatpush.bf16.msrb.mxu1 %v3282_v6  ;;  %v4475_v5 = vld [vmem:[#allocation7 + $0xe4] sm:$0xf]  ;;  %v3074_v6 = vor.u32 %v4386_v55, %v3073_v54  ;;  %v3441_v8 = vld [vmem:[#allocation7 + $0xe8] sm:$0xf]  ;;  %v4478_v9 = vld [vmem:[#allocation7 + $0xf4] sm:$0xf0]  ;;  %v3206_v14 = vor.u32 %v4416_v63, %v3203_v0  ;;  %v3434_v15 = vor.u32 %v4477_v3, %v3433_v2 }
  0x3d   :  { %563 = vmatpush.bf16.msrb.mxu2 %v3158_v7  ;;  %v3435_v7 = vld [vmem:[#allocation7 + $0xf0] sm:$0xf0]  ;;  %v4476_v12 = vld [vmem:[#allocation7 + $0xec] sm:$0xf]  ;;  %v3443_v13 = vld [vmem:[#allocation7 + $0xf8] sm:$0xf0] }
  0x3e   :  { %576 = vmatpush.bf16.msrb.mxu3 %v3286_v11  ;;  %v3078_v11 = vor.u32 %v4384_v60, %v3075_v62  ;;  %v3438_v16 = vor.u32 %v4475_v5, %v3435_v7  ;;  %v4471_v20 = vld [vmem:[#allocation7 + $0xc4] sm:$0xf]  ;;  %v3446_v21 = vor.u32 %v4476_v12, %v3443_v13  ;;  %v3419_v22 = vld [vmem:[#allocation7 + $0xd0] sm:$0xf0]  ;;  %v4474_v24 = vld [vmem:[#allocation7 + $0xd4] sm:$0xf0] }
  0x3f   :  { %538 = vmatpush.bf16.msrb.mxu0 %v3138_v17  ;;  %v3442_v17 = vor.u32 %v4478_v9, %v3441_v8  ;;  %v4472_v25 = vld [vmem:[#allocation7 + $0xcc] sm:$0xf]  ;;  %v3427_v26 = vld [vmem:[#allocation7 + $0xd8] sm:$0xf0]  ;;  %v3401_v28 = vld [vmem:[#allocation7 + $0xa0] sm:$0xf] }
  0x40   :  { %551 = vmatpush.bf16.msrb.mxu1 %v3266_v18  ;;  %v3417_v18 = vld [vmem:[#allocation7 + $0xc0] sm:$0xf]  ;;  %v4467_v32 = vld [vmem:[#allocation7 + $0xa4] sm:$0xf]  ;;  %v3403_v33 = vld [vmem:[#allocation7 + $0xb0] sm:$0xf0]  ;;  %v3430_v34 = vor.u32 %v4472_v25, %v3427_v26 }
  0x41   :  { %564 = vmatpush.bf16.msrb.mxu2 %v3142_v19  ;;  %v4473_v19 = vld [vmem:[#allocation7 + $0xcc] sm:$0xf0]  ;;  %v4470_v36 = vld [vmem:[#allocation7 + $0xb4] sm:$0xf0]  ;;  %v4468_v37 = vld [vmem:[#allocation7 + $0xac] sm:$0xf]  ;;  %v3406_v40 = vor.u32 %v4467_v32, %v3403_v33 }
  0x42   :  { %577 = vmatpush.bf16.msrb.mxu3 %v3270_v23  ;;  %v3425_v23 = vld [vmem:[#allocation7 + $0xc8] sm:$0xf]  ;;  %v3418_v27 = vor.u32 %v4473_v19, %v3417_v18  ;;  %v3411_v38 = vld [vmem:[#allocation7 + $0xb8] sm:$0xf0]  ;;  %v4463_v44 = vld [vmem:[#allocation7 + $0x84] sm:$0xf] }
  0x43   :  { %539 = vmatpush.bf16.msrb.mxu0 %v3122_v29  ;;  %v3422_v29 = vor.u32 %v4471_v20, %v3419_v22  ;;  %v3414_v45 = vor.u32 %v4468_v37, %v3411_v38  ;;  %v3387_v46 = vld [vmem:[#allocation7 + $0x90] sm:$0xf0]  ;;  %v4466_v48 = vld [vmem:[#allocation7 + $0x94] sm:$0xf0]  ;;  %v4464_v49 = vld [vmem:[#allocation7 + $0x8c] sm:$0xf] }
  0x44   :  { %552 = vmatpush.bf16.msrb.mxu1 %v3250_v30  ;;  %v3426_v30 = vor.u32 %v4474_v24, %v3425_v23  ;;  %v3390_v51 = vor.u32 %v4463_v44, %v3387_v46  ;;  %v3369_v52 = vld [vmem:[#allocation7 + $0x60] sm:$0xf]  ;;  %v4459_v54 = vld [vmem:[#allocation7 + $0x64] sm:$0xf]  ;;  %v4462_v58 = vld [vmem:[#allocation7 + $0x74] sm:$0xf0] }
  0x45   :  { %565 = vmatpush.bf16.msrb.mxu2 %v3126_v31  ;;  %v4469_v31 = vld [vmem:[#allocation7 + $0xac] sm:$0xf0]  ;;  %v4460_v59 = vld [vmem:[#allocation7 + $0x6c] sm:$0xf]  ;;  %v3379_v60 = vld [vmem:[#allocation7 + $0x78] sm:$0xf0] }
  0x46   :  { %578 = vmatpush.bf16.msrb.mxu3 %v3254_v35  ;;  %v3409_v35 = vld [vmem:[#allocation7 + $0xa8] sm:$0xf]  ;;  %v3402_v39 = vor.u32 %v4469_v31, %v3401_v28  ;;  %v3353_v0 = vld [vmem:[#allocation7 + $0x40] sm:$0xf]  ;;  %v4457_v2 = vld [vmem:[#allocation7 + $0x4c] sm:$0xf0]  ;;  %v3382_v5 = vor.u32 %v4460_v59, %v3379_v60 }
  0x47   :  { %540 = vmatpush.bf16.msrb.mxu0 %v3106_v41  ;;  %v3410_v41 = vor.u32 %v4470_v36, %v3409_v35  ;;  %v4455_v3 = vld [vmem:[#allocation7 + $0x44] sm:$0xf]  ;;  %v3361_v7 = vld [vmem:[#allocation7 + $0x48] sm:$0xf]  ;;  %v4458_v8 = vld [vmem:[#allocation7 + $0x54] sm:$0xf0] }
  0x48   :  { %553 = vmatpush.bf16.msrb.mxu1 %v3234_v42  ;;  %v3385_v42 = vld [vmem:[#allocation7 + $0x80] sm:$0xf]  ;;  %v4456_v9 = vld [vmem:[#allocation7 + $0x4c] sm:$0xf]  ;;  %v3362_v13 = vor.u32 %v4458_v8, %v3361_v7  ;;  %v3339_v18 = vld [vmem:[#allocation7 + $0x30] sm:$0xf0] }
  0x49   :  { %566 = vmatpush.bf16.msrb.mxu2 %v3110_v43  ;;  %v4465_v43 = vld [vmem:[#allocation7 + $0x8c] sm:$0xf0]  ;;  %v3345_v19 = vld [vmem:[#allocation7 + $0x28] sm:$0xf]  ;;  %v4454_v20 = vld [vmem:[#allocation7 + $0x34] sm:$0xf0] }
  0x4a   :  { %579 = vmatpush.bf16.msrb.mxu3 %v3238_v47  ;;  %v3393_v47 = vld [vmem:[#allocation7 + $0x88] sm:$0xf]  ;;  %v3386_v50 = vor.u32 %v4465_v43, %v3385_v42  ;;  %v3347_v22 = vld [vmem:[#allocation7 + $0x38] sm:$0xf0]  ;;  %v3346_v25 = vor.u32 %v4454_v20, %v3345_v19  ;;  %v3321_v26 = vld [vmem:[#allocation7] sm:$0xf] }
  0x4b   :  { %541 = vmatpush.bf16.msrb.mxu0 %v3090_v53  ;;  %v4461_v53 = vld [vmem:[#allocation7 + $0x6c] sm:$0xf0]  ;;  %v4447_v28 = vld [vmem:[#allocation7 + $0x4] sm:$0xf]  ;;  %v3329_v31 = vld [vmem:[#allocation7 + $0x8] sm:$0xf] }
  0x4c   :  { %554 = vmatpush.bf16.msrb.mxu1 %v3218_v56  ;;  %v3371_v56 = vld [vmem:[#allocation7 + $0x70] sm:$0xf0]  ;;  %v4450_v32 = vld [vmem:[#allocation7 + $0x14] sm:$0xf0]  ;;  %v4448_v33 = vld [vmem:[#allocation7 + $0xc] sm:$0xf] }
  0x4d   :  { %567 = vmatpush.bf16.msrb.mxu2 %v3094_v57  ;;  %v3377_v57 = vld [vmem:[#allocation7 + $0x68] sm:$0xf]  ;;  %v3374_v62 = vor.u32 %v4459_v54, %v3371_v56  ;;  %v591_v36 = vld [vmem:[%s5075_s1] sm:$0x1]  ;;  %v3330_v38 = vor.u32 %v4450_v32, %v3329_v31  ;;  %v4509_v7 = vld [vmem:[#allocation7 + $0xec] sm:$0xf0] }
  0x4e   :  { %580 = vmatpush.bf16.msrb.mxu3 %v3222_v61  ;;  %v3370_v61 = vor.u32 %v4461_v53, %v3369_v52  ;;  %v3378_v63 = vor.u32 %v4462_v58, %v3377_v57  ;;  %v4507_v8 = vld [vmem:[#allocation7 + $0xe4] sm:$0xf]  ;;  %v4505_v19 = vld [vmem:[#allocation7 + $0xcc] sm:$0xf0]  ;;  %vm848_vm1 = vcmask 1042434   ;;  %vm850_vm2 = vcmask 1041408  }
  0x4f   :  { %542 = vmatpush.bf16.msrb.mxu0 %v3074_v6  ;;  %v3355_v6 = vld [vmem:[#allocation7 + $0x50] sm:$0xf0]  ;;  %v4503_v20 = vld [vmem:[#allocation7 + $0xc4] sm:$0xf]  ;;  %s3034_s17 = sshll.u32 %s5083_s9, 4  ;;  %s4921_s18 = smov [#allocation11]   ;;  %s3035_s17 = int_to_ptr.hbm [resolvable:$true] %s3034_s17 }
  0x50   :  { %555 = vmatpush.bf16.msrb.mxu1 %v3202_v10  ;;  %v3363_v10 = vld [vmem:[#allocation7 + $0x58] sm:$0xf0]  ;;  %v3358_v12 = vor.u32 %v4455_v3, %v3355_v6  ;;  %v3562_v6 = vld [vmem:[#allocation7 + $0xe0] sm:$0xf]  ;;  %s3043_s19 = sshll.u32 %s4921_s18, 4  ;;  %s3045_s22 = sshll.u32 %s5084_s10, 4  ;;  %s3044_s19 = int_to_ptr.vmem [resolvable:$true] %s3043_s19  ;;  %s3046_s22 = int_to_ptr.hbm [resolvable:$true] %s3045_s22 }
  0x51   :  { %568 = vmatpush.bf16.msrb.mxu2 %v3078_v11  ;;  %v3354_v11 = vor.u32 %v4457_v2, %v3353_v0 }
  0x52   :  { %581 = vmatpush.bf16.msrb.mxu3 %v3206_v14  ;;  %543 = vmatmul.bf16.vlgmr.msrb.gmra.mxu0 %v4989_v1  ;;  %v3337_v14 = vld [vmem:[#allocation7 + $0x20] sm:$0xf] }
  0x53   :  { %787 = vmatpush.bf16.msra.mxu0 %v3434_v15  ;;  %556 = vmatmul.bf16.vlgmr.msrb.gmra.mxu1 %v4991_v4  ;;  %v4453_v15 = vld [vmem:[#allocation7 + $0x2c] sm:$0xf0] }
  0x54   :  { %800 = vmatpush.bf16.msra.mxu1 %v3438_v16  ;;  %569 = vmatmul.bf16.vlgmr.msrb.gmra.mxu2 %v4989_v1  ;;  %v3395_v1 = vld [vmem:[#allocation7 + $0x98] sm:$0xf0]  ;;  %v4451_v16 = vld [vmem:[#allocation7 + $0x24] sm:$0xf]  ;;  %v3338_v23 = vor.u32 %v4453_v15, %v3337_v14  ;;  %v4508_v15 = vld [vmem:[#allocation7 + $0xec] sm:$0xf] }
  0x55   :  { %813 = vmatpush.bf16.msra.mxu2 %v3442_v17  ;;  %582 = vmatmul.bf16.vlgmr.msrb.gmra.mxu3 %v4991_v4  ;;  %v3394_v4 = vor.u32 %v4466_v48, %v3393_v47  ;;  %v3398_v55 = vor.u32 %v4464_v49, %v3395_v1  ;;  %v3366_v17 = vor.u32 %v4456_v9, %v3363_v10  ;;  %v3564_v10 = vld [vmem:[#allocation7 + $0xf0] sm:$0xf0] }
  0x56   :  { %826 = vmatpush.bf16.msra.mxu3 %v3446_v21  ;;  %v4452_v21 = vld [vmem:[#allocation7 + $0x2c] sm:$0xf]  ;;  %v3342_v24 = vor.u32 %v4451_v16, %v3339_v18  ;;  %v3563_v9 = vor.u32 %v4509_v7, %v3562_v6  ;;  %v3572_v16 = vld [vmem:[#allocation7 + $0xf8] sm:$0xf0] }
  0x57   :  { %788 = vmatpush.bf16.msra.mxu0 %v3418_v27  ;;  %v4449_v27 = vld [vmem:[#allocation7 + $0xc] sm:$0xf0]  ;;  %v3575_v18 = vor.u32 %v4508_v15, %v3572_v16 }
  0x58   :  { %801 = vmatpush.bf16.msra.mxu1 %v3422_v29  ;;  %v3350_v29 = vor.u32 %v4452_v21, %v3347_v22  ;;  %v3322_v35 = vor.u32 %v4449_v27, %v3321_v26  ;;  %v3548_v21 = vld [vmem:[#allocation7 + $0xd0] sm:$0xf0]  ;;  %v4504_v26 = vld [vmem:[#allocation7 + $0xcc] sm:$0xf] }
  0x59   :  { %814 = vmatpush.bf16.msra.mxu2 %v3426_v30  ;;  %v3323_v30 = vld [vmem:[#allocation7 + $0x10] sm:$0xf0] }
  0x5a   :  { %827 = vmatpush.bf16.msra.mxu3 %v3430_v34  ;;  %v3331_v34 = vld [vmem:[#allocation7 + $0x18] sm:$0xf0]  ;;  %v3326_v37 = vor.u32 %v4447_v28, %v3323_v30  ;;  %v4501_v30 = vld [vmem:[#allocation7 + $0xac] sm:$0xf0] }
  0x5b   :  { %789 = vmatpush.bf16.msra.mxu0 %v3402_v39  ;;  %v3334_v39 = vor.u32 %v4448_v33, %v3331_v34  ;;  %v3556_v28 = vld [vmem:[#allocation7 + $0xd8] sm:$0xf0]  ;;  %v4499_v33 = vld [vmem:[#allocation7 + $0xa4] sm:$0xf]  ;;  %v3532_v34 = vld [vmem:[#allocation7 + $0xb0] sm:$0xf0] }
  0x5c   :  { %802 = vmatpush.bf16.msra.mxu1 %v3406_v40  ;;  %v594_v40 = vpack.c.bf16 %v591_v36, %v591_v36  ;;  %v3559_v32 = vor.u32 %v4504_v26, %v3556_v28  ;;  %v4485_v28 = vld [vmem:[#allocation7 + $0x2c] sm:$0xf0] }
  0x5d   :  { %815 = vmatpush.bf16.msra.mxu2 %v3410_v41  ;;  %v146_v41 = vld [vmem:[%s5079_s5] sm:$0xf] }
  0x5e   :  { %828 = vmatpush.bf16.msra.mxu3 %v3414_v45  ;;  %v148_v42 = vperm.slane %v146_v41, 0  ;;  %v149_v45 = vperm.slane %v146_v41, 1  ;;  %v150_v54 = vperm.slane %v146_v41, 2  ;;  %v151_v58 = vperm.slane %v146_v41, 3 }
  0x5f   :  { %790 = vmatpush.bf16.msra.mxu0 %v3386_v50  ;;  %v3535_v41 = vor.u32 %v4499_v33, %v3532_v34  ;;  %v3474_v34 = vld [vmem:[#allocation7 + $0x28] sm:$0xf] }
  0x60   :  { %803 = vmatpush.bf16.msra.mxu1 %v3390_v51 }
  0x61   :  { %816 = vmatpush.bf16.msra.mxu2 %v3394_v4 }
  0x62   :  { %829 = vmatpush.bf16.msra.mxu3 %v3398_v55 }
  0x63   :  { %791 = vmatpush.bf16.msra.mxu0 %v3370_v61 }
  0x64   :  { %804 = vmatpush.bf16.msra.mxu1 %v3374_v62 }
  0x65   :  { %817 = vmatpush.bf16.msra.mxu2 %v3378_v63 }
  0x66   :  { %830 = vmatpush.bf16.msra.mxu3 %v3382_v5 }
  0x67   :  { %792 = vmatpush.bf16.msra.mxu0 %v3354_v11  ;;  %v3570_v11 = vld [vmem:[#allocation7 + $0xe8] sm:$0xf] }
  0x68   :  { %805 = vmatpush.bf16.msra.mxu1 %v3358_v12  ;;  %v4510_v12 = vld [vmem:[#allocation7 + $0xf4] sm:$0xf0] }
  0x69   :  { %818 = vmatpush.bf16.msra.mxu2 %v3362_v13  ;;  %v3567_v13 = vor.u32 %v4507_v8, %v3564_v10  ;;  %v3571_v14 = vor.u32 %v4510_v12, %v3570_v11  ;;  %v3482_v12 = vld [vmem:[#allocation7 + $0x40] sm:$0xf] }
  0x6a   :  { %831 = vmatpush.bf16.msra.mxu3 %v3366_v17  ;;  %v3546_v17 = vld [vmem:[#allocation7 + $0xc0] sm:$0xf] }
  0x6b   :  { %793 = vmatpush.bf16.msra.mxu0 %v3338_v23  ;;  %v3547_v22 = vor.u32 %v4505_v19, %v3546_v17  ;;  %v3551_v23 = vor.u32 %v4503_v20, %v3548_v21  ;;  %v3484_v17 = vld [vmem:[#allocation7 + $0x50] sm:$0xf0]  ;;  %v4490_v19 = vld [vmem:[#allocation7 + $0x54] sm:$0xf0]  ;;  %v4488_v21 = vld [vmem:[#allocation7 + $0x4c] sm:$0xf] }
  0x6c   :  { %806 = vmatpush.bf16.msra.mxu1 %v3342_v24  ;;  %v3554_v24 = vld [vmem:[#allocation7 + $0xc8] sm:$0xf] }
  0x6d   :  { %819 = vmatpush.bf16.msra.mxu2 %v3346_v25  ;;  %v4506_v25 = vld [vmem:[#allocation7 + $0xd4] sm:$0xf0] }
  0x6e   :  { %832 = vmatpush.bf16.msra.mxu3 %v3350_v29  ;;  %v3555_v27 = vor.u32 %v4506_v25, %v3554_v24  ;;  %v3530_v29 = vld [vmem:[#allocation7 + $0xa0] sm:$0xf] }
  0x6f   :  { %794 = vmatpush.bf16.msra.mxu0 %v3322_v35  ;;  %v3538_v35 = vld [vmem:[#allocation7 + $0xa8] sm:$0xf]  ;;  %v3466_v25 = vld [vmem:[#allocation7 + $0x20] sm:$0xf] }
  0x70   :  { %807 = vmatpush.bf16.msra.mxu1 %v3326_v37  ;;  %v3531_v37 = vor.u32 %v4501_v30, %v3530_v29  ;;  %v4483_v29 = vld [vmem:[#allocation7 + $0x24] sm:$0xf]  ;;  %v3468_v30 = vld [vmem:[#allocation7 + $0x30] sm:$0xf0] }
  0x71   :  { %820 = vmatpush.bf16.msra.mxu2 %v3330_v38  ;;  %v4502_v38 = vld [vmem:[#allocation7 + $0xb4] sm:$0xf0] }
  0x72   :  { %833 = vmatpush.bf16.msra.mxu3 %v3334_v39  ;;  %795 = vmatmul.bf16.vlgmr.msra.gmra.mxu0 %v594_v40  ;;  %v4500_v39 = vld [vmem:[#allocation7 + $0xac] sm:$0xf] }
  0x73   :  { %808 = vmatmul.bf16.vlgmr.msra.gmra.mxu1 %v594_v40  ;;  %1083 = vmatpush.bf16.msrb.mxu0 %v3563_v9 }
  0x74   :  { %821 = vmatmul.bf16.vlgmr.msra.gmra.mxu2 %v594_v40  ;;  %1096 = vmatpush.bf16.msrb.mxu1 %v3567_v13  ;;  %v4489_v13 = vld [vmem:[#allocation7 + $0x4c] sm:$0xf0] }
  0x75   :  { %834 = vmatmul.bf16.vlgmr.msra.gmra.mxu3 %v594_v40  ;;  %1109 = vmatpush.bf16.msrb.mxu2 %v3571_v14  ;;  %v3540_v40 = vld [vmem:[#allocation7 + $0xb8] sm:$0xf0]  ;;  %v4487_v14 = vld [vmem:[#allocation7 + $0x44] sm:$0xf]  ;;  %v3483_v24 = vor.u32 %v4489_v13, %v3482_v12 }
  0x76   :  { %1122 = vmatpush.bf16.msrb.mxu3 %v3575_v18  ;;  %v3490_v18 = vld [vmem:[#allocation7 + $0x48] sm:$0xf]  ;;  %v3487_v26 = vor.u32 %v4487_v14, %v3484_v17  ;;  %v3691_v14 = vld [vmem:[#allocation7 + $0xe0] sm:$0xf] }
  0x77   :  { %1084 = vmatpush.bf16.msrb.mxu0 %v3547_v22  ;;  %v3492_v22 = vld [vmem:[#allocation7 + $0x58] sm:$0xf0] }
  0x78   :  { %1097 = vmatpush.bf16.msrb.mxu1 %v3551_v23  ;;  %v3495_v33 = vor.u32 %v4488_v21, %v3492_v22 }
  0x79   :  { %1110 = vmatpush.bf16.msrb.mxu2 %v3555_v27  ;;  %v3491_v27 = vor.u32 %v4490_v19, %v3490_v18  ;;  %v3693_v18 = vld [vmem:[#allocation7 + $0xf0] sm:$0xf0]  ;;  %v3699_v19 = vld [vmem:[#allocation7 + $0xe8] sm:$0xf] }
  0x7a   :  { %1123 = vmatpush.bf16.msrb.mxu3 %v3559_v32 }
  0x7b   :  { %1085 = vmatpush.bf16.msrb.mxu0 %v3531_v37  ;;  %v4484_v37 = vld [vmem:[#allocation7 + $0x2c] sm:$0xf] }
  0x7c   :  { %1098 = vmatpush.bf16.msrb.mxu1 %v3535_v41 }
  0xaf   :  { %v492_v43 = vpop.f32.mrf.mxu0 }
  0xb0   :  { %v493_v44 = vadd.f32 %v492_v43, %v148_v42  ;;  %v505_v46 = vpop.f32.mrf.mxu1  ;;  %v3539_v42 = vor.u32 %v4502_v38, %v3538_v35  ;;  %v3514_v43 = vld [vmem:[#allocation7 + $0x80] sm:$0xf]  ;;  %v4486_v35 = vld [vmem:[#allocation7 + $0x34] sm:$0xf0]  ;;  %v3476_v38 = vld [vmem:[#allocation7 + $0x38] sm:$0xf0] }
  0xb1   :  { %v3475_v41 = vor.u32 %v4486_v35, %v3474_v34  ;;  %v4536_v34 = vld [vmem:[#allocation7 + $0xcc] sm:$0xf] }
  0xb2   :  { %v506_v47 = vadd.f32 %v505_v46, %v493_v44  ;;  %v4497_v44 = vld [vmem:[#allocation7 + $0x8c] sm:$0xf0]  ;;  %v4495_v46 = vld [vmem:[#allocation7 + $0x84] sm:$0xf]  ;;  %1111 = vmatpush.bf16.msrb.mxu2 %v3539_v42  ;;  %v3450_v42 = vld [vmem:[#allocation7] sm:$0xf] }
  0xb4   :  { %587 = vst [vmem:[#allocation2] sm:$0xff] %v506_v47  ;;  %v3516_v47 = vld [vmem:[#allocation7 + $0x90] sm:$0xf0] }
  0xb7   :  { %v518_v48 = vpop.f32.mrf.mxu2  ;;  %v494_v51 = vpop.f32.mrf.mxu0 }
  0xb8   :  { %v519_v49 = vadd.f32 %v518_v48, %v149_v45  ;;  %v531_v1 = vpop.f32.mrf.mxu3  ;;  %v507_v4 = vpop.f32.mrf.mxu1  ;;  %v3543_v45 = vor.u32 %v4500_v39, %v3540_v40  ;;  %v3522_v48 = vld [vmem:[#allocation7 + $0x88] sm:$0xf]  ;;  %v3467_v39 = vor.u32 %v4485_v28, %v3466_v25  ;;  %v3471_v40 = vor.u32 %v4483_v29, %v3468_v30  ;;  %v3675_v25 = vld [vmem:[#allocation7 + $0xc0] sm:$0xf]  ;;  %v4535_v28 = vld [vmem:[#allocation7 + $0xc4] sm:$0xf] }
  0xb9   :  { %v3515_v4 = vor.u32 %v4497_v44, %v3514_v43  ;;  %v4481_v43 = vld [vmem:[#allocation7 + $0xc] sm:$0xf0]  ;;  %v4479_v44 = vld [vmem:[#allocation7 + $0x4] sm:$0xf]  ;;  %v3677_v29 = vld [vmem:[#allocation7 + $0xd0] sm:$0xf0] }
  0xba   :  { %v532_v50 = vadd.f32 %v531_v1, %v519_v49  ;;  %v4498_v49 = vld [vmem:[#allocation7 + $0x94] sm:$0xf0]  ;;  %v4496_v1 = vld [vmem:[#allocation7 + $0x8c] sm:$0xf]  ;;  %1124 = vmatpush.bf16.msrb.mxu3 %v3543_v45  ;;  %v3479_v45 = vor.u32 %v4484_v37, %v3476_v38  ;;  %v3659_v37 = vld [vmem:[#allocation7 + $0xa0] sm:$0xf] }
  0xbb   :  { %1086 = vmatpush.bf16.msrb.mxu0 %v3515_v4  ;;  %v4533_v38 = vld [vmem:[#allocation7 + $0xac] sm:$0xf0] }
  0xbc   :  { %588 = vst [vmem:[#allocation2 + $0x8] sm:$0xff] %v532_v50  ;;  %v3524_v50 = vld [vmem:[#allocation7 + $0x98] sm:$0xf0] }
  0xbf   :  { %v520_v52 = vpop.f32.mrf.mxu2 }
  0xc0   :  { %v533_v53 = vpop.f32.mrf.mxu3  ;;  %v3519_v52 = vor.u32 %v4495_v46, %v3516_v47  ;;  %v3452_v46 = vld [vmem:[#allocation7 + $0x10] sm:$0xf0]  ;;  %v3458_v47 = vld [vmem:[#allocation7 + $0x8] sm:$0xf] }
  0xc1   :  { %v3523_v53 = vor.u32 %v4498_v49, %v3522_v48  ;;  %v4482_v48 = vld [vmem:[#allocation7 + $0x14] sm:$0xf0]  ;;  %v4480_v49 = vld [vmem:[#allocation7 + $0xc] sm:$0xf] }
  0xc2   :  { %1099 = vmatpush.bf16.msrb.mxu1 %v3519_v52  ;;  %v3459_v4 = vor.u32 %v4482_v48, %v3458_v47  ;;  %v4532_v47 = vld [vmem:[#allocation7 + $0xac] sm:$0xf]  ;;  %v3669_v48 = vld [vmem:[#allocation7 + $0xb8] sm:$0xf0] }
  0xc3   :  { %1112 = vmatpush.bf16.msrb.mxu2 %v3523_v53 }
  0xcf   :  { %v544_v55 = vpop.f32.mrf.mxu0 }
  0xd0   :  { %v545_v56 = vadd.f32 %v544_v55, %v150_v54  ;;  %v557_v57 = vpop.f32.mrf.mxu1  ;;  %v3498_v54 = vld [vmem:[#allocation7 + $0x60] sm:$0xf]  ;;  %v4493_v55 = vld [vmem:[#allocation7 + $0x6c] sm:$0xf0] }
  0xd1   :  { %v3499_v8 = vor.u32 %v4493_v55, %v3498_v54 }
  0xd2   :  { %v558_v59 = vadd.f32 %v557_v57, %v545_v56  ;;  %v4491_v56 = vld [vmem:[#allocation7 + $0x64] sm:$0xf] }
  0xd3   :  { %1087 = vmatpush.bf16.msrb.mxu0 %v3499_v8 }
  0xd4   :  { %589 = vst [vmem:[#allocation2 + $0x10] sm:$0xff] %v558_v59  ;;  %v3500_v59 = vld [vmem:[#allocation7 + $0x70] sm:$0xf0] }
  0xd5   :  { %v3503_v10 = vor.u32 %v4491_v56, %v3500_v59 }
  0xd7   :  { %v570_v60 = vpop.f32.mrf.mxu2  ;;  %v546_v0 = vpop.f32.mrf.mxu0  ;;  %1100 = vmatpush.bf16.msrb.mxu1 %v3503_v10  ;;  %1088 = vmatpush.bf16.msrb.mxu0 %v3483_v24  ;;  %v3701_v24 = vld [vmem:[#allocation7 + $0xf8] sm:$0xf0] }
  0xd8   :  { %v571_v61 = vadd.f32 %v570_v60, %v151_v58  ;;  %v583_v62 = vpop.f32.mrf.mxu3  ;;  %v559_v2 = vpop.f32.mrf.mxu1  ;;  %v3527_v58 = vor.u32 %v4496_v1, %v3524_v50  ;;  %v3506_v60 = vld [vmem:[#allocation7 + $0x68] sm:$0xf]  ;;  %v3460_v1 = vld [vmem:[#allocation7 + $0x18] sm:$0xf0]  ;;  %v3451_v50 = vor.u32 %v4481_v43, %v3450_v42 }
  0xd9   :  { %v4492_v2 = vld [vmem:[#allocation7 + $0x6c] sm:$0xf]  ;;  %v3463_v53 = vor.u32 %v4480_v49, %v3460_v1  ;;  %v3667_v42 = vld [vmem:[#allocation7 + $0xa8] sm:$0xf] }
  0xda   :  { %v584_v63 = vadd.f32 %v583_v62, %v571_v61  ;;  %v4494_v61 = vld [vmem:[#allocation7 + $0x74] sm:$0xf0]  ;;  %1125 = vmatpush.bf16.msrb.mxu3 %v3527_v58 }
  0xdb   :  { %v3507_v11 = vor.u32 %v4494_v61, %v3506_v60  ;;  %1101 = vmatpush.bf16.msrb.mxu1 %v3487_v26  ;;  %1089 = vmatpush.bf16.msrb.mxu0 %v3467_v39 }
  0xdc   :  { %590 = vst [vmem:[#allocation2 + $0x18] sm:$0xff] %v584_v63 }
  0xdd   :  { %1113 = vmatpush.bf16.msrb.mxu2 %v3507_v11 }
  0xdf   :  { %v572_v3 = vpop.f32.mrf.mxu2  ;;  %1102 = vmatpush.bf16.msrb.mxu1 %v3471_v40  ;;  %1090 = vmatpush.bf16.msrb.mxu0 %v3451_v50  ;;  %v4531_v40 = vld [vmem:[#allocation7 + $0xa4] sm:$0xf]  ;;  %v3643_v50 = vld [vmem:[#allocation7 + $0x80] sm:$0xf] }
  0xe0   :  { %v585_v5 = vpop.f32.mrf.mxu3  ;;  %v3508_v3 = vld [vmem:[#allocation7 + $0x78] sm:$0xf0] }
  0xe1   :  { %v3511_v16 = vor.u32 %v4492_v2, %v3508_v3  ;;  %1114 = vmatpush.bf16.msrb.mxu2 %v3491_v27  ;;  %v592_v2 = vld [vmem:[%s5076_s2] sm:$0x1]  ;;  %v4537_v27 = vld [vmem:[#allocation7 + $0xcc] sm:$0xf0]  ;;  %s4920_s2 = smov [#allocation10]  }
  0xe2   :  { %v3676_v30 = vor.u32 %v4537_v27, %v3675_v25  ;;  %v3619_v27 = vld [vmem:[#allocation7 + $0x48] sm:$0xf]  ;;  %s3032_s14 = sshll.u32 %s4920_s2, 4  ;;  %s3033_s14 = int_to_ptr.vmem [resolvable:$true] %s3032_s14 }
  0xe3   :  { %v593_v9 = vld [vmem:[#allocation2] ss:$8 sm:$0xf]  ;;  %1126 = vmatpush.bf16.msrb.mxu3 %v3511_v16  ;;  %v4539_v16 = vld [vmem:[#allocation7 + $0xe4] sm:$0xf] }
  0xe4   :  { %v3696_v21 = vor.u32 %v4539_v16, %v3693_v18 }
  0xe5   :  { %1115 = vmatpush.bf16.msrb.mxu2 %v3475_v41  ;;  %v3661_v41 = vld [vmem:[#allocation7 + $0xb0] sm:$0xf0] }
  0xe6   :  { %v3664_v49 = vor.u32 %v4531_v40, %v3661_v41 }
  0xe7   :  { %1127 = vmatpush.bf16.msrb.mxu3 %v3495_v33  ;;  %v4538_v33 = vld [vmem:[#allocation7 + $0xd4] sm:$0xf0] }
  0xe9   :  { %1116 = vmatpush.bf16.msrb.mxu2 %v3459_v4  ;;  %v3672_v4 = vor.u32 %v4532_v47, %v3669_v48  ;;  %v3605_v47 = vld [vmem:[#allocation7 + $0x38] sm:$0xf0] }
  0xeb   :  { %1128 = vmatpush.bf16.msrb.mxu3 %v3479_v45  ;;  %v3660_v45 = vor.u32 %v4533_v38, %v3659_v37  ;;  %v4517_v37 = vld [vmem:[#allocation7 + $0x2c] sm:$0xf0]  ;;  %v4515_v38 = vld [vmem:[#allocation7 + $0x24] sm:$0xf] }
  0xef   :  { %v796_v31 = vpop.f32.mrf.mxu0  ;;  %1129 = vmatpush.bf16.msrb.mxu3 %v3463_v53  ;;  %v3645_v53 = vld [vmem:[#allocation7 + $0x90] sm:$0xf0] }
  0xf0   :  { %v809_v36 = vpop.f32.mrf.mxu1 }
  0xf1   :  { %v843_v51 = vrot.slane %v809_v36, 7 }
  0xf3   :  { %v847_v5 = vsel %vm846_vm0, %v796_v31, %v843_v51  ;;  %v3455_v51 = vor.u32 %v4479_v44, %v3452_v46  ;;  %v4534_v46 = vld [vmem:[#allocation7 + $0xb4] sm:$0xf0] }
  0xf4   :  { %v3668_v1 = vor.u32 %v4534_v46, %v3667_v42  ;;  %v3603_v42 = vld [vmem:[#allocation7 + $0x28] sm:$0xf]  ;;  %v4516_v46 = vld [vmem:[#allocation7 + $0x2c] sm:$0xf] }
  0xf5   :  { %1103 = vmatpush.bf16.msrb.mxu1 %v3455_v51  ;;  %v4529_v51 = vld [vmem:[#allocation7 + $0x8c] sm:$0xf0] }
  0xf7   :  { %v822_v57 = vpop.f32.mrf.mxu2  ;;  %v798_v0 = vpop.f32.mrf.mxu0 }
  0xf8   :  { %v844_v62 = vrot.slane %v822_v57, 6  ;;  %v835_v63 = vpop.f32.mrf.mxu3  ;;  %v811_v7 = vpop.f32.mrf.mxu1 }
  0xf9   :  { %v845_v6 = vrot.slane %v835_v63, 5  ;;  %1389 = vmatpush.bf16.msra.mxu1 %v3696_v21  ;;  %v4521_v21 = vld [vmem:[#allocation7 + $0x4c] sm:$0xf0] }
  0xfb   :  { %v849_v15 = vsel %vm848_vm1, %v844_v62, %v845_v6 }
  0xfc   :  { %v851_v20 = vsel %vm850_vm2, %v847_v5, %v849_v15  ;;  %v4541_v15 = vld [vmem:[#allocation7 + $0xec] sm:$0xf0] }
  0xfd   :  { %v853_v23 = vadd.f32 %v851_v20, %v593_v9  ;;  %v3692_v17 = vor.u32 %v4541_v15, %v3691_v14  ;;  %v4542_v20 = vld [vmem:[#allocation7 + $0xf4] sm:$0xf0] }
  0xfe   :  { %v3700_v22 = vor.u32 %v4542_v20, %v3699_v19  ;;  %v3611_v20 = vld [vmem:[#allocation7 + $0x40] sm:$0xf] }
  0xff   :  { %v3447_v31 = vmul.f32 -1.442695, %v853_v23  ;;  %v824_v32 = vpop.f32.mrf.mxu2  ;;  %v874_v57 = vrot.slane %v853_v23, 3  ;;  %v4540_v23 = vld [vmem:[#allocation7 + $0xec] sm:$0xf]  ;;  %1376 = vmatpush.bf16.msra.mxu0 %v3692_v17 }
 0x100   :  { %v837_v36 = vpop.f32.mrf.mxu3  ;;  %v3704_v26 = vor.u32 %v4540_v23, %v3701_v24  ;;  %1402 = vmatpush.bf16.msra.mxu2 %v3700_v22  ;;  %v3683_v32 = vld [vmem:[#allocation7 + $0xc8] sm:$0xf]  ;;  %v4519_v22 = vld [vmem:[#allocation7 + $0x44] sm:$0xf] }
 0x101   :  { %4721 = vpow2.f32 %v3447_v31  ;;  %v3680_v31 = vor.u32 %v4535_v28, %v3677_v29  ;;  %v3684_v35 = vor.u32 %v4538_v33, %v3683_v32  ;;  %v3685_v36 = vld [vmem:[#allocation7 + $0xd8] sm:$0xf0]  ;;  %v889_v17 = vld [vmem:[#allocation2 + $0x1] ss:$8 sm:$0xf]  ;;  %v3612_v33 = vor.u32 %v4521_v21, %v3611_v20 }
 0x102   :  { %1415 = vmatpush.bf16.msra.mxu3 %v3704_v26  ;;  %v3688_v39 = vor.u32 %v4536_v34, %v3685_v36  ;;  %v3613_v26 = vld [vmem:[#allocation7 + $0x50] sm:$0xf0]  ;;  %v4522_v28 = vld [vmem:[#allocation7 + $0x54] sm:$0xf0]  ;;  %v3595_v34 = vld [vmem:[#allocation7 + $0x20] sm:$0xf] }
 0x103   :  { %1377 = vmatpush.bf16.msra.mxu0 %v3676_v30  ;;  %1390 = vmatpush.bf16.msra.mxu1 %v3680_v31  ;;  %v4520_v30 = vld [vmem:[#allocation7 + $0x4c] sm:$0xf]  ;;  %v3621_v31 = vld [vmem:[#allocation7 + $0x58] sm:$0xf0]  ;;  %v3620_v36 = vor.u32 %v4522_v28, %v3619_v27  ;;  %v3596_v48 = vor.u32 %v4517_v37, %v3595_v34  ;;  %v3822_v27 = vld [vmem:[#allocation7 + $0xf0] sm:$0xf0] }
 0x104   :  { %1403 = vmatpush.bf16.msra.mxu2 %v3684_v35  ;;  %v3616_v35 = vor.u32 %v4519_v22, %v3613_v26  ;;  %v3624_v41 = vor.u32 %v4520_v30, %v3621_v31  ;;  %v4574_v28 = vld [vmem:[#allocation7 + $0xf4] sm:$0xf0]  ;;  %v4572_v31 = vld [vmem:[#allocation7 + $0xec] sm:$0xf]  ;;  %v3806_v37 = vld [vmem:[#allocation7 + $0xd0] sm:$0xf0] }
 0x106   :  { %1416 = vmatpush.bf16.msra.mxu3 %v3688_v39  ;;  %v3597_v39 = vld [vmem:[#allocation7 + $0x30] sm:$0xf0] }
 0x107   :  { %v4722_v52 = vpop.eup %4721  ;;  %1378 = vmatpush.bf16.msra.mxu0 %v3660_v45  ;;  %1391 = vmatpush.bf16.msra.mxu1 %v3664_v49  ;;  %v3600_v49 = vor.u32 %v4515_v38, %v3597_v39 }
 0x108   :  { %v857_v54 = vadd.f32 1.0, %v4722_v52  ;;  %v4527_v52 = vld [vmem:[#allocation7 + $0x84] sm:$0xf]  ;;  %1404 = vmatpush.bf16.msra.mxu2 %v3668_v1 }
 0x10a   :  { %4723 = vrcp.f32 %v857_v54  ;;  %v869_v59 = vand.u32 2147483648, %v857_v54  ;;  %v867_v61 = vand.u32 2147483647, %v857_v54  ;;  %vm863_vm4 = vweird.f32 %v857_v54  ;;  %1417 = vmatpush.bf16.msra.mxu3 %v3672_v4  ;;  %v4511_v4 = vld [vmem:[#allocation7 + $0x4] sm:$0xf] }
 0x10b   :  { %4725 = vtanh.f32 %v874_v57  ;;  %v3653_v57 = vld [vmem:[#allocation7 + $0x98] sm:$0xf0] }
 0x10c   :  { %v870_v63 = vor.u32 1.1754944e-38, %v869_v59  ;;  %vm868_vm6 = vcmp.eq.f32.partialorder %v867_v61, 8.507059e+37  ;;  %v3644_v59 = vor.u32 %v4529_v51, %v3643_v50  ;;  %v3579_v50 = vld [vmem:[#allocation7] sm:$0xf]  ;;  %v4513_v51 = vld [vmem:[#allocation7 + $0xc] sm:$0xf0] }
 0x10e   :  { %1379 = vmatpush.bf16.msra.mxu0 %v3644_v59 }
 0x110   :  { %v4724_v55 = vpop.eup %4723 }
 0x111   :  { %v859_v56 = vmul.f32 %v4724_v55, %v857_v54  ;;  %vm864_vm3 = vweird.f32 %v4724_v55  ;;  %v4726_v6 = vpop.eup %4725  ;;  %v3651_v54 = vld [vmem:[#allocation7 + $0x88] sm:$0xf] }
 0x112   :  { %vm865_vm5 = vmor %vm863_vm4, %vm864_vm3 }
 0x113   :  { %v860_v58 = vsub.f32 1.0, %v859_v56  ;;  %v4528_v56 = vld [vmem:[#allocation7 + $0x8c] sm:$0xf] }
 0x115   :  { %v861_v60 = vmul.f32 %v4724_v55, %v860_v58 }
 0x117   :  { %v862_v62 = vadd.f32 %v4724_v55, %v861_v60  ;;  %v3648_v60 = vor.u32 %v4527_v52, %v3645_v53  ;;  %v3608_v52 = vor.u32 %v4516_v46, %v3605_v47  ;;  %v3581_v53 = vld [vmem:[#allocation7 + $0x10] sm:$0xf0]  ;;  %v4565_v46 = vld [vmem:[#allocation7 + $0xac] sm:$0xf0] }
 0x118   :  { %v3584_v59 = vor.u32 %v4511_v4, %v3581_v53  ;;  %v4564_v53 = vld [vmem:[#allocation7 + $0xac] sm:$0xf] }
 0x119   :  { %v866_v0 = vsel %vm865_vm5, %v4724_v55, %v862_v62  ;;  %v4530_v55 = vld [vmem:[#allocation7 + $0x94] sm:$0xf0]  ;;  %v3627_v62 = vld [vmem:[#allocation7 + $0x60] sm:$0xf]  ;;  %1392 = vmatpush.bf16.msra.mxu1 %v3648_v60 }
 0x11a   :  { %v871_v3 = vsel %vm868_vm6, %v870_v63, %v866_v0  ;;  %v3652_v61 = vor.u32 %v4530_v55, %v3651_v54  ;;  %v4525_v63 = vld [vmem:[#allocation7 + $0x6c] sm:$0xf0]  ;;  %v4523_v0 = vld [vmem:[#allocation7 + $0x64] sm:$0xf]  ;;  %v3587_v54 = vld [vmem:[#allocation7 + $0x8] sm:$0xf] }
 0x11b   :  { %v879_v5 = vrot.slane %v871_v3, 1  ;;  %v877_v7 = vmul.f32 %v871_v3, %v592_v2  ;;  %v884_v10 = vrot.slane %v871_v3, 2  ;;  %v3656_v2 = vor.u32 %v4528_v56, %v3653_v57  ;;  %v3629_v3 = vld [vmem:[#allocation7 + $0x70] sm:$0xf0]  ;;  %v4514_v55 = vld [vmem:[#allocation7 + $0x14] sm:$0xf0] }
 0x11c   :  { %v3628_v16 = vor.u32 %v4525_v63, %v3627_v62  ;;  %1405 = vmatpush.bf16.msra.mxu2 %v3652_v61  ;;  %v3632_v18 = vor.u32 %v4523_v0, %v3629_v3  ;;  %v4512_v56 = vld [vmem:[#allocation7 + $0xc] sm:$0xf]  ;;  %v3589_v57 = vld [vmem:[#allocation7 + $0x18] sm:$0xf0]  ;;  %v3588_v60 = vor.u32 %v4514_v55, %v3587_v54 }
 0x11d   :  { %v881_v8 = vmul.f32 %v4726_v6, %v879_v5  ;;  %v3635_v5 = vld [vmem:[#allocation7 + $0x68] sm:$0xf]  ;;  %v4526_v6 = vld [vmem:[#allocation7 + $0x74] sm:$0xf0]  ;;  %1418 = vmatpush.bf16.msra.mxu3 %v3656_v2  ;;  %v3592_v62 = vor.u32 %v4512_v56, %v3589_v57  ;;  %v3798_v54 = vld [vmem:[#allocation7 + $0xb8] sm:$0xf0] }
 0x11e   :  { %v3636_v19 = vor.u32 %v4526_v6, %v3635_v5  ;;  %1380 = vmatpush.bf16.msra.mxu0 %v3628_v16  ;;  %1393 = vmatpush.bf16.msra.mxu1 %v3632_v18  ;;  %v3772_v57 = vld [vmem:[#allocation7 + $0x80] sm:$0xf] }
 0x11f   :  { %v5013_v9 = vadd.f32 %v881_v8, %v877_v7 }
 0x120   :  { %1406 = vmatpush.bf16.msra.mxu2 %v3636_v19 }
 0x121   :  { %4727 = vtanh.f32 %v5013_v9 }
 0x122   :  { %1381 = vmatpush.bf16.msra.mxu0 %v3612_v33  ;;  %1394 = vmatpush.bf16.msra.mxu1 %v3616_v35  ;;  %v3804_v33 = vld [vmem:[#allocation7 + $0xc0] sm:$0xf]  ;;  %v4569_v35 = vld [vmem:[#allocation7 + $0xcc] sm:$0xf0] }
 0x123   :  { %v3805_v38 = vor.u32 %v4569_v35, %v3804_v33  ;;  %v3748_v35 = vld [vmem:[#allocation7 + $0x48] sm:$0xf] }
 0x124   :  { %1407 = vmatpush.bf16.msra.mxu2 %v3620_v36  ;;  %v4567_v36 = vld [vmem:[#allocation7 + $0xc4] sm:$0xf] }
 0x125   :  { %v3809_v39 = vor.u32 %v4567_v36, %v3806_v37  ;;  %v4554_v36 = vld [vmem:[#allocation7 + $0x54] sm:$0xf0] }
 0x126   :  { %1382 = vmatpush.bf16.msra.mxu0 %v3596_v48  ;;  %1395 = vmatpush.bf16.msra.mxu1 %v3600_v49  ;;  %v4563_v48 = vld [vmem:[#allocation7 + $0xa4] sm:$0xf]  ;;  %v3790_v49 = vld [vmem:[#allocation7 + $0xb0] sm:$0xf0] }
 0x127   :  { %v4728_v11 = vpop.eup %4727  ;;  %v3793_v55 = vor.u32 %v4563_v48, %v3790_v49 }
 0x128   :  { %v886_v12 = vmul.f32 %v4728_v11, %v884_v10  ;;  %v4524_v10 = vld [vmem:[#allocation7 + $0x6c] sm:$0xf]  ;;  %v3637_v11 = vld [vmem:[#allocation7 + $0x78] sm:$0xf0] }
 0x129   :  { %v3640_v25 = vor.u32 %v4524_v10, %v3637_v11 }
 0x12a   :  { %887 = vst [vmem:[#allocation3] sm:$0x1] %v886_v12  ;;  %v890_v13 = vpack.c.bf16 %v886_v12, %v886_v12  ;;  %1396 = vmatpush.bf16.msra.mxu1 %v3584_v59  ;;  %v3801_v59 = vor.u32 %v4564_v53, %v3798_v54  ;;  %v3734_v53 = vld [vmem:[#allocation7 + $0x38] sm:$0xf0] }
 0x12b   :  { %1419 = vmatpush.bf16.msra.mxu3 %v3640_v25  ;;  %v4571_v25 = vld [vmem:[#allocation7 + $0xe4] sm:$0xf] }
 0x12c   :  { %1091 = vmatmul.bf16.vlgmr.msrb.gmra.mxu0 %v890_v13  ;;  %1104 = vmatmul.bf16.vlgmr.msrb.gmra.mxu1 %v890_v13 }
 0x12d   :  { %1117 = vmatmul.bf16.vlgmr.msrb.gmra.mxu2 %v890_v13  ;;  %1130 = vmatmul.bf16.vlgmr.msrb.gmra.mxu3 %v890_v13 }
 0x12f   :  { %1420 = vmatpush.bf16.msra.mxu3 %v3624_v41  ;;  %v4570_v41 = vld [vmem:[#allocation7 + $0xd4] sm:$0xf0] }
 0x133   :  { %1421 = vmatpush.bf16.msra.mxu3 %v3608_v52  ;;  %v4566_v52 = vld [vmem:[#allocation7 + $0xb4] sm:$0xf0] }
 0x137   :  { %1422 = vmatpush.bf16.msra.mxu3 %v3592_v62  ;;  %v3780_v62 = vld [vmem:[#allocation7 + $0x88] sm:$0xf] }
 0x1a9   :  { %v1092_v43 = vpop.f32.mrf.mxu0  ;;  %v1105_v44 = vpop.f32.mrf.mxu1 }
 0x1aa   :  { %v1139_v58 = vrot.slane %v1105_v44, 7 }
 0x1ac   :  { %v1142_v23 = vsel %vm846_vm0, %v1092_v43, %v1139_v58  ;;  %v4518_v43 = vld [vmem:[#allocation7 + $0x34] sm:$0xf0]  ;;  %v3580_v58 = vor.u32 %v4513_v51, %v3579_v50 }
 0x1ad   :  { %v3604_v1 = vor.u32 %v4518_v43, %v3603_v42  ;;  %v4568_v42 = vld [vmem:[#allocation7 + $0xcc] sm:$0xf] }
 0x1ae   :  { %1383 = vmatpush.bf16.msra.mxu0 %v3580_v58  ;;  %v4561_v58 = vld [vmem:[#allocation7 + $0x8c] sm:$0xf0] }
 0x1af   :  { %1408 = vmatpush.bf16.msra.mxu2 %v3604_v1  ;;  %v3796_v1 = vld [vmem:[#allocation7 + $0xa8] sm:$0xf] }
 0x1b0   :  { %v1118_v7 = vpop.f32.mrf.mxu2  ;;  %v1131_v8 = vpop.f32.mrf.mxu3  ;;  %v3797_v56 = vor.u32 %v4566_v52, %v3796_v1  ;;  %v3732_v1 = vld [vmem:[#allocation7 + $0x28] sm:$0xf]  ;;  %v4548_v52 = vld [vmem:[#allocation7 + $0x2c] sm:$0xf] }
 0x1b1   :  { %v1140_v12 = vrot.slane %v1118_v7, 6  ;;  %v1141_v13 = vrot.slane %v1131_v8, 5  ;;  %v1094_v14 = vpop.f32.mrf.mxu0  ;;  %v1107_v15 = vpop.f32.mrf.mxu1 }
 0x1b3   :  { %v1143_v24 = vsel %vm848_vm1, %v1140_v12, %v1141_v13  ;;  %1409 = vmatpush.bf16.msra.mxu2 %v3588_v60  ;;  %v4559_v60 = vld [vmem:[#allocation7 + $0x84] sm:$0xf] }
 0x1b4   :  { %v1144_v29 = vsel %vm850_vm2, %v1142_v23, %v1143_v24  ;;  %v3820_v23 = vld [vmem:[#allocation7 + $0xe0] sm:$0xf]  ;;  %v4573_v24 = vld [vmem:[#allocation7 + $0xec] sm:$0xf0] }
 0x1b5   :  { %v1146_v32 = vadd.f32 %v1144_v29, %v889_v17  ;;  %v3821_v26 = vor.u32 %v4573_v24, %v3820_v23  ;;  %v3825_v29 = vor.u32 %v4571_v25, %v3822_v27 }
 0x1b7   :  { %v3576_v40 = vmul.f32 -1.442695, %v1146_v32  ;;  %v1167_v3 = vrot.slane %v1146_v32, 3  ;;  %v3830_v32 = vld [vmem:[#allocation7 + $0xf8] sm:$0xf0]  ;;  %1669 = vmatpush.bf16.msrb.mxu0 %v3821_v26  ;;  %1682 = vmatpush.bf16.msrb.mxu1 %v3825_v29 }
 0x1b8   :  { %v1120_v44 = vpop.f32.mrf.mxu2  ;;  %v1133_v45 = vpop.f32.mrf.mxu3  ;;  %v3833_v34 = vor.u32 %v4572_v31, %v3830_v32  ;;  %v1182_v26 = vld [vmem:[#allocation2 + $0x2] ss:$8 sm:$0xf] }
 0x1b9   :  { %4729 = vpow2.f32 %v3576_v40  ;;  %v3812_v40 = vld [vmem:[#allocation7 + $0xc8] sm:$0xf]  ;;  %v3814_v44 = vld [vmem:[#allocation7 + $0xd8] sm:$0xf0]  ;;  %v3788_v45 = vld [vmem:[#allocation7 + $0xa0] sm:$0xf] }
 0x1ba   :  { %1708 = vmatpush.bf16.msrb.mxu3 %v3833_v34  ;;  %v3813_v43 = vor.u32 %v4570_v41, %v3812_v40  ;;  %v3817_v47 = vor.u32 %v4568_v42, %v3814_v44  ;;  %v3789_v4 = vor.u32 %v4565_v46, %v3788_v45  ;;  %v4553_v29 = vld [vmem:[#allocation7 + $0x4c] sm:$0xf0]  ;;  %v3742_v34 = vld [vmem:[#allocation7 + $0x50] sm:$0xf0]  ;;  %v3724_v42 = vld [vmem:[#allocation7 + $0x20] sm:$0xf]  ;;  %v3749_v44 = vor.u32 %v4554_v36, %v3748_v35 }
 0x1bb   :  { %1670 = vmatpush.bf16.msrb.mxu0 %v3805_v38  ;;  %1683 = vmatpush.bf16.msrb.mxu1 %v3809_v39  ;;  %v4552_v38 = vld [vmem:[#allocation7 + $0x4c] sm:$0xf]  ;;  %v3750_v39 = vld [vmem:[#allocation7 + $0x58] sm:$0xf0]  ;;  %v4549_v45 = vld [vmem:[#allocation7 + $0x2c] sm:$0xf0] }
 0x1bc   :  { %v4547_v46 = vld [vmem:[#allocation7 + $0x24] sm:$0xf]  ;;  %v3753_v49 = vor.u32 %v4552_v38, %v3750_v39  ;;  %v3725_v54 = vor.u32 %v4549_v45, %v3724_v42  ;;  %v3951_v35 = vld [vmem:[#allocation7 + $0xf0] sm:$0xf0]  ;;  %v4606_v36 = vld [vmem:[#allocation7 + $0xf4] sm:$0xf0] }
 0x1bd   :  { %v4604_v39 = vld [vmem:[#allocation7 + $0xec] sm:$0xf]  ;;  %v3935_v45 = vld [vmem:[#allocation7 + $0xd0] sm:$0xf0] }
 0x1be   :  { %1709 = vmatpush.bf16.msrb.mxu3 %v3817_v47  ;;  %v3726_v47 = vld [vmem:[#allocation7 + $0x30] sm:$0xf0] }
 0x1bf   :  { %v4730_v61 = vpop.eup %4729  ;;  %1671 = vmatpush.bf16.msrb.mxu0 %v3789_v4  ;;  %1684 = vmatpush.bf16.msrb.mxu1 %v3793_v55  ;;  %v3729_v55 = vor.u32 %v4547_v46, %v3726_v47 }
 0x1c0   :  { %v1150_v63 = vadd.f32 1.0, %v4730_v61  ;;  %v3774_v61 = vld [vmem:[#allocation7 + $0x90] sm:$0xf0] }
 0x1c2   :  { %4731 = vrcp.f32 %v1150_v63  ;;  %v1162_v6 = vand.u32 2147483648, %v1150_v63  ;;  %v1160_v8 = vand.u32 2147483647, %v1150_v63  ;;  %vm1156_vm8 = vweird.f32 %v1150_v63  ;;  %1710 = vmatpush.bf16.msrb.mxu3 %v3801_v59  ;;  %v4543_v59 = vld [vmem:[#allocation7 + $0x4] sm:$0xf] }
 0x1c3   :  { %4733 = vtanh.f32 %v1167_v3 }
 0x1c4   :  { %v1163_v11 = vor.u32 1.1754944e-38, %v1162_v6  ;;  %vm1161_vm10 = vcmp.eq.f32.partialorder %v1160_v8, 8.507059e+37  ;;  %v3777_v6 = vor.u32 %v4559_v60, %v3774_v61  ;;  %v3756_v8 = vld [vmem:[#allocation7 + $0x60] sm:$0xf]  ;;  %v3737_v60 = vor.u32 %v4548_v52, %v3734_v53  ;;  %v3710_v61 = vld [vmem:[#allocation7 + $0x10] sm:$0xf0] }
 0x1c5   :  { %v4597_v52 = vld [vmem:[#allocation7 + $0xac] sm:$0xf0] }
 0x1c6   :  { %1685 = vmatpush.bf16.msrb.mxu1 %v3777_v6 }
 0x1c8   :  { %v4732_v0 = vpop.eup %4731 }
 0x1c9   :  { %v1152_v2 = vmul.f32 %v4732_v0, %v1150_v63  ;;  %vm1157_vm7 = vweird.f32 %v4732_v0  ;;  %v4734_v15 = vpop.eup %4733  ;;  %v4562_v63 = vld [vmem:[#allocation7 + $0x94] sm:$0xf0] }
 0x1ca   :  { %vm1158_vm9 = vmor %vm1156_vm8, %vm1157_vm7 }
 0x1cb   :  { %v1153_v5 = vsub.f32 1.0, %v1152_v2  ;;  %v3782_v2 = vld [vmem:[#allocation7 + $0x98] sm:$0xf0] }
 0x1cd   :  { %v1154_v7 = vmul.f32 %v4732_v0, %v1153_v5  ;;  %v3773_v5 = vor.u32 %v4561_v58, %v3772_v57  ;;  %v3708_v57 = vld [vmem:[#allocation7] sm:$0xf]  ;;  %v4545_v58 = vld [vmem:[#allocation7 + $0xc] sm:$0xf0] }
 0x1cf   :  { %v1155_v10 = vadd.f32 %v4732_v0, %v1154_v7  ;;  %v3781_v7 = vor.u32 %v4562_v63, %v3780_v62  ;;  %1672 = vmatpush.bf16.msrb.mxu0 %v3773_v5  ;;  %v3716_v62 = vld [vmem:[#allocation7 + $0x8] sm:$0xf]  ;;  %v4546_v63 = vld [vmem:[#allocation7 + $0x14] sm:$0xf0]  ;;  %v3713_v5 = vor.u32 %v4543_v59, %v3710_v61  ;;  %v4596_v61 = vld [vmem:[#allocation7 + $0xac] sm:$0xf] }
 0x1d0   :  { %v3717_v6 = vor.u32 %v4546_v63, %v3716_v62  ;;  %v3927_v62 = vld [vmem:[#allocation7 + $0xb8] sm:$0xf0] }
 0x1d1   :  { %v1159_v12 = vsel %vm1158_vm9, %v4732_v0, %v1155_v10  ;;  %v4560_v0 = vld [vmem:[#allocation7 + $0x8c] sm:$0xf]  ;;  %v4557_v10 = vld [vmem:[#allocation7 + $0x6c] sm:$0xf0] }
 0x1d2   :  { %v1164_v13 = vsel %vm1161_vm10, %v1163_v11, %v1159_v12  ;;  %v4555_v11 = vld [vmem:[#allocation7 + $0x64] sm:$0xf]  ;;  %v3785_v12 = vor.u32 %v4560_v0, %v3782_v2  ;;  %v3757_v25 = vor.u32 %v4557_v10, %v3756_v8  ;;  %v4544_v0 = vld [vmem:[#allocation7 + $0xc] sm:$0xf]  ;;  %v3718_v2 = vld [vmem:[#allocation7 + $0x18] sm:$0xf0] }
 0x1d3   :  { %v1172_v14 = vrot.slane %v1164_v13, 1  ;;  %v1170_v16 = vmul.f32 %v1164_v13, %v5013_v9  ;;  %v1177_v19 = vrot.slane %v1164_v13, 2  ;;  %v3828_v9 = vld [vmem:[#allocation7 + $0xe8] sm:$0xf]  ;;  %v3758_v13 = vld [vmem:[#allocation7 + $0x70] sm:$0xf0]  ;;  %v3721_v8 = vor.u32 %v4544_v0, %v3718_v2 }
 0x1d4   :  { %v3829_v30 = vor.u32 %v4574_v28, %v3828_v9  ;;  %v3761_v27 = vor.u32 %v4555_v11, %v3758_v13  ;;  %v3740_v28 = vld [vmem:[#allocation7 + $0x40] sm:$0xf]  ;;  %1711 = vmatpush.bf16.msrb.mxu3 %v3785_v12  ;;  %1673 = vmatpush.bf16.msrb.mxu0 %v3757_v25 }
 0x1d5   :  { %v1174_v17 = vmul.f32 %v4734_v15, %v1172_v14  ;;  %v3764_v14 = vld [vmem:[#allocation7 + $0x68] sm:$0xf]  ;;  %v4558_v15 = vld [vmem:[#allocation7 + $0x74] sm:$0xf0]  ;;  %v3741_v41 = vor.u32 %v4553_v29, %v3740_v28  ;;  %v3901_v2 = vld [vmem:[#allocation7 + $0x80] sm:$0xf] }
 0x1d6   :  { %1695 = vmatpush.bf16.msrb.mxu2 %v3829_v30  ;;  %v3765_v9 = vor.u32 %v4558_v15, %v3764_v14  ;;  %v4551_v30 = vld [vmem:[#allocation7 + $0x44] sm:$0xf]  ;;  %1686 = vmatpush.bf16.msrb.mxu1 %v3761_v27 }
 0x1d7   :  { %v5020_v18 = vadd.f32 %v1174_v17, %v1170_v16 }
 0x1d8   :  { %1674 = vmatpush.bf16.msrb.mxu0 %v3741_v41  ;;  %v3933_v41 = vld [vmem:[#allocation7 + $0xc0] sm:$0xf] }
 0x1d9   :  { %4735 = vtanh.f32 %v5020_v18 }
 0x1da   :  { %1696 = vmatpush.bf16.msrb.mxu2 %v3813_v43  ;;  %v3745_v43 = vor.u32 %v4551_v30, %v3742_v34 }
 0x1dc   :  { %1687 = vmatpush.bf16.msrb.mxu1 %v3745_v43  ;;  %1675 = vmatpush.bf16.msrb.mxu0 %v3725_v54  ;;  %v4601_v43 = vld [vmem:[#allocation7 + $0xcc] sm:$0xf0]  ;;  %v4595_v54 = vld [vmem:[#allocation7 + $0xa4] sm:$0xf] }
 0x1dd   :  { %v3934_v46 = vor.u32 %v4601_v43, %v3933_v41  ;;  %v3877_v43 = vld [vmem:[#allocation7 + $0x48] sm:$0xf] }
 0x1de   :  { %1697 = vmatpush.bf16.msrb.mxu2 %v3797_v56 }
 0x1df   :  { %v4736_v20 = vpop.eup %4735 }
 0x1e0   :  { %v1179_v21 = vmul.f32 %v4736_v20, %v1177_v19  ;;  %v4556_v19 = vld [vmem:[#allocation7 + $0x6c] sm:$0xf]  ;;  %v3766_v20 = vld [vmem:[#allocation7 + $0x78] sm:$0xf0]  ;;  %1688 = vmatpush.bf16.msrb.mxu1 %v3729_v55  ;;  %v3919_v55 = vld [vmem:[#allocation7 + $0xb0] sm:$0xf0] }
 0x1e1   :  { %v3769_v33 = vor.u32 %v4556_v19, %v3766_v20  ;;  %v3922_v63 = vor.u32 %v4595_v54, %v3919_v55 }
 0x1e2   :  { %1180 = vst [vmem:[#allocation3 + $0x1] sm:$0x1] %v1179_v21  ;;  %v1183_v22 = vpack.c.bf16 %v1179_v21, %v1179_v21  ;;  %1698 = vmatpush.bf16.msrb.mxu2 %v3781_v7 }
 0x1e3   :  { %1712 = vmatpush.bf16.msrb.mxu3 %v3769_v33  ;;  %v4603_v33 = vld [vmem:[#allocation7 + $0xe4] sm:$0xf] }
 0x1e4   :  { %1384 = vmatmul.bf16.vlgmr.msra.gmra.mxu0 %v1183_v22  ;;  %1397 = vmatmul.bf16.vlgmr.msra.gmra.mxu1 %v1183_v22 }
 0x1e5   :  { %1410 = vmatmul.bf16.vlgmr.msra.gmra.mxu2 %v1183_v22  ;;  %1423 = vmatmul.bf16.vlgmr.msra.gmra.mxu3 %v1183_v22 }
 0x1e6   :  { %1699 = vmatpush.bf16.msrb.mxu2 %v3765_v9  ;;  %1689 = vmatpush.bf16.msrb.mxu1 %v3713_v5  ;;  %v3930_v5 = vor.u32 %v4596_v61, %v3927_v62  ;;  %v3863_v61 = vld [vmem:[#allocation7 + $0x38] sm:$0xf0] }
 0x1e7   :  { %1713 = vmatpush.bf16.msrb.mxu3 %v3753_v49  ;;  %v4602_v49 = vld [vmem:[#allocation7 + $0xd4] sm:$0xf0] }
 0x1ea   :  { %1700 = vmatpush.bf16.msrb.mxu2 %v3749_v44  ;;  %v4599_v44 = vld [vmem:[#allocation7 + $0xc4] sm:$0xf] }
 0x1eb   :  { %1714 = vmatpush.bf16.msrb.mxu3 %v3737_v60  ;;  %v3938_v47 = vor.u32 %v4599_v44, %v3935_v45  ;;  %v4598_v60 = vld [vmem:[#allocation7 + $0xb4] sm:$0xf0] }
 0x1ec   :  { %v4586_v44 = vld [vmem:[#allocation7 + $0x54] sm:$0xf0] }
 0x1ef   :  { %1715 = vmatpush.bf16.msrb.mxu3 %v3721_v8  ;;  %v3909_v8 = vld [vmem:[#allocation7 + $0x88] sm:$0xf] }
 0x261   :  { %v1385_v50 = vpop.f32.mrf.mxu0  ;;  %v1398_v51 = vpop.f32.mrf.mxu1 }
 0x262   :  { %v1432_v3 = vrot.slane %v1398_v51, 7 }
 0x264   :  { %v1435_v31 = vsel %vm846_vm0, %v1385_v50, %v1432_v3  ;;  %v4550_v50 = vld [vmem:[#allocation7 + $0x34] sm:$0xf0]  ;;  %v3709_v3 = vor.u32 %v4545_v58, %v3708_v57 }
 0x265   :  { %v3733_v56 = vor.u32 %v4550_v50, %v3732_v1  ;;  %v4600_v1 = vld [vmem:[#allocation7 + $0xcc] sm:$0xf] }
 0x266   :  { %1676 = vmatpush.bf16.msrb.mxu0 %v3709_v3  ;;  %v4593_v3 = vld [vmem:[#allocation7 + $0x8c] sm:$0xf0] }
 0x267   :  { %1701 = vmatpush.bf16.msrb.mxu2 %v3733_v56  ;;  %v3925_v56 = vld [vmem:[#allocation7 + $0xa8] sm:$0xf] }
 0x268   :  { %v1411_v16 = vpop.f32.mrf.mxu2  ;;  %v1424_v17 = vpop.f32.mrf.mxu3  ;;  %v3926_v0 = vor.u32 %v4598_v60, %v3925_v56  ;;  %v3861_v56 = vld [vmem:[#allocation7 + $0x28] sm:$0xf]  ;;  %v4580_v60 = vld [vmem:[#allocation7 + $0x2c] sm:$0xf] }
 0x269   :  { %v1433_v21 = vrot.slane %v1411_v16, 6  ;;  %v1434_v22 = vrot.slane %v1424_v17, 5  ;;  %v1387_v23 = vpop.f32.mrf.mxu0  ;;  %v1400_v24 = vpop.f32.mrf.mxu1 }
 0x26b   :  { %v1436_v32 = vsel %vm848_vm1, %v1433_v21, %v1434_v22  ;;  %1702 = vmatpush.bf16.msrb.mxu2 %v3717_v6  ;;  %v4591_v6 = vld [vmem:[#allocation7 + $0x84] sm:$0xf] }
 0x26c   :  { %v1437_v37 = vsel %vm850_vm2, %v1435_v31, %v1436_v32  ;;  %v3949_v31 = vld [vmem:[#allocation7 + $0xe0] sm:$0xf]  ;;  %v4605_v32 = vld [vmem:[#allocation7 + $0xec] sm:$0xf0] }
 0x26d   :  { %v1439_v40 = vadd.f32 %v1437_v37, %v1182_v26  ;;  %v3950_v34 = vor.u32 %v4605_v32, %v3949_v31  ;;  %v3954_v37 = vor.u32 %v4603_v33, %v3951_v35 }
 0x26f   :  { %v3705_v48 = vmul.f32 -1.442695, %v1439_v40  ;;  %v1460_v13 = vrot.slane %v1439_v40, 3  ;;  %v3959_v40 = vld [vmem:[#allocation7 + $0xf8] sm:$0xf0]  ;;  %1962 = vmatpush.bf16.msra.mxu0 %v3950_v34  ;;  %1975 = vmatpush.bf16.msra.mxu1 %v3954_v37 }
 0x270   :  { %v1413_v51 = vpop.f32.mrf.mxu2  ;;  %v1426_v4 = vpop.f32.mrf.mxu3  ;;  %v3962_v42 = vor.u32 %v4604_v39, %v3959_v40  ;;  %v1475_v34 = vld [vmem:[#allocation2 + $0x3] ss:$8 sm:$0xf] }
 0x271   :  { %4737 = vpow2.f32 %v3705_v48  ;;  %v3941_v48 = vld [vmem:[#allocation7 + $0xc8] sm:$0xf]  ;;  %v3943_v51 = vld [vmem:[#allocation7 + $0xd8] sm:$0xf0]  ;;  %v3917_v4 = vld [vmem:[#allocation7 + $0xa0] sm:$0xf] }
 0x272   :  { %2001 = vmatpush.bf16.msra.mxu3 %v3962_v42  ;;  %v3942_v50 = vor.u32 %v4602_v49, %v3941_v48  ;;  %v3946_v53 = vor.u32 %v4600_v1, %v3943_v51  ;;  %v3918_v59 = vor.u32 %v4597_v52, %v3917_v4  ;;  %v4585_v37 = vld [vmem:[#allocation7 + $0x4c] sm:$0xf0]  ;;  %v3871_v42 = vld [vmem:[#allocation7 + $0x50] sm:$0xf0]  ;;  %v3853_v1 = vld [vmem:[#allocation7 + $0x20] sm:$0xf]  ;;  %v3878_v51 = vor.u32 %v4586_v44, %v3877_v43 }
 0x273   :  { %1963 = vmatpush.bf16.msra.mxu0 %v3934_v46  ;;  %1976 = vmatpush.bf16.msra.mxu1 %v3938_v47  ;;  %v4584_v46 = vld [vmem:[#allocation7 + $0x4c] sm:$0xf]  ;;  %v3879_v47 = vld [vmem:[#allocation7 + $0x58] sm:$0xf0]  ;;  %v4581_v4 = vld [vmem:[#allocation7 + $0x2c] sm:$0xf0] }
 0x274   :  { %v4579_v52 = vld [vmem:[#allocation7 + $0x24] sm:$0xf]  ;;  %v3882_v55 = vor.u32 %v4584_v46, %v3879_v47  ;;  %v3854_v62 = vor.u32 %v4581_v4, %v3853_v1  ;;  %v4080_v43 = vld [vmem:[#allocation7 + $0xf0] sm:$0xf0]  ;;  %v4638_v44 = vld [vmem:[#allocation7 + $0xf4] sm:$0xf0] }
 0x275   :  { %v4636_v47 = vld [vmem:[#allocation7 + $0xec] sm:$0xf]  ;;  %v4064_v4 = vld [vmem:[#allocation7 + $0xd0] sm:$0xf0] }
 0x276   :  { %2002 = vmatpush.bf16.msra.mxu3 %v3946_v53  ;;  %v3855_v53 = vld [vmem:[#allocation7 + $0x30] sm:$0xf0] }
 0x277   :  { %v4738_v7 = vpop.eup %4737  ;;  %1964 = vmatpush.bf16.msra.mxu0 %v3918_v59  ;;  %1977 = vmatpush.bf16.msra.mxu1 %v3922_v63  ;;  %v3858_v63 = vor.u32 %v4579_v52, %v3855_v53 }
 0x278   :  { %v1443_v10 = vadd.f32 1.0, %v4738_v7  ;;  %v3903_v7 = vld [vmem:[#allocation7 + $0x90] sm:$0xf0] }
 0x27a   :  { %4739 = vrcp.f32 %v1443_v10  ;;  %v1455_v15 = vand.u32 2147483648, %v1443_v10  ;;  %v1453_v17 = vand.u32 2147483647, %v1443_v10  ;;  %vm1449_vm12 = vweird.f32 %v1443_v10  ;;  %2003 = vmatpush.bf16.msra.mxu3 %v3930_v5  ;;  %v4575_v5 = vld [vmem:[#allocation7 + $0x4] sm:$0xf] }
 0x27b   :  { %4741 = vtanh.f32 %v1460_v13 }
 0x27c   :  { %v1456_v20 = vor.u32 1.1754944e-38, %v1455_v15  ;;  %vm1454_vm14 = vcmp.eq.f32.partialorder %v1453_v17, 8.507059e+37  ;;  %v3906_v15 = vor.u32 %v4591_v6, %v3903_v7  ;;  %v3885_v17 = vld [vmem:[#allocation7 + $0x60] sm:$0xf]  ;;  %v3866_v6 = vor.u32 %v4580_v60, %v3863_v61  ;;  %v3839_v7 = vld [vmem:[#allocation7 + $0x10] sm:$0xf0] }
 0x27d   :  { %v4629_v60 = vld [vmem:[#allocation7 + $0xac] sm:$0xf0] }
 0x27e   :  { %1978 = vmatpush.bf16.msra.mxu1 %v3906_v15 }
 0x280   :  { %v4740_v11 = vpop.eup %4739 }
 0x281   :  { %v1445_v12 = vmul.f32 %v4740_v11, %v1443_v10  ;;  %vm1450_vm11 = vweird.f32 %v4740_v11  ;;  %v4742_v24 = vpop.eup %4741  ;;  %v4594_v10 = vld [vmem:[#allocation7 + $0x94] sm:$0xf0] }
 0x282   :  { %vm1451_vm13 = vmor %vm1449_vm12, %vm1450_vm11 }
 0x283   :  { %v1446_v14 = vsub.f32 1.0, %v1445_v12  ;;  %v3911_v12 = vld [vmem:[#allocation7 + $0x98] sm:$0xf0] }
 0x285   :  { %v1447_v16 = vmul.f32 %v4740_v11, %v1446_v14  ;;  %v3902_v14 = vor.u32 %v4593_v3, %v3901_v2  ;;  %v3837_v2 = vld [vmem:[#allocation7] sm:$0xf]  ;;  %v4577_v3 = vld [vmem:[#allocation7 + $0xc] sm:$0xf0] }
 0x287   :  { %v1448_v19 = vadd.f32 %v4740_v11, %v1447_v16  ;;  %v3910_v16 = vor.u32 %v4594_v10, %v3909_v8  ;;  %1965 = vmatpush.bf16.msra.mxu0 %v3902_v14  ;;  %v3845_v8 = vld [vmem:[#allocation7 + $0x8] sm:$0xf]  ;;  %v4578_v10 = vld [vmem:[#allocation7 + $0x14] sm:$0xf0]  ;;  %v3842_v14 = vor.u32 %v4575_v5, %v3839_v7  ;;  %v4628_v7 = vld [vmem:[#allocation7 + $0xac] sm:$0xf] }
 0x288   :  { %v3846_v15 = vor.u32 %v4578_v10, %v3845_v8  ;;  %v4056_v8 = vld [vmem:[#allocation7 + $0xb8] sm:$0xf0] }
 0x289   :  { %v1452_v21 = vsel %vm1451_vm13, %v4740_v11, %v1448_v19  ;;  %v4592_v11 = vld [vmem:[#allocation7 + $0x8c] sm:$0xf]  ;;  %v4589_v19 = vld [vmem:[#allocation7 + $0x6c] sm:$0xf0] }
 0x28a   :  { %v1457_v22 = vsel %vm1454_vm14, %v1456_v20, %v1452_v21  ;;  %v4587_v20 = vld [vmem:[#allocation7 + $0x64] sm:$0xf]  ;;  %v3914_v21 = vor.u32 %v4592_v11, %v3911_v12  ;;  %v3886_v33 = vor.u32 %v4589_v19, %v3885_v17  ;;  %v4576_v11 = vld [vmem:[#allocation7 + $0xc] sm:$0xf]  ;;  %v3847_v12 = vld [vmem:[#allocation7 + $0x18] sm:$0xf0] }
 0x28b   :  { %v1465_v23 = vrot.slane %v1457_v22, 1  ;;  %v1463_v25 = vmul.f32 %v1457_v22, %v5020_v18  ;;  %v1470_v9 = vrot.slane %v1457_v22, 2  ;;  %v3957_v18 = vld [vmem:[#allocation7 + $0xe8] sm:$0xf]  ;;  %v3887_v22 = vld [vmem:[#allocation7 + $0x70] sm:$0xf0]  ;;  %v3850_v17 = vor.u32 %v4576_v11, %v3847_v12 }
 0x28c   :  { %v3958_v38 = vor.u32 %v4606_v36, %v3957_v18  ;;  %v3890_v35 = vor.u32 %v4587_v20, %v3887_v22  ;;  %v3869_v36 = vld [vmem:[#allocation7 + $0x40] sm:$0xf]  ;;  %2004 = vmatpush.bf16.msra.mxu3 %v3914_v21  ;;  %1966 = vmatpush.bf16.msra.mxu0 %v3886_v33 }
 0x28d   :  { %v1467_v26 = vmul.f32 %v4742_v24, %v1465_v23  ;;  %v3893_v23 = vld [vmem:[#allocation7 + $0x68] sm:$0xf]  ;;  %v4590_v24 = vld [vmem:[#allocation7 + $0x74] sm:$0xf0]  ;;  %v3870_v49 = vor.u32 %v4585_v37, %v3869_v36  ;;  %v4030_v12 = vld [vmem:[#allocation7 + $0x80] sm:$0xf] }
 0x28e   :  { %1988 = vmatpush.bf16.msra.mxu2 %v3958_v38  ;;  %v3894_v18 = vor.u32 %v4590_v24, %v3893_v23  ;;  %v4583_v38 = vld [vmem:[#allocation7 + $0x44] sm:$0xf]  ;;  %1979 = vmatpush.bf16.msra.mxu1 %v3890_v35 }
 0x28f   :  { %v5027_v27 = vadd.f32 %v1467_v26, %v1463_v25 }
 0x290   :  { %1967 = vmatpush.bf16.msra.mxu0 %v3870_v49  ;;  %v4062_v49 = vld [vmem:[#allocation7 + $0xc0] sm:$0xf] }
 0x291   :  { %4743 = vtanh.f32 %v5027_v27 }
 0x292   :  { %1989 = vmatpush.bf16.msra.mxu2 %v3942_v50  ;;  %v3874_v50 = vor.u32 %v4583_v38, %v3871_v42 }
 0x294   :  { %1980 = vmatpush.bf16.msra.mxu1 %v3874_v50  ;;  %1968 = vmatpush.bf16.msra.mxu0 %v3854_v62  ;;  %v4633_v50 = vld [vmem:[#allocation7 + $0xcc] sm:$0xf0]  ;;  %v4627_v62 = vld [vmem:[#allocation7 + $0xa4] sm:$0xf] }
 0x295   :  { %v4063_v52 = vor.u32 %v4633_v50, %v4062_v49  ;;  %v4006_v50 = vld [vmem:[#allocation7 + $0x48] sm:$0xf] }
 0x296   :  { %1990 = vmatpush.bf16.msra.mxu2 %v3926_v0 }
 0x297   :  { %v4744_v28 = vpop.eup %4743 }
 0x298   :  { %v1472_v29 = vmul.f32 %v4744_v28, %v1470_v9  ;;  %v4588_v9 = vld [vmem:[#allocation7 + $0x6c] sm:$0xf]  ;;  %v3895_v28 = vld [vmem:[#allocation7 + $0x78] sm:$0xf0]  ;;  %1981 = vmatpush.bf16.msra.mxu1 %v3858_v63  ;;  %v4048_v63 = vld [vmem:[#allocation7 + $0xb0] sm:$0xf0] }
 0x299   :  { %v3898_v41 = vor.u32 %v4588_v9, %v3895_v28  ;;  %v4051_v10 = vor.u32 %v4627_v62, %v4048_v63 }
 0x29a   :  { %1473 = vst [vmem:[#allocation3 + $0x2] sm:$0x1] %v1472_v29  ;;  %v1476_v30 = vpack.c.bf16 %v1472_v29, %v1472_v29  ;;  %1991 = vmatpush.bf16.msra.mxu2 %v3910_v16 }
 0x29b   :  { %2005 = vmatpush.bf16.msra.mxu3 %v3898_v41  ;;  %v4635_v41 = vld [vmem:[#allocation7 + $0xe4] sm:$0xf] }
 0x29c   :  { %1677 = vmatmul.bf16.vlgmr.msrb.gmra.mxu0 %v1476_v30  ;;  %1690 = vmatmul.bf16.vlgmr.msrb.gmra.mxu1 %v1476_v30 }
 0x29d   :  { %1703 = vmatmul.bf16.vlgmr.msrb.gmra.mxu2 %v1476_v30  ;;  %1716 = vmatmul.bf16.vlgmr.msrb.gmra.mxu3 %v1476_v30 }
 0x29e   :  { %1992 = vmatpush.bf16.msra.mxu2 %v3894_v18  ;;  %1982 = vmatpush.bf16.msra.mxu1 %v3842_v14  ;;  %v4059_v14 = vor.u32 %v4628_v7, %v4056_v8  ;;  %v3992_v7 = vld [vmem:[#allocation7 + $0x38] sm:$0xf0] }
 0x29f   :  { %2006 = vmatpush.bf16.msra.mxu3 %v3882_v55  ;;  %v4634_v55 = vld [vmem:[#allocation7 + $0xd4] sm:$0xf0] }
 0x2a2   :  { %1993 = vmatpush.bf16.msra.mxu2 %v3878_v51  ;;  %v4631_v51 = vld [vmem:[#allocation7 + $0xc4] sm:$0xf] }
 0x2a3   :  { %2007 = vmatpush.bf16.msra.mxu3 %v3866_v6  ;;  %v4067_v53 = vor.u32 %v4631_v51, %v4064_v4  ;;  %v4630_v6 = vld [vmem:[#allocation7 + $0xb4] sm:$0xf0] }
 0x2a4   :  { %v4618_v51 = vld [vmem:[#allocation7 + $0x54] sm:$0xf0] }
 0x2a7   :  { %2008 = vmatpush.bf16.msra.mxu3 %v3850_v17  ;;  %v4038_v17 = vld [vmem:[#allocation7 + $0x88] sm:$0xf] }
 0x319   :  { %v1678_v57 = vpop.f32.mrf.mxu0  ;;  %v1691_v58 = vpop.f32.mrf.mxu1 }
 0x31a   :  { %v1725_v13 = vrot.slane %v1691_v58, 7 }
 0x31c   :  { %v1728_v39 = vsel %vm846_vm0, %v1678_v57, %v1725_v13  ;;  %v4582_v57 = vld [vmem:[#allocation7 + $0x34] sm:$0xf0]  ;;  %v3838_v13 = vor.u32 %v4577_v3, %v3837_v2 }
 0x31d   :  { %v3862_v0 = vor.u32 %v4582_v57, %v3861_v56  ;;  %v4632_v56 = vld [vmem:[#allocation7 + $0xcc] sm:$0xf] }
 0x31e   :  { %1969 = vmatpush.bf16.msra.mxu0 %v3838_v13  ;;  %v4625_v13 = vld [vmem:[#allocation7 + $0x8c] sm:$0xf0] }
 0x31f   :  { %1994 = vmatpush.bf16.msra.mxu2 %v3862_v0  ;;  %v4054_v0 = vld [vmem:[#allocation7 + $0xa8] sm:$0xf] }
 0x320   :  { %v1704_v25 = vpop.f32.mrf.mxu2  ;;  %v1717_v26 = vpop.f32.mrf.mxu3  ;;  %v4055_v11 = vor.u32 %v4630_v6, %v4054_v0  ;;  %v3990_v0 = vld [vmem:[#allocation7 + $0x28] sm:$0xf]  ;;  %v4612_v6 = vld [vmem:[#allocation7 + $0x2c] sm:$0xf] }
 0x321   :  { %v1726_v29 = vrot.slane %v1704_v25, 6  ;;  %v1727_v30 = vrot.slane %v1717_v26, 5  ;;  %v1680_v31 = vpop.f32.mrf.mxu0  ;;  %v1693_v32 = vpop.f32.mrf.mxu1 }
 0x323   :  { %v1729_v40 = vsel %vm848_vm1, %v1726_v29, %v1727_v30  ;;  %1995 = vmatpush.bf16.msra.mxu2 %v3846_v15  ;;  %v4623_v15 = vld [vmem:[#allocation7 + $0x84] sm:$0xf] }
 0x324   :  { %v1730_v45 = vsel %vm850_vm2, %v1728_v39, %v1729_v40  ;;  %v4078_v39 = vld [vmem:[#allocation7 + $0xe0] sm:$0xf]  ;;  %v4637_v40 = vld [vmem:[#allocation7 + $0xec] sm:$0xf0] }
 0x325   :  { %v1732_v48 = vadd.f32 %v1730_v45, %v1475_v34  ;;  %v4079_v42 = vor.u32 %v4637_v40, %v4078_v39  ;;  %v4083_v45 = vor.u32 %v4635_v41, %v4080_v43 }
 0x327   :  { %v3834_v54 = vmul.f32 -1.442695, %v1732_v48  ;;  %v1753_v22 = vrot.slane %v1732_v48, 3  ;;  %v4088_v48 = vld [vmem:[#allocation7 + $0xf8] sm:$0xf0]  ;;  %2255 = vmatpush.bf16.msrb.mxu0 %v4079_v42  ;;  %2268 = vmatpush.bf16.msrb.mxu1 %v4083_v45 }
 0x328   :  { %v1706_v58 = vpop.f32.mrf.mxu2  ;;  %v1719_v59 = vpop.f32.mrf.mxu3  ;;  %v4091_v1 = vor.u32 %v4636_v47, %v4088_v48  ;;  %v1768_v42 = vld [vmem:[#allocation2 + $0x4] ss:$8 sm:$0xf]  ;;  %v4617_v45 = vld [vmem:[#allocation7 + $0x4c] sm:$0xf0] }
 0x329   :  { %4745 = vpow2.f32 %v3834_v54  ;;  %v4070_v54 = vld [vmem:[#allocation7 + $0xc8] sm:$0xf]  ;;  %v4072_v58 = vld [vmem:[#allocation7 + $0xd8] sm:$0xf0]  ;;  %v4046_v59 = vld [vmem:[#allocation7 + $0xa0] sm:$0xf] }
 0x32a   :  { %2294 = vmatpush.bf16.msrb.mxu3 %v4091_v1  ;;  %v4071_v57 = vor.u32 %v4634_v55, %v4070_v54  ;;  %v4075_v61 = vor.u32 %v4632_v56, %v4072_v58  ;;  %v4047_v5 = vor.u32 %v4629_v60, %v4046_v59  ;;  %v4000_v1 = vld [vmem:[#allocation7 + $0x50] sm:$0xf0]  ;;  %v3982_v56 = vld [vmem:[#allocation7 + $0x20] sm:$0xf]  ;;  %v4007_v58 = vor.u32 %v4618_v51, %v4006_v50  ;;  %v4613_v59 = vld [vmem:[#allocation7 + $0x2c] sm:$0xf0] }
 0x32b   :  { %2256 = vmatpush.bf16.msrb.mxu0 %v4063_v52  ;;  %2269 = vmatpush.bf16.msrb.mxu1 %v4067_v53  ;;  %v4616_v52 = vld [vmem:[#allocation7 + $0x4c] sm:$0xf]  ;;  %v4008_v53 = vld [vmem:[#allocation7 + $0x58] sm:$0xf0]  ;;  %v4611_v60 = vld [vmem:[#allocation7 + $0x24] sm:$0xf]  ;;  %v3983_v8 = vor.u32 %v4613_v59, %v3982_v56 }
 0x32c   :  { %v4011_v63 = vor.u32 %v4616_v52, %v4008_v53  ;;  %v4209_v50 = vld [vmem:[#allocation7 + $0xf0] sm:$0xf0]  ;;  %v4670_v51 = vld [vmem:[#allocation7 + $0xf4] sm:$0xf0]  ;;  %v4668_v53 = vld [vmem:[#allocation7 + $0xec] sm:$0xf] }
 0x32d   :  { %v4193_v59 = vld [vmem:[#allocation7 + $0xd0] sm:$0xf0] }
 0x32e   :  { %2295 = vmatpush.bf16.msrb.mxu3 %v4075_v61  ;;  %v3984_v61 = vld [vmem:[#allocation7 + $0x30] sm:$0xf0] }
 0x32f   :  { %v4746_v16 = vpop.eup %4745  ;;  %2257 = vmatpush.bf16.msrb.mxu0 %v4047_v5  ;;  %2270 = vmatpush.bf16.msrb.mxu1 %v4051_v10  ;;  %v3987_v10 = vor.u32 %v4611_v60, %v3984_v61 }
 0x330   :  { %v1736_v19 = vadd.f32 1.0, %v4746_v16  ;;  %v4032_v16 = vld [vmem:[#allocation7 + $0x90] sm:$0xf0] }
 0x332   :  { %4747 = vrcp.f32 %v1736_v19  ;;  %v1748_v24 = vand.u32 2147483648, %v1736_v19  ;;  %v1746_v26 = vand.u32 2147483647, %v1736_v19  ;;  %vm1742_vm3 = vweird.f32 %v1736_v19  ;;  %2296 = vmatpush.bf16.msrb.mxu3 %v4059_v14  ;;  %v4607_v14 = vld [vmem:[#allocation7 + $0x4] sm:$0xf] }
 0x333   :  { %4749 = vtanh.f32 %v1753_v22 }
 0x334   :  { %v1749_v28 = vor.u32 1.1754944e-38, %v1748_v24  ;;  %vm1747_vm5 = vcmp.eq.f32.partialorder %v1746_v26, 8.507059e+37  ;;  %v4035_v24 = vor.u32 %v4623_v15, %v4032_v16  ;;  %v4014_v26 = vld [vmem:[#allocation7 + $0x60] sm:$0xf]  ;;  %v3995_v15 = vor.u32 %v4612_v6, %v3992_v7  ;;  %v3968_v16 = vld [vmem:[#allocation7 + $0x10] sm:$0xf0] }
 0x335   :  { %v4661_v6 = vld [vmem:[#allocation7 + $0xac] sm:$0xf0] }
 0x336   :  { %2271 = vmatpush.bf16.msrb.mxu1 %v4035_v24 }
 0x338   :  { %v4748_v20 = vpop.eup %4747 }
 0x339   :  { %v1738_v21 = vmul.f32 %v4748_v20, %v1736_v19  ;;  %vm1743_vm15 = vweird.f32 %v4748_v20  ;;  %v4750_v32 = vpop.eup %4749  ;;  %v4626_v19 = vld [vmem:[#allocation7 + $0x94] sm:$0xf0] }
 0x33a   :  { %vm1744_vm4 = vmor %vm1742_vm3, %vm1743_vm15 }
 0x33b   :  { %v1739_v23 = vsub.f32 1.0, %v1738_v21  ;;  %v4040_v21 = vld [vmem:[#allocation7 + $0x98] sm:$0xf0] }
 0x33d   :  { %v1740_v25 = vmul.f32 %v4748_v20, %v1739_v23  ;;  %v4031_v23 = vor.u32 %v4625_v13, %v4030_v12  ;;  %v3966_v12 = vld [vmem:[#allocation7] sm:$0xf]  ;;  %v4609_v13 = vld [vmem:[#allocation7 + $0xc] sm:$0xf0] }
 0x33f   :  { %v1741_v9 = vadd.f32 %v4748_v20, %v1740_v25  ;;  %v4039_v25 = vor.u32 %v4626_v19, %v4038_v17  ;;  %2258 = vmatpush.bf16.msrb.mxu0 %v4031_v23  ;;  %v3974_v17 = vld [vmem:[#allocation7 + $0x8] sm:$0xf]  ;;  %v4610_v19 = vld [vmem:[#allocation7 + $0x14] sm:$0xf0]  ;;  %v3971_v23 = vor.u32 %v4607_v14, %v3968_v16  ;;  %v4660_v16 = vld [vmem:[#allocation7 + $0xac] sm:$0xf] }
 0x340   :  { %v3975_v24 = vor.u32 %v4610_v19, %v3974_v17  ;;  %v4185_v17 = vld [vmem:[#allocation7 + $0xb8] sm:$0xf0] }
 0x341   :  { %v1745_v29 = vsel %vm1744_vm4, %v4748_v20, %v1741_v9  ;;  %v4624_v20 = vld [vmem:[#allocation7 + $0x8c] sm:$0xf]  ;;  %v4621_v9 = vld [vmem:[#allocation7 + $0x6c] sm:$0xf0] }
 0x342   :  { %v1750_v30 = vsel %vm1747_vm5, %v1749_v28, %v1745_v29  ;;  %v4619_v28 = vld [vmem:[#allocation7 + $0x64] sm:$0xf]  ;;  %v4043_v29 = vor.u32 %v4624_v20, %v4040_v21  ;;  %v4015_v41 = vor.u32 %v4621_v9, %v4014_v26  ;;  %v4608_v20 = vld [vmem:[#allocation7 + $0xc] sm:$0xf]  ;;  %v3976_v21 = vld [vmem:[#allocation7 + $0x18] sm:$0xf0] }
 0x343   :  { %v1758_v31 = vrot.slane %v1750_v30, 1  ;;  %v1756_v33 = vmul.f32 %v1750_v30, %v5027_v27  ;;  %v1763_v18 = vrot.slane %v1750_v30, 2  ;;  %v4086_v27 = vld [vmem:[#allocation7 + $0xe8] sm:$0xf]  ;;  %v4016_v30 = vld [vmem:[#allocation7 + $0x70] sm:$0xf0]  ;;  %v3979_v26 = vor.u32 %v4608_v20, %v3976_v21 }
 0x344   :  { %v4087_v46 = vor.u32 %v4638_v44, %v4086_v27  ;;  %v4019_v43 = vor.u32 %v4619_v28, %v4016_v30  ;;  %v3998_v44 = vld [vmem:[#allocation7 + $0x40] sm:$0xf]  ;;  %2297 = vmatpush.bf16.msrb.mxu3 %v4043_v29  ;;  %2259 = vmatpush.bf16.msrb.mxu0 %v4015_v41 }
 0x345   :  { %v1760_v34 = vmul.f32 %v4750_v32, %v1758_v31  ;;  %v4022_v31 = vld [vmem:[#allocation7 + $0x68] sm:$0xf]  ;;  %v4622_v32 = vld [vmem:[#allocation7 + $0x74] sm:$0xf0]  ;;  %v3999_v55 = vor.u32 %v4617_v45, %v3998_v44  ;;  %v4159_v21 = vld [vmem:[#allocation7 + $0x80] sm:$0xf] }
 0x346   :  { %2281 = vmatpush.bf16.msrb.mxu2 %v4087_v46  ;;  %v4023_v27 = vor.u32 %v4622_v32, %v4022_v31  ;;  %v4615_v46 = vld [vmem:[#allocation7 + $0x44] sm:$0xf]  ;;  %2272 = vmatpush.bf16.msrb.mxu1 %v4019_v43 }
 0x347   :  { %v5034_v35 = vadd.f32 %v1760_v34, %v1756_v33 }
 0x348   :  { %2260 = vmatpush.bf16.msrb.mxu0 %v3999_v55  ;;  %v4191_v55 = vld [vmem:[#allocation7 + $0xc0] sm:$0xf] }
 0x349   :  { %4751 = vtanh.f32 %v5034_v35 }
 0x34a   :  { %2282 = vmatpush.bf16.msrb.mxu2 %v4071_v57  ;;  %v4003_v57 = vor.u32 %v4615_v46, %v4000_v1 }
 0x34c   :  { %2273 = vmatpush.bf16.msrb.mxu1 %v4003_v57  ;;  %2261 = vmatpush.bf16.msrb.mxu0 %v3983_v8  ;;  %v4665_v57 = vld [vmem:[#allocation7 + $0xcc] sm:$0xf0]  ;;  %v4659_v8 = vld [vmem:[#allocation7 + $0xa4] sm:$0xf] }
 0x34d   :  { %v4192_v60 = vor.u32 %v4665_v57, %v4191_v55  ;;  %v4135_v57 = vld [vmem:[#allocation7 + $0x48] sm:$0xf] }
 0x34e   :  { %2283 = vmatpush.bf16.msrb.mxu2 %v4055_v11 }
 0x34f   :  { %v4752_v36 = vpop.eup %4751 }
 0x350   :  { %v1765_v37 = vmul.f32 %v4752_v36, %v1763_v18  ;;  %v4620_v18 = vld [vmem:[#allocation7 + $0x6c] sm:$0xf]  ;;  %v4024_v36 = vld [vmem:[#allocation7 + $0x78] sm:$0xf0]  ;;  %2274 = vmatpush.bf16.msrb.mxu1 %v3987_v10  ;;  %v4177_v10 = vld [vmem:[#allocation7 + $0xb0] sm:$0xf0] }
 0x351   :  { %v4027_v49 = vor.u32 %v4620_v18, %v4024_v36  ;;  %v4180_v19 = vor.u32 %v4659_v8, %v4177_v10 }
 0x352   :  { %1766 = vst [vmem:[#allocation3 + $0x3] sm:$0x1] %v1765_v37  ;;  %v1769_v38 = vpack.c.bf16 %v1765_v37, %v1765_v37  ;;  %2284 = vmatpush.bf16.msrb.mxu2 %v4039_v25 }
 0x353   :  { %2298 = vmatpush.bf16.msrb.mxu3 %v4027_v49  ;;  %v4667_v49 = vld [vmem:[#allocation7 + $0xe4] sm:$0xf] }
 0x354   :  { %1970 = vmatmul.bf16.vlgmr.msra.gmra.mxu0 %v1769_v38  ;;  %1983 = vmatmul.bf16.vlgmr.msra.gmra.mxu1 %v1769_v38 }
 0x355   :  { %1996 = vmatmul.bf16.vlgmr.msra.gmra.mxu2 %v1769_v38  ;;  %2009 = vmatmul.bf16.vlgmr.msra.gmra.mxu3 %v1769_v38 }
 0x356   :  { %2285 = vmatpush.bf16.msrb.mxu2 %v4023_v27  ;;  %2275 = vmatpush.bf16.msrb.mxu1 %v3971_v23  ;;  %v4188_v23 = vor.u32 %v4660_v16, %v4185_v17  ;;  %v4121_v16 = vld [vmem:[#allocation7 + $0x38] sm:$0xf0] }
 0x357   :  { %2299 = vmatpush.bf16.msrb.mxu3 %v4011_v63  ;;  %v4666_v63 = vld [vmem:[#allocation7 + $0xd4] sm:$0xf0] }
 0x35a   :  { %2286 = vmatpush.bf16.msrb.mxu2 %v4007_v58  ;;  %v4663_v58 = vld [vmem:[#allocation7 + $0xc4] sm:$0xf] }
 0x35b   :  { %2300 = vmatpush.bf16.msrb.mxu3 %v3995_v15  ;;  %v4196_v61 = vor.u32 %v4663_v58, %v4193_v59  ;;  %v4662_v15 = vld [vmem:[#allocation7 + $0xb4] sm:$0xf0] }
 0x35c   :  { %v4650_v58 = vld [vmem:[#allocation7 + $0x54] sm:$0xf0] }
 0x35f   :  { %2301 = vmatpush.bf16.msrb.mxu3 %v3979_v26  ;;  %v4167_v26 = vld [vmem:[#allocation7 + $0x88] sm:$0xf] }
 0x3d1   :  { %v1971_v2 = vpop.f32.mrf.mxu0  ;;  %v1984_v3 = vpop.f32.mrf.mxu1 }
 0x3d2   :  { %v2018_v22 = vrot.slane %v1984_v3, 7 }
 0x3d4   :  { %v2021_v47 = vsel %vm846_vm0, %v1971_v2, %v2018_v22  ;;  %v4614_v2 = vld [vmem:[#allocation7 + $0x34] sm:$0xf0]  ;;  %v3967_v22 = vor.u32 %v4609_v13, %v3966_v12 }
 0x3d5   :  { %v3991_v11 = vor.u32 %v4614_v2, %v3990_v0  ;;  %v4664_v0 = vld [vmem:[#allocation7 + $0xcc] sm:$0xf] }
 0x3d6   :  { %2262 = vmatpush.bf16.msrb.mxu0 %v3967_v22  ;;  %v4657_v22 = vld [vmem:[#allocation7 + $0x8c] sm:$0xf0] }
 0x3d7   :  { %2287 = vmatpush.bf16.msrb.mxu2 %v3991_v11  ;;  %v4183_v11 = vld [vmem:[#allocation7 + $0xa8] sm:$0xf] }
 0x3d8   :  { %v1997_v33 = vpop.f32.mrf.mxu2  ;;  %v2010_v34 = vpop.f32.mrf.mxu3  ;;  %v4184_v20 = vor.u32 %v4662_v15, %v4183_v11  ;;  %v4119_v11 = vld [vmem:[#allocation7 + $0x28] sm:$0xf]  ;;  %v4644_v15 = vld [vmem:[#allocation7 + $0x2c] sm:$0xf] }
 0x3d9   :  { %v2019_v37 = vrot.slane %v1997_v33, 6  ;;  %v2020_v38 = vrot.slane %v2010_v34, 5  ;;  %v1973_v39 = vpop.f32.mrf.mxu0  ;;  %v1986_v40 = vpop.f32.mrf.mxu1 }
 0x3db   :  { %v2022_v48 = vsel %vm848_vm1, %v2019_v37, %v2020_v38  ;;  %2288 = vmatpush.bf16.msrb.mxu2 %v3975_v24  ;;  %v4655_v24 = vld [vmem:[#allocation7 + $0x84] sm:$0xf] }
 0x3dc   :  { %v2023_v4 = vsel %vm850_vm2, %v2021_v47, %v2022_v48  ;;  %v4207_v47 = vld [vmem:[#allocation7 + $0xe0] sm:$0xf]  ;;  %v4669_v48 = vld [vmem:[#allocation7 + $0xec] sm:$0xf0] }
 0x3dd   :  { %v2025_v54 = vadd.f32 %v2023_v4, %v1768_v42  ;;  %v4208_v1 = vor.u32 %v4669_v48, %v4207_v47  ;;  %v4212_v4 = vor.u32 %v4667_v49, %v4209_v50 }
 0x3df   :  { %v3963_v62 = vmul.f32 -1.442695, %v2025_v54  ;;  %v2046_v30 = vrot.slane %v2025_v54, 3  ;;  %v4217_v54 = vld [vmem:[#allocation7 + $0xf8] sm:$0xf0]  ;;  %2548 = vmatpush.bf16.msra.mxu0 %v4208_v1  ;;  %2561 = vmatpush.bf16.msra.mxu1 %v4212_v4 }
 0x3e0   :  { %v1999_v3 = vpop.f32.mrf.mxu2  ;;  %v2012_v5 = vpop.f32.mrf.mxu3  ;;  %v4220_v56 = vor.u32 %v4668_v53, %v4217_v54  ;;  %v2061_v1 = vld [vmem:[#allocation2 + $0x5] ss:$8 sm:$0xf]  ;;  %v4649_v4 = vld [vmem:[#allocation7 + $0x4c] sm:$0xf0] }
 0x3e1   :  { %4753 = vpow2.f32 %v3963_v62  ;;  %v4199_v62 = vld [vmem:[#allocation7 + $0xc8] sm:$0xf]  ;;  %v4201_v3 = vld [vmem:[#allocation7 + $0xd8] sm:$0xf0]  ;;  %v4175_v5 = vld [vmem:[#allocation7 + $0xa0] sm:$0xf] }
 0x3e2   :  { %2587 = vmatpush.bf16.msra.mxu3 %v4220_v56  ;;  %v4200_v2 = vor.u32 %v4666_v63, %v4199_v62  ;;  %v4204_v7 = vor.u32 %v4664_v0, %v4201_v3  ;;  %v4176_v14 = vor.u32 %v4661_v6, %v4175_v5  ;;  %v4129_v56 = vld [vmem:[#allocation7 + $0x50] sm:$0xf0]  ;;  %v4111_v0 = vld [vmem:[#allocation7 + $0x20] sm:$0xf]  ;;  %v4136_v3 = vor.u32 %v4650_v58, %v4135_v57  ;;  %v4645_v5 = vld [vmem:[#allocation7 + $0x2c] sm:$0xf0] }
 0x3e3   :  { %2549 = vmatpush.bf16.msra.mxu0 %v4192_v60  ;;  %2562 = vmatpush.bf16.msra.mxu1 %v4196_v61  ;;  %v4648_v60 = vld [vmem:[#allocation7 + $0x4c] sm:$0xf]  ;;  %v4137_v61 = vld [vmem:[#allocation7 + $0x58] sm:$0xf0]  ;;  %v4643_v6 = vld [vmem:[#allocation7 + $0x24] sm:$0xf]  ;;  %v4112_v17 = vor.u32 %v4645_v5, %v4111_v0 }
 0x3e4   :  { %v4140_v10 = vor.u32 %v4648_v60, %v4137_v61  ;;  %v4338_v57 = vld [vmem:[#allocation7 + $0xf0] sm:$0xf0]  ;;  %v4702_v58 = vld [vmem:[#allocation7 + $0xf4] sm:$0xf0]  ;;  %v4700_v61 = vld [vmem:[#allocation7 + $0xec] sm:$0xf] }
 0x3e5   :  { %v4322_v5 = vld [vmem:[#allocation7 + $0xd0] sm:$0xf0] }
 0x3e6   :  { %2588 = vmatpush.bf16.msra.mxu3 %v4204_v7  ;;  %v4113_v7 = vld [vmem:[#allocation7 + $0x30] sm:$0xf0] }
 0x3e7   :  { %v4754_v25 = vpop.eup %4753  ;;  %2550 = vmatpush.bf16.msra.mxu0 %v4176_v14  ;;  %2563 = vmatpush.bf16.msra.mxu1 %v4180_v19  ;;  %v4116_v19 = vor.u32 %v4643_v6, %v4113_v7 }
 0x3e8   :  { %v2029_v9 = vadd.f32 1.0, %v4754_v25  ;;  %v4161_v25 = vld [vmem:[#allocation7 + $0x90] sm:$0xf0] }
 0x3ea   :  { %4755 = vrcp.f32 %v2029_v9  ;;  %v2041_v32 = vand.u32 2147483648, %v2029_v9  ;;  %v2039_v34 = vand.u32 2147483647, %v2029_v9  ;;  %vm2035_vm7 = vweird.f32 %v2029_v9  ;;  %2589 = vmatpush.bf16.msra.mxu3 %v4188_v23  ;;  %v4639_v23 = vld [vmem:[#allocation7 + $0x4] sm:$0xf] }
 0x3eb   :  { %4757 = vtanh.f32 %v2046_v30 }
 0x3ec   :  { %v2042_v36 = vor.u32 1.1754944e-38, %v2041_v32  ;;  %vm2040_vm9 = vcmp.eq.f32.partialorder %v2039_v34, 8.507059e+37  ;;  %v4164_v32 = vor.u32 %v4655_v24, %v4161_v25  ;;  %v4143_v34 = vld [vmem:[#allocation7 + $0x60] sm:$0xf]  ;;  %v4124_v24 = vor.u32 %v4644_v15, %v4121_v16  ;;  %v4097_v25 = vld [vmem:[#allocation7 + $0x10] sm:$0xf0] }
 0x3ed   :  { %v4693_v15 = vld [vmem:[#allocation7 + $0xac] sm:$0xf0] }
 0x3ee   :  { %2564 = vmatpush.bf16.msra.mxu1 %v4164_v32 }
 0x3f0   :  { %v4756_v28 = vpop.eup %4755 }
 0x3f1   :  { %v2031_v29 = vmul.f32 %v4756_v28, %v2029_v9  ;;  %vm2036_vm6 = vweird.f32 %v4756_v28  ;;  %v4758_v40 = vpop.eup %4757  ;;  %v4658_v9 = vld [vmem:[#allocation7 + $0x94] sm:$0xf0] }
 0x3f2   :  { %vm2037_vm8 = vmor %vm2035_vm7, %vm2036_vm6 }
 0x3f3   :  { %v2032_v31 = vsub.f32 1.0, %v2031_v29  ;;  %v4169_v29 = vld [vmem:[#allocation7 + $0x98] sm:$0xf0] }
 0x3f5   :  { %v2033_v33 = vmul.f32 %v4756_v28, %v2032_v31  ;;  %v4160_v31 = vor.u32 %v4657_v22, %v4159_v21  ;;  %v4095_v21 = vld [vmem:[#allocation7] sm:$0xf]  ;;  %v4641_v22 = vld [vmem:[#allocation7 + $0xc] sm:$0xf0] }
 0x3f7   :  { %v2034_v18 = vadd.f32 %v4756_v28, %v2033_v33  ;;  %v4168_v33 = vor.u32 %v4658_v9, %v4167_v26  ;;  %2551 = vmatpush.bf16.msra.mxu0 %v4160_v31  ;;  %v4103_v26 = vld [vmem:[#allocation7 + $0x8] sm:$0xf]  ;;  %v4642_v9 = vld [vmem:[#allocation7 + $0x14] sm:$0xf0]  ;;  %v4100_v31 = vor.u32 %v4639_v23, %v4097_v25  ;;  %v4692_v25 = vld [vmem:[#allocation7 + $0xac] sm:$0xf] }
 0x3f8   :  { %v4104_v32 = vor.u32 %v4642_v9, %v4103_v26  ;;  %v4314_v26 = vld [vmem:[#allocation7 + $0xb8] sm:$0xf0] }
 0x3f9   :  { %v2038_v37 = vsel %vm2037_vm8, %v4756_v28, %v2034_v18  ;;  %v4656_v28 = vld [vmem:[#allocation7 + $0x8c] sm:$0xf]  ;;  %v4653_v18 = vld [vmem:[#allocation7 + $0x6c] sm:$0xf0] }
 0x3fa   :  { %v2043_v38 = vsel %vm2040_vm9, %v2042_v36, %v2038_v37  ;;  %v4651_v36 = vld [vmem:[#allocation7 + $0x64] sm:$0xf]  ;;  %v4172_v37 = vor.u32 %v4656_v28, %v4169_v29  ;;  %v4144_v49 = vor.u32 %v4653_v18, %v4143_v34  ;;  %v4640_v28 = vld [vmem:[#allocation7 + $0xc] sm:$0xf]  ;;  %v4105_v29 = vld [vmem:[#allocation7 + $0x18] sm:$0xf0] }
 0x3fb   :  { %v2051_v39 = vrot.slane %v2043_v38, 1  ;;  %v2049_v41 = vmul.f32 %v2043_v38, %v5034_v35  ;;  %v2056_v27 = vrot.slane %v2043_v38, 2  ;;  %v4215_v35 = vld [vmem:[#allocation7 + $0xe8] sm:$0xf]  ;;  %v4145_v38 = vld [vmem:[#allocation7 + $0x70] sm:$0xf0]  ;;  %v4108_v34 = vor.u32 %v4640_v28, %v4105_v29 }
 0x3fc   :  { %v4216_v52 = vor.u32 %v4670_v51, %v4215_v35  ;;  %v4148_v50 = vor.u32 %v4651_v36, %v4145_v38  ;;  %v4127_v51 = vld [vmem:[#allocation7 + $0x40] sm:$0xf]  ;;  %2590 = vmatpush.bf16.msra.mxu3 %v4172_v37  ;;  %2552 = vmatpush.bf16.msra.mxu0 %v4144_v49 }
 0x3fd   :  { %v2053_v42 = vmul.f32 %v4758_v40, %v2051_v39  ;;  %v4151_v39 = vld [vmem:[#allocation7 + $0x68] sm:$0xf]  ;;  %v4654_v40 = vld [vmem:[#allocation7 + $0x74] sm:$0xf0]  ;;  %v4128_v63 = vor.u32 %v4649_v4, %v4127_v51  ;;  %v4288_v29 = vld [vmem:[#allocation7 + $0x80] sm:$0xf] }
 0x3fe   :  { %2574 = vmatpush.bf16.msra.mxu2 %v4216_v52  ;;  %v4152_v35 = vor.u32 %v4654_v40, %v4151_v39  ;;  %v4647_v52 = vld [vmem:[#allocation7 + $0x44] sm:$0xf]  ;;  %2565 = vmatpush.bf16.msra.mxu1 %v4148_v50 }
 0x3ff   :  { %v5041_v43 = vadd.f32 %v2053_v42, %v2049_v41 }
 0x400   :  { %2553 = vmatpush.bf16.msra.mxu0 %v4128_v63  ;;  %v4320_v63 = vld [vmem:[#allocation7 + $0xc0] sm:$0xf] }
 0x401   :  { %4759 = vtanh.f32 %v5041_v43 }
 0x402   :  { %2575 = vmatpush.bf16.msra.mxu2 %v4200_v2  ;;  %v4132_v2 = vor.u32 %v4647_v52, %v4129_v56 }
 0x404   :  { %2566 = vmatpush.bf16.msra.mxu1 %v4132_v2  ;;  %2554 = vmatpush.bf16.msra.mxu0 %v4112_v17  ;;  %v4697_v2 = vld [vmem:[#allocation7 + $0xcc] sm:$0xf0]  ;;  %v4691_v17 = vld [vmem:[#allocation7 + $0xa4] sm:$0xf] }
 0x405   :  { %v4321_v6 = vor.u32 %v4697_v2, %v4320_v63  ;;  %v4264_v2 = vld [vmem:[#allocation7 + $0x48] sm:$0xf] }
 0x406   :  { %2576 = vmatpush.bf16.msra.mxu2 %v4184_v20 }
 0x407   :  { %v4760_v44 = vpop.eup %4759 }
 0x408   :  { %v2058_v45 = vmul.f32 %v4760_v44, %v2056_v27  ;;  %v4652_v27 = vld [vmem:[#allocation7 + $0x6c] sm:$0xf]  ;;  %v4153_v44 = vld [vmem:[#allocation7 + $0x78] sm:$0xf0]  ;;  %2567 = vmatpush.bf16.msra.mxu1 %v4116_v19  ;;  %v4306_v19 = vld [vmem:[#allocation7 + $0xb0] sm:$0xf0] }
 0x409   :  { %v4156_v55 = vor.u32 %v4652_v27, %v4153_v44  ;;  %v4309_v9 = vor.u32 %v4691_v17, %v4306_v19 }
 0x40a   :  { %2059 = vst [vmem:[#allocation3 + $0x4] sm:$0x1] %v2058_v45  ;;  %v2062_v46 = vpack.c.bf16 %v2058_v45, %v2058_v45  ;;  %2577 = vmatpush.bf16.msra.mxu2 %v4168_v33 }
 0x40b   :  { %2591 = vmatpush.bf16.msra.mxu3 %v4156_v55  ;;  %v4699_v55 = vld [vmem:[#allocation7 + $0xe4] sm:$0xf] }
 0x40c   :  { %2263 = vmatmul.bf16.vlgmr.msrb.gmra.mxu0 %v2062_v46  ;;  %2276 = vmatmul.bf16.vlgmr.msrb.gmra.mxu1 %v2062_v46 }
 0x40d   :  { %2289 = vmatmul.bf16.vlgmr.msrb.gmra.mxu2 %v2062_v46  ;;  %2302 = vmatmul.bf16.vlgmr.msrb.gmra.mxu3 %v2062_v46 }
 0x40e   :  { %2578 = vmatpush.bf16.msra.mxu2 %v4152_v35  ;;  %2568 = vmatpush.bf16.msra.mxu1 %v4100_v31  ;;  %v4317_v31 = vor.u32 %v4692_v25, %v4314_v26  ;;  %v4250_v25 = vld [vmem:[#allocation7 + $0x38] sm:$0xf0] }
 0x40f   :  { %2592 = vmatpush.bf16.msra.mxu3 %v4140_v10  ;;  %v4698_v10 = vld [vmem:[#allocation7 + $0xd4] sm:$0xf0] }
 0x412   :  { %2579 = vmatpush.bf16.msra.mxu2 %v4136_v3  ;;  %v4695_v3 = vld [vmem:[#allocation7 + $0xc4] sm:$0xf] }
 0x413   :  { %2593 = vmatpush.bf16.msra.mxu3 %v4124_v24  ;;  %v4325_v7 = vor.u32 %v4695_v3, %v4322_v5  ;;  %v4694_v24 = vld [vmem:[#allocation7 + $0xb4] sm:$0xf0] }
 0x414   :  { %v4682_v3 = vld [vmem:[#allocation7 + $0x54] sm:$0xf0] }
 0x417   :  { %2594 = vmatpush.bf16.msra.mxu3 %v4108_v34  ;;  %v4296_v34 = vld [vmem:[#allocation7 + $0x88] sm:$0xf] }
 0x489   :  { %v2264_v12 = vpop.f32.mrf.mxu0  ;;  %v2277_v13 = vpop.f32.mrf.mxu1 }
 0x48a   :  { %v2311_v30 = vrot.slane %v2277_v13, 7 }
 0x48c   :  { %v2314_v53 = vsel %vm846_vm0, %v2264_v12, %v2311_v30  ;;  %v4646_v12 = vld [vmem:[#allocation7 + $0x34] sm:$0xf0]  ;;  %v4096_v30 = vor.u32 %v4641_v22, %v4095_v21 }
 0x48d   :  { %v4120_v20 = vor.u32 %v4646_v12, %v4119_v11  ;;  %v4696_v11 = vld [vmem:[#allocation7 + $0xcc] sm:$0xf] }
 0x48e   :  { %2555 = vmatpush.bf16.msra.mxu0 %v4096_v30  ;;  %v4689_v30 = vld [vmem:[#allocation7 + $0x8c] sm:$0xf0] }
 0x48f   :  { %2580 = vmatpush.bf16.msra.mxu2 %v4120_v20  ;;  %v4312_v20 = vld [vmem:[#allocation7 + $0xa8] sm:$0xf] }
 0x490   :  { %v2290_v41 = vpop.f32.mrf.mxu2  ;;  %v2303_v42 = vpop.f32.mrf.mxu3  ;;  %v4313_v28 = vor.u32 %v4694_v24, %v4312_v20  ;;  %v4248_v20 = vld [vmem:[#allocation7 + $0x28] sm:$0xf]  ;;  %v4676_v24 = vld [vmem:[#allocation7 + $0x2c] sm:$0xf] }
 0x491   :  { %v2312_v45 = vrot.slane %v2290_v41, 6  ;;  %v2313_v46 = vrot.slane %v2303_v42, 5  ;;  %v2266_v47 = vpop.f32.mrf.mxu0  ;;  %v2279_v48 = vpop.f32.mrf.mxu1 }
 0x493   :  { %v2315_v54 = vsel %vm848_vm1, %v2312_v45, %v2313_v46  ;;  %2581 = vmatpush.bf16.msra.mxu2 %v4104_v32  ;;  %v4687_v32 = vld [vmem:[#allocation7 + $0x84] sm:$0xf] }
 0x494   :  { %v2316_v59 = vsel %vm850_vm2, %v2314_v53, %v2315_v54  ;;  %v4336_v53 = vld [vmem:[#allocation7 + $0xe0] sm:$0xf]  ;;  %v4701_v54 = vld [vmem:[#allocation7 + $0xec] sm:$0xf0] }
 0x495   :  { %v2318_v62 = vadd.f32 %v2316_v59, %v2061_v1  ;;  %v4337_v56 = vor.u32 %v4701_v54, %v4336_v53  ;;  %v4341_v59 = vor.u32 %v4699_v55, %v4338_v57 }
 0x497   :  { %v4092_v8 = vmul.f32 -1.442695, %v2318_v62  ;;  %v2339_v38 = vrot.slane %v2318_v62, 3  ;;  %v4346_v62 = vld [vmem:[#allocation7 + $0xf8] sm:$0xf0]  ;;  %2841 = vmatpush.bf16.msrb.mxu0 %v4337_v56  ;;  %2854 = vmatpush.bf16.msrb.mxu1 %v4341_v59 }
 0x498   :  { %v2292_v13 = vpop.f32.mrf.mxu2  ;;  %v2305_v14 = vpop.f32.mrf.mxu3  ;;  %v4349_v0 = vor.u32 %v4700_v61, %v4346_v62  ;;  %v2354_v56 = vld [vmem:[#allocation2 + $0x6] ss:$8 sm:$0xf]  ;;  %v4681_v59 = vld [vmem:[#allocation7 + $0x4c] sm:$0xf0] }
 0x499   :  { %4761 = vpow2.f32 %v4092_v8  ;;  %v4328_v8 = vld [vmem:[#allocation7 + $0xc8] sm:$0xf]  ;;  %v4330_v13 = vld [vmem:[#allocation7 + $0xd8] sm:$0xf0]  ;;  %v4304_v14 = vld [vmem:[#allocation7 + $0xa0] sm:$0xf] }
 0x49a   :  { %2880 = vmatpush.bf16.msrb.mxu3 %v4349_v0  ;;  %v4329_v12 = vor.u32 %v4698_v10, %v4328_v8  ;;  %v4333_v16 = vor.u32 %v4696_v11, %v4330_v13  ;;  %v4305_v23 = vor.u32 %v4693_v15, %v4304_v14  ;;  %v4258_v0 = vld [vmem:[#allocation7 + $0x50] sm:$0xf0]  ;;  %v4240_v11 = vld [vmem:[#allocation7 + $0x20] sm:$0xf]  ;;  %v4265_v13 = vor.u32 %v4682_v3, %v4264_v2  ;;  %v4677_v14 = vld [vmem:[#allocation7 + $0x2c] sm:$0xf0] }
 0x49b   :  { %2842 = vmatpush.bf16.msrb.mxu0 %v4321_v6  ;;  %2855 = vmatpush.bf16.msrb.mxu1 %v4325_v7  ;;  %v4680_v6 = vld [vmem:[#allocation7 + $0x4c] sm:$0xf]  ;;  %v4266_v7 = vld [vmem:[#allocation7 + $0x58] sm:$0xf0]  ;;  %v4675_v15 = vld [vmem:[#allocation7 + $0x24] sm:$0xf]  ;;  %v4241_v26 = vor.u32 %v4677_v14, %v4240_v11 }
 0x49c   :  { %v4269_v19 = vor.u32 %v4680_v6, %v4266_v7  ;;  %v4709_v3 = vld [vmem:[#allocation9 + $0x30] sm:$0xff]  ;;  %v4708_v14 = vld [vmem:[#allocation9 + $0x28] sm:$0xff] }
 0x49e   :  { %2881 = vmatpush.bf16.msrb.mxu3 %v4333_v16  ;;  %v4242_v16 = vld [vmem:[#allocation7 + $0x30] sm:$0xf0] }
 0x49f   :  { %v4762_v33 = vpop.eup %4761  ;;  %2843 = vmatpush.bf16.msrb.mxu0 %v4305_v23  ;;  %2856 = vmatpush.bf16.msrb.mxu1 %v4309_v9  ;;  %v4245_v9 = vor.u32 %v4675_v15, %v4242_v16 }
 0x4a0   :  { %v2322_v18 = vadd.f32 1.0, %v4762_v33  ;;  %v4290_v33 = vld [vmem:[#allocation7 + $0x90] sm:$0xf0] }
 0x4a2   :  { %4763 = vrcp.f32 %v2322_v18  ;;  %v2334_v40 = vand.u32 2147483648, %v2322_v18  ;;  %v2332_v42 = vand.u32 2147483647, %v2322_v18  ;;  %vm2328_vm11 = vweird.f32 %v2322_v18  ;;  %2882 = vmatpush.bf16.msrb.mxu3 %v4317_v31  ;;  %v4671_v31 = vld [vmem:[#allocation7 + $0x4] sm:$0xf] }
 0x4a3   :  { %4765 = vtanh.f32 %v2339_v38 }
 0x4a4   :  { %v2335_v44 = vor.u32 1.1754944e-38, %v2334_v40  ;;  %vm2333_vm13 = vcmp.eq.f32.partialorder %v2332_v42, 8.507059e+37  ;;  %v4293_v40 = vor.u32 %v4687_v32, %v4290_v33  ;;  %v4272_v42 = vld [vmem:[#allocation7 + $0x60] sm:$0xf]  ;;  %v4253_v32 = vor.u32 %v4676_v24, %v4250_v25  ;;  %v4226_v33 = vld [vmem:[#allocation7 + $0x10] sm:$0xf0] }
 0x4a5   :  { %v4705_v24 = vld [vmem:[#allocation9 + $0x10] sm:$0xff]  ;;  %v4704_v25 = vld [vmem:[#allocation9 + $0x8] sm:$0xff] }
 0x4a6   :  { %2857 = vmatpush.bf16.msrb.mxu1 %v4293_v40 }
 0x4a8   :  { %v4764_v36 = vpop.eup %4763 }
 0x4a9   :  { %v2324_v37 = vmul.f32 %v4764_v36, %v2322_v18  ;;  %vm2329_vm10 = vweird.f32 %v4764_v36  ;;  %v4766_v48 = vpop.eup %4765  ;;  %v4690_v18 = vld [vmem:[#allocation7 + $0x94] sm:$0xf0] }
 0x4aa   :  { %vm2330_vm12 = vmor %vm2328_vm11, %vm2329_vm10 }
 0x4ab   :  { %v2325_v39 = vsub.f32 1.0, %v2324_v37  ;;  %v4298_v37 = vld [vmem:[#allocation7 + $0x98] sm:$0xf0] }
 0x4ad   :  { %v2326_v41 = vmul.f32 %v4764_v36, %v2325_v39  ;;  %v4289_v39 = vor.u32 %v4689_v30, %v4288_v29  ;;  %v4224_v29 = vld [vmem:[#allocation7] sm:$0xf]  ;;  %v4673_v30 = vld [vmem:[#allocation7 + $0xc] sm:$0xf0] }
 0x4af   :  { %v2327_v27 = vadd.f32 %v4764_v36, %v2326_v41  ;;  %v4297_v41 = vor.u32 %v4690_v18, %v4296_v34  ;;  %2844 = vmatpush.bf16.msrb.mxu0 %v4289_v39  ;;  %v4232_v34 = vld [vmem:[#allocation7 + $0x8] sm:$0xf]  ;;  %v4674_v18 = vld [vmem:[#allocation7 + $0x14] sm:$0xf0]  ;;  %v4229_v39 = vor.u32 %v4671_v31, %v4226_v33 }
 0x4b0   :  { %v4233_v40 = vor.u32 %v4674_v18, %v4232_v34 }
 0x4b1   :  { %v2331_v45 = vsel %vm2330_vm12, %v4764_v36, %v2327_v27  ;;  %v4688_v36 = vld [vmem:[#allocation7 + $0x8c] sm:$0xf]  ;;  %v4685_v27 = vld [vmem:[#allocation7 + $0x6c] sm:$0xf0] }
 0x4b2   :  { %v2336_v46 = vsel %vm2333_vm13, %v2335_v44, %v2331_v45  ;;  %v4683_v44 = vld [vmem:[#allocation7 + $0x64] sm:$0xf]  ;;  %v4301_v45 = vor.u32 %v4688_v36, %v4298_v37  ;;  %v4273_v55 = vor.u32 %v4685_v27, %v4272_v42  ;;  %v4672_v36 = vld [vmem:[#allocation7 + $0xc] sm:$0xf]  ;;  %v4234_v37 = vld [vmem:[#allocation7 + $0x18] sm:$0xf0] }
 0x4b3   :  { %v2344_v47 = vrot.slane %v2336_v46, 1  ;;  %v2342_v49 = vmul.f32 %v2336_v46, %v5041_v43  ;;  %v2349_v35 = vrot.slane %v2336_v46, 2  ;;  %v4344_v43 = vld [vmem:[#allocation7 + $0xe8] sm:$0xf]  ;;  %v4274_v46 = vld [vmem:[#allocation7 + $0x70] sm:$0xf0]  ;;  %v4237_v42 = vor.u32 %v4672_v36, %v4234_v37 }
 0x4b4   :  { %v4345_v60 = vor.u32 %v4702_v58, %v4344_v43  ;;  %v4277_v57 = vor.u32 %v4683_v44, %v4274_v46  ;;  %v4256_v58 = vld [vmem:[#allocation7 + $0x40] sm:$0xf]  ;;  %2883 = vmatpush.bf16.msrb.mxu3 %v4301_v45  ;;  %2845 = vmatpush.bf16.msrb.mxu0 %v4273_v55 }
 0x4b5   :  { %v2346_v1 = vmul.f32 %v4766_v48, %v2344_v47  ;;  %v4280_v47 = vld [vmem:[#allocation7 + $0x68] sm:$0xf]  ;;  %v4686_v48 = vld [vmem:[#allocation7 + $0x74] sm:$0xf0]  ;;  %v4257_v10 = vor.u32 %v4681_v59, %v4256_v58 }
 0x4b6   :  { %2867 = vmatpush.bf16.msrb.mxu2 %v4345_v60  ;;  %v4281_v43 = vor.u32 %v4686_v48, %v4280_v47  ;;  %v4679_v60 = vld [vmem:[#allocation7 + $0x44] sm:$0xf]  ;;  %2858 = vmatpush.bf16.msrb.mxu1 %v4277_v57 }
 0x4b7   :  { %v5048_v50 = vadd.f32 %v2346_v1, %v2342_v49 }
 0x4b8   :  { %2846 = vmatpush.bf16.msrb.mxu0 %v4257_v10 }
 0x4b9   :  { %4767 = vtanh.f32 %v5048_v50 }
 0x4ba   :  { %2868 = vmatpush.bf16.msrb.mxu2 %v4329_v12  ;;  %v4261_v12 = vor.u32 %v4679_v60, %v4258_v0 }
 0x4bc   :  { %2859 = vmatpush.bf16.msrb.mxu1 %v4261_v12  ;;  %2847 = vmatpush.bf16.msrb.mxu0 %v4241_v26  ;;  %v2647_v12 = vld [vmem:[#allocation2 + $0x7] ss:$8 sm:$0xf] }
 0x4bd   :  { %v4703_v26 = vld [vmem:[#allocation9] sm:$0xff] }
 0x4be   :  { %2869 = vmatpush.bf16.msrb.mxu2 %v4313_v28 }
 0x4bf   :  { %v4768_v51 = vpop.eup %4767 }
 0x4c0   :  { %v2351_v4 = vmul.f32 %v4768_v51, %v2349_v35  ;;  %v4684_v35 = vld [vmem:[#allocation7 + $0x6c] sm:$0xf]  ;;  %v4282_v51 = vld [vmem:[#allocation7 + $0x78] sm:$0xf0]  ;;  %2860 = vmatpush.bf16.msrb.mxu1 %v4245_v9 }
 0x4c1   :  { %v4285_v63 = vor.u32 %v4684_v35, %v4282_v51 }
 0x4c2   :  { %2352 = vst [vmem:[#allocation3 + $0x5] sm:$0x1] %v2351_v4  ;;  %v2355_v52 = vpack.c.bf16 %v2351_v4, %v2351_v4  ;;  %2870 = vmatpush.bf16.msrb.mxu2 %v4297_v41 }
 0x4c3   :  { %2884 = vmatpush.bf16.msrb.mxu3 %v4285_v63  ;;  %v4710_v63 = vld [vmem:[#allocation9 + $0x38] sm:$0xff] }
 0x4c4   :  { %2556 = vmatmul.bf16.vlgmr.msra.gmra.mxu0 %v2355_v52  ;;  %2569 = vmatmul.bf16.vlgmr.msra.gmra.mxu1 %v2355_v52 }
 0x4c5   :  { %2582 = vmatmul.bf16.vlgmr.msra.gmra.mxu2 %v2355_v52  ;;  %2595 = vmatmul.bf16.vlgmr.msra.gmra.mxu3 %v2355_v52 }
 0x4c6   :  { %2871 = vmatpush.bf16.msrb.mxu2 %v4281_v43  ;;  %2861 = vmatpush.bf16.msrb.mxu1 %v4229_v39 }
 0x4c7   :  { %2885 = vmatpush.bf16.msrb.mxu3 %v4269_v19 }
 0x4ca   :  { %2872 = vmatpush.bf16.msrb.mxu2 %v4265_v13 }
 0x4cb   :  { %2886 = vmatpush.bf16.msrb.mxu3 %v4253_v32 }
 0x4cf   :  { %2887 = vmatpush.bf16.msrb.mxu3 %v4237_v42 }
 0x541   :  { %v2557_v21 = vpop.f32.mrf.mxu0  ;;  %v2570_v22 = vpop.f32.mrf.mxu1 }
 0x542   :  { %v2604_v38 = vrot.slane %v2570_v22, 7 }
 0x544   :  { %v2607_v61 = vsel %vm846_vm0, %v2557_v21, %v2604_v38  ;;  %v4678_v21 = vld [vmem:[#allocation7 + $0x34] sm:$0xf0]  ;;  %v4225_v38 = vor.u32 %v4673_v30, %v4224_v29 }
 0x545   :  { %v4249_v28 = vor.u32 %v4678_v21, %v4248_v20  ;;  %v4707_v20 = vld [vmem:[#allocation9 + $0x20] sm:$0xff]  ;;  %v4706_v21 = vld [vmem:[#allocation9 + $0x18] sm:$0xff] }
 0x546   :  { %2848 = vmatpush.bf16.msrb.mxu0 %v4225_v38 }
 0x547   :  { %2873 = vmatpush.bf16.msrb.mxu2 %v4249_v28 }
 0x548   :  { %v2583_v49 = vpop.f32.mrf.mxu2  ;;  %v2596_v1 = vpop.f32.mrf.mxu3 }
 0x549   :  { %v2605_v4 = vrot.slane %v2583_v49, 6  ;;  %v2606_v52 = vrot.slane %v2596_v1, 5  ;;  %v2559_v53 = vpop.f32.mrf.mxu0  ;;  %v2572_v54 = vpop.f32.mrf.mxu1 }
 0x54a   :  { %3009 = vmatpush.bf16.msra.mxu0 %v4710_v63 }
 0x54b   :  { %v2608_v62 = vsel %vm848_vm1, %v2605_v4, %v2606_v52  ;;  %2874 = vmatpush.bf16.msrb.mxu2 %v4233_v40 }
 0x54c   :  { %v2609_v5 = vsel %vm850_vm2, %v2607_v61, %v2608_v62 }
 0x54d   :  { %v2611_v8 = vadd.f32 %v2609_v5, %v2354_v56 }
 0x54e   :  { %3010 = vmatpush.bf16.msra.mxu0 %v4709_v3 }
 0x54f   :  { %v4221_v17 = vmul.f32 -1.442695, %v2611_v8  ;;  %v2632_v46 = vrot.slane %v2611_v8, 3 }
 0x550   :  { %v2585_v22 = vpop.f32.mrf.mxu2  ;;  %v2598_v23 = vpop.f32.mrf.mxu3 }
 0x551   :  { %4769 = vpow2.f32 %v4221_v17 }
 0x552   :  { %3011 = vmatpush.bf16.msra.mxu0 %v4708_v14 }
 0x556   :  { %3012 = vmatpush.bf16.msra.mxu0 %v4707_v20 }
 0x557   :  { %v4770_v41 = vpop.eup %4769 }
 0x558   :  { %v2615_v27 = vadd.f32 1.0, %v4770_v41 }
 0x55a   :  { %4771 = vrcp.f32 %v2615_v27  ;;  %v2627_v48 = vand.u32 2147483648, %v2615_v27  ;;  %v2625_v1 = vand.u32 2147483647, %v2615_v27  ;;  %vm2621_vm15 = vweird.f32 %v2615_v27  ;;  %3013 = vmatpush.bf16.msra.mxu0 %v4706_v21 }
 0x55b   :  { %4773 = vtanh.f32 %v2632_v46 }
 0x55c   :  { %v2628_v51 = vor.u32 1.1754944e-38, %v2627_v48  ;;  %vm2626_vm4 = vcmp.eq.f32.partialorder %v2625_v1, 8.507059e+37  ;;  %v4720_v48 = vld [vmem:[%s5081_s7] ss:$0 sm:$0xff] }
 0x55e   :  { %3014 = vmatpush.bf16.msra.mxu0 %v4705_v24 }
 0x560   :  { %v4772_v44 = vpop.eup %4771 }
 0x561   :  { %v2617_v45 = vmul.f32 %v4772_v44, %v2615_v27  ;;  %vm2622_vm14 = vweird.f32 %v4772_v44  ;;  %v4774_v54 = vpop.eup %4773 }
 0x562   :  { %vm2623_vm3 = vmor %vm2621_vm15, %vm2622_vm14  ;;  %3015 = vmatpush.bf16.msra.mxu0 %v4704_v25 }
 0x563   :  { %v2618_v47 = vsub.f32 1.0, %v2617_v45 }
 0x565   :  { %v2619_v49 = vmul.f32 %v4772_v44, %v2618_v47 }
 0x566   :  { %3016 = vmatpush.bf16.msra.mxu0 %v4703_v26 }
 0x567   :  { %v2620_v35 = vadd.f32 %v4772_v44, %v2619_v49 }
 0x569   :  { %v2624_v4 = vsel %vm2623_vm3, %v4772_v44, %v2620_v35 }
 0x56a   :  { %v2629_v52 = vsel %vm2626_vm4, %v2628_v51, %v2624_v4 }
 0x56b   :  { %v2637_v53 = vrot.slane %v2629_v52, 1  ;;  %v2635_v55 = vmul.f32 %v2629_v52, %v5048_v50  ;;  %v2642_v43 = vrot.slane %v2629_v52, 2 }
 0x56d   :  { %v2639_v56 = vmul.f32 %v4774_v54, %v2637_v53 }
 0x56f   :  { %v5055_v57 = vadd.f32 %v2639_v56, %v2635_v55 }
 0x571   :  { %4775 = vtanh.f32 %v5055_v57 }
 0x577   :  { %v4776_v58 = vpop.eup %4775 }
 0x578   :  { %v2644_v59 = vmul.f32 %v4776_v58, %v2642_v43 }
 0x57a   :  { %2645 = vst [vmem:[#allocation3 + $0x6] sm:$0x1] %v2644_v59  ;;  %v2648_v60 = vpack.c.bf16 %v2644_v59, %v2644_v59 }
 0x57c   :  { %2849 = vmatmul.bf16.vlgmr.msrb.gmra.mxu0 %v2648_v60  ;;  %2862 = vmatmul.bf16.vlgmr.msrb.gmra.mxu1 %v2648_v60 }
 0x57d   :  { %2875 = vmatmul.bf16.vlgmr.msrb.gmra.mxu2 %v2648_v60  ;;  %2888 = vmatmul.bf16.vlgmr.msrb.gmra.mxu3 %v2648_v60 }
 0x5f9   :  { %v2850_v61 = vpop.f32.mrf.mxu0  ;;  %v2863_v62 = vpop.f32.mrf.mxu1 }
 0x5fa   :  { %v2897_v0 = vrot.slane %v2863_v62, 7 }
 0x5fc   :  { %v2900_v10 = vsel %vm846_vm0, %v2850_v61, %v2897_v0 }
 0x600   :  { %v2876_v50 = vpop.f32.mrf.mxu2  ;;  %v2889_v2 = vpop.f32.mrf.mxu3 }
 0x601   :  { %v2898_v5 = vrot.slane %v2876_v50, 6  ;;  %v2899_v6 = vrot.slane %v2889_v2, 5  ;;  %v2852_v7 = vpop.f32.mrf.mxu0  ;;  %v2865_v8 = vpop.f32.mrf.mxu1 }
 0x603   :  { %v2901_v11 = vsel %vm848_vm1, %v2898_v5, %v2899_v6 }
 0x604   :  { %v2902_v13 = vsel %vm850_vm2, %v2900_v10, %v2901_v11 }
 0x605   :  { %v2904_v15 = vadd.f32 %v2902_v13, %v2647_v12 }
 0x607   :  { %v4350_v16 = vmul.f32 -1.442695, %v2904_v15  ;;  %v2925_v29 = vrot.slane %v2904_v15, 3 }
 0x608   :  { %v2878_v17 = vpop.f32.mrf.mxu2  ;;  %v2891_v19 = vpop.f32.mrf.mxu3 }
 0x609   :  { %4777 = vpow2.f32 %v4350_v16 }
 0x60f   :  { %v4778_v22 = vpop.eup %4777 }
 0x610   :  { %v2908_v23 = vadd.f32 1.0, %v4778_v22 }
 0x612   :  { %4779 = vrcp.f32 %v2908_v23  ;;  %v2920_v31 = vand.u32 2147483648, %v2908_v23  ;;  %v2918_v33 = vand.u32 2147483647, %v2908_v23  ;;  %vm2914_vm1 = vweird.f32 %v2908_v23 }
 0x613   :  { %4781 = vtanh.f32 %v2925_v29 }
 0x614   :  { %v2921_v18 = vor.u32 1.1754944e-38, %v2920_v31  ;;  %vm2919_vm5 = vcmp.eq.f32.partialorder %v2918_v33, 8.507059e+37 }
 0x618   :  { %v4780_v9 = vpop.eup %4779 }
 0x619   :  { %v2910_v28 = vmul.f32 %v4780_v9, %v2908_v23  ;;  %vm2915_vm0 = vweird.f32 %v4780_v9  ;;  %v4782_v39 = vpop.eup %4781 }
 0x61a   :  { %vm2916_vm2 = vmor %vm2914_vm1, %vm2915_vm0 }
 0x61b   :  { %v2911_v30 = vsub.f32 1.0, %v2910_v28 }
 0x61d   :  { %v2912_v32 = vmul.f32 %v4780_v9, %v2911_v30 }
 0x61f   :  { %v2913_v34 = vadd.f32 %v4780_v9, %v2912_v32 }
 0x621   :  { %v2917_v36 = vsel %vm2916_vm2, %v4780_v9, %v2913_v34 }
 0x622   :  { %v2922_v37 = vsel %vm2919_vm5, %v2921_v18, %v2917_v36 }
 0x623   :  { %v2930_v38 = vrot.slane %v2922_v37, 1  ;;  %v2928_v40 = vmul.f32 %v2922_v37, %v5055_v57  ;;  %v2935_v27 = vrot.slane %v2922_v37, 2 }
 0x625   :  { %v2932_v41 = vmul.f32 %v4782_v39, %v2930_v38 }
 0x627   :  { %v2933_v42 = vadd.f32 %v2932_v41, %v2928_v40 }
 0x629   :  { %4783 = vtanh.f32 %v2933_v42  ;;  %3024 = vst [vmem:[#allocation11] sm:$0x1] %v2933_v42 }
 0x62a   :  { %3048 = dma.vmem_to_hbm [thread:$0]  %s3044_s19, 16, %s3046_s22, [#allocation12]  }
 0x62f   :  { %v4784_v44 = vpop.eup %4783 }
 0x630   :  { %v2937_v45 = vmul.f32 %v4784_v44, %v2935_v27 }
 0x632   :  { %2938 = vst [vmem:[#allocation3 + $0x7] sm:$0x1] %v2937_v45 }
 0x633   :  { %3023 = vst [vmem:[#allocation10] sm:$0x1] %v2937_v45 }
 0x634   :  { %3037 = dma.vmem_to_hbm [thread:$0]  %s3033_s14, 16, %s3035_s17, [#allocation6]  }
 0x639   :  { %v2939_v46 = vld [vmem:[#allocation3] sm:$0xff] }
 0x63a   :  { %v2940_v47 = vpack.c.bf16 %v2939_v46, %v2939_v46 }
 0x63c   :  { %3017 = vmatmul.bf16.vlgmr.msra.gmra.mxu0 %v2940_v47 }
 0x6b9   :  { %v3018_v49 = vpop.f32.mrf.mxu0 }
 0x6ba   :  { %v3019_v1 = vadd.f32 %v4720_v48, %v3018_v49 }
 0x6bc   :  { %3022 = vst [vmem:[%s5082_s8] sm:$0xff] %v3019_v1 }
 0x6c1   :  { %v3020_v35 = vpop.f32.mrf.mxu0 }
 0x6c2   :  { %4909 = dma.done.wait [#allocation6], 16  }
 0x6c3   :  { %4910 = vsyncadd [#allocation6], 4294967280 }
 0x6c4   :  { %4911 = dma.done.wait [#allocation12], 16  }
 0x6c5   :  { %4912 = vsyncadd [#allocation12], 4294967280 }
 0x6c6   :  { %3059 = vsyncpa [#allocation5], 1 }
 0x6c7   :  { %3060 = vsyncpa [#allocation8], 1 }
 0x6c8   :  { %3061 = vsyncpa [#allocation6], 1 }
 0x6c9   :  { %3062 = vsyncpa [#allocation12], 1 }

</bundles_post_ra>
